<compile_context>
chip_gen: v7x
topology: tpu7x:2x2x1
jax: 0.10.0
libtpu: 0.0.40
codegen_flags: <defaults>
</compile_context>

<pallas_src>
import functools

import jax
import jax.numpy as jnp
from jax.experimental import pallas as pl
from jax.experimental.pallas import tpu as pltpu


def mlp_kernel(x_ref, w1_ref, b1_ref, w2_ref, b2_ref, w3_ref, b3_ref, o_ref):
    bf16 = jnp.bfloat16
    # In-kernel cast to bf16 (no-op if inputs already arrive as bf16).
    x = x_ref[...].astype(bf16)
    # Layer 1: Linear (bf16 MXU inputs, f32 accumulate) + bias + ReLU in f32.
    h1 = jnp.dot(x, w1_ref[...].astype(bf16),
                 preferred_element_type=jnp.float32) + b1_ref[...]
    h1 = jnp.maximum(h1, 0.0)
    # Layer 2: Linear + ReLU.
    h2 = jnp.dot(h1.astype(bf16), w2_ref[...].astype(bf16),
                 preferred_element_type=jnp.float32) + b2_ref[...]
    h2 = jnp.maximum(h2, 0.0)
    # Layer 3: Linear (logits, no activation).
    out = jnp.dot(h2.astype(bf16), w3_ref[...].astype(bf16),
                  preferred_element_type=jnp.float32) + b3_ref[...]
    o_ref[...] = out.astype(o_ref.dtype)


def _round_up(x, m):
    return ((x + m - 1) // m) * m


@functools.partial(jax.jit, static_argnames=("batch_tile",))
def mlp_forward(x, w1, b1, w2, b2, w3, b3, *, batch_tile=256):
    B, D = x.shape
    H = w1.shape[1]
    C = w3.shape[1]

    # One grid step covers min(batch_tile, round_up(B, 8)) rows.  For typical
    # batches (<= 256) this gives grid=(1,): no per-step overhead, no weight
    # DMA duplication across v7x TensorCores.  Larger batches tile the batch
    # axis; rows are independent so overhanging rows in a partial last tile
    # are simply masked on the output store.
    bt = min(batch_tile, _round_up(B, 8))
    grid = (pl.cdiv(B, bt),)

    full = lambda shape: pl.BlockSpec(shape, lambda i: (0, 0))

    flops = 2 * B * (D * H + H * H + H * C)
    bytes_accessed = (
        x.size * x.dtype.itemsize
        + w1.size * w1.dtype.itemsize + w2.size * w2.dtype.itemsize
        + w3.size * w3.dtype.itemsize
        + b1.size * b1.dtype.itemsize + b2.size * b2.dtype.itemsize
        + b3.size * b3.dtype.itemsize
        + B * C * 4)

    out = pl.pallas_call(
        mlp_kernel,
        out_shape=jax.ShapeDtypeStruct((B, C), jnp.float32),
        grid_spec=pltpu.PrefetchScalarGridSpec(
            num_scalar_prefetch=0,
            grid=grid,
            in_specs=[
                pl.BlockSpec((bt, D), lambda i: (i, 0)),  # x tile
                full((D, H)),                             # W1 (un-padded)
                full((1, H)),                             # b1
                full((H, H)),                             # W2
                full((1, H)),                             # b2
                full((H, C)),                             # W3
                full((1, C)),                             # b3
            ],
            out_specs=pl.BlockSpec((bt, C), lambda i: (i, 0)),
        ),
        compiler_params=pltpu.CompilerParams(
            dimension_semantics=("parallel",),
        ),
        cost_estimate=pl.CostEstimate(
            flops=flops, transcendentals=0, bytes_accessed=bytes_accessed),
    )(x, w1, b1, w2, b2, w3, b3)

    return out


def init_linear(key, fan_in, fan_out, dtype=jnp.float32):
    """PyTorch nn.Linear default init: U(-1/sqrt(fan_in), 1/sqrt(fan_in))."""
    kw, kb = jax.random.split(key)
    bound = 1.0 / jnp.sqrt(jnp.asarray(fan_in, dtype))
    w = jax.random.uniform(kw, (fan_in, fan_out), dtype, -bound, bound)
    b = jax.random.uniform(kb, (1, fan_out), dtype, -bound, bound)
    return w, b


def reference_forward(x, w1, b1, w2, b2, w3, b3):
    # Mirrors the kernel's mixed precision: bf16 matmul inputs, f32 accumulate.
    bf16, f32 = jnp.bfloat16, jnp.float32
    h1 = jnp.maximum(
        jnp.dot(x.astype(bf16), w1.astype(bf16), preferred_element_type=f32)
        + b1.astype(f32), 0.0)
    h2 = jnp.maximum(
        jnp.dot(h1.astype(bf16), w2.astype(bf16), preferred_element_type=f32)
        + b2.astype(f32), 0.0)
    return (jnp.dot(h2.astype(bf16), w3.astype(bf16), preferred_element_type=f32)
            + b3.astype(f32))


if __name__ == "__main__":
    # Shapes consistent with the module: input 32*32*3, hidden_layers[2]=64,
    # num_classes=10.  Batch 200 -> single grid step (bt = 200, grid = (1,)).
    batch = 200
    input_size = 32 * 32 * 3
    hidden = 64
    num_classes = 10

    key = jax.random.PRNGKey(0)
    kx, k1, k2, k3 = jax.random.split(key, 4)

    x = jax.random.normal(kx, (batch, input_size), jnp.float32)
    w1, b1 = init_linear(k1, input_size, hidden)
    w2, b2 = init_linear(k2, hidden, hidden)
    w3, b3 = init_linear(k3, hidden, num_classes)

    # Pre-cast weights to bf16 ONCE (cached outside the forward); biases stay
    # f32 and are added in the f32 accumulator.
    w1b, w2b, w3b = (w.astype(jnp.bfloat16) for w in (w1, w2, w3))

    out = mlp_forward(x, w1b, b1, w2b, b2, w3b, b3)
    out = jax.block_until_ready(out)

    ref = reference_forward(x, w1, b1, w2, b2, w3, b3)
    assert out.shape == (batch, num_classes)
    assert jnp.allclose(out, ref, atol=5e-3, rtol=5e-3)

    print("KERNEL_OK")
</pallas_src>

<mosaic_0001>
module attributes {stable_mosaic.version = 11 : i64} {
  func.func @mlp_kernel(%arg0: i32, %arg1: memref<200x3072xf32, #tpu.memory_space<vmem>>, %arg2: memref<3072x64xbf16, #tpu.memory_space<vmem>>, %arg3: memref<1x64xf32, #tpu.memory_space<vmem>>, %arg4: memref<64x64xbf16, #tpu.memory_space<vmem>>, %arg5: memref<1x64xf32, #tpu.memory_space<vmem>>, %arg6: memref<64x10xbf16, #tpu.memory_space<vmem>>, %arg7: memref<1x10xf32, #tpu.memory_space<vmem>>, %arg8: memref<200x10xf32, #tpu.memory_space<vmem>>) attributes {dimension_semantics = [#tpu.dimension_semantics<parallel>], iteration_bounds = array<i64: 1>, scalar_prefetch = 0 : i64, scratch_operands = 0 : i64, tpu.core_type = #tpu.core_type<tc>, window_params = [{transform_indices = @transform_0, window_bounds = array<i64: 200, 3072>}, {pipeline_mode = #tpu.pipeline_mode<synchronous>, transform_indices = @transform_1, window_bounds = array<i64: 3072, 64>}, {pipeline_mode = #tpu.pipeline_mode<synchronous>, transform_indices = @transform_2, window_bounds = array<i64: 1, 64>}, {pipeline_mode = #tpu.pipeline_mode<synchronous>, transform_indices = @transform_3, window_bounds = array<i64: 64, 64>}, {pipeline_mode = #tpu.pipeline_mode<synchronous>, transform_indices = @transform_4, window_bounds = array<i64: 1, 64>}, {pipeline_mode = #tpu.pipeline_mode<synchronous>, transform_indices = @transform_5, window_bounds = array<i64: 64, 10>}, {pipeline_mode = #tpu.pipeline_mode<synchronous>, transform_indices = @transform_6, window_bounds = array<i64: 1, 10>}, {transform_indices = @transform_7, window_bounds = array<i64: 200, 10>}]} {
    %c0 = arith.constant 0 : index
    %c0_0 = arith.constant 0 : index
    %0 = vector.load %arg1[%c0, %c0_0] : memref<200x3072xf32, #tpu.memory_space<vmem>>, vector<200x3072xf32>
    %1 = arith.truncf %0 : vector<200x3072xf32> to vector<200x3072xbf16>
    %c0_1 = arith.constant 0 : index
    %c0_2 = arith.constant 0 : index
    %2 = vector.load %arg2[%c0_1, %c0_2] : memref<3072x64xbf16, #tpu.memory_space<vmem>>, vector<3072x64xbf16>
    %cst = arith.constant dense<0.000000e+00> : vector<200x64xf32>
    %3 = tpu.matmul %1, %2, %cst {dimension_numbers = #tpu.dot_dimension_numbers<[1], [0], [0], [1], [0, 0, 1, 1], [], []>} : vector<200x3072xbf16>, vector<3072x64xbf16>, vector<200x64xf32> -> vector<200x64xf32>
    %c0_3 = arith.constant 0 : index
    %c0_4 = arith.constant 0 : index
    %4 = vector.load %arg3[%c0_3, %c0_4] : memref<1x64xf32, #tpu.memory_space<vmem>>, vector<1x64xf32>
    %5 = vector.broadcast %4 : vector<1x64xf32> to vector<200x64xf32>
    %6 = arith.addf %3, %5 : vector<200x64xf32>
    %cst_5 = arith.constant 0.000000e+00 : f32
    %7 = vector.broadcast %cst_5 : f32 to vector<200x64xf32>
    %8 = arith.maximumf %6, %7 : vector<200x64xf32>
    %9 = arith.truncf %8 : vector<200x64xf32> to vector<200x64xbf16>
    %c0_6 = arith.constant 0 : index
    %c0_7 = arith.constant 0 : index
    %10 = vector.load %arg4[%c0_6, %c0_7] : memref<64x64xbf16, #tpu.memory_space<vmem>>, vector<64x64xbf16>
    %cst_8 = arith.constant dense<0.000000e+00> : vector<200x64xf32>
    %11 = tpu.matmul %9, %10, %cst_8 {dimension_numbers = #tpu.dot_dimension_numbers<[1], [0], [0], [1], [0, 0, 1, 1], [], []>} : vector<200x64xbf16>, vector<64x64xbf16>, vector<200x64xf32> -> vector<200x64xf32>
    %c0_9 = arith.constant 0 : index
    %c0_10 = arith.constant 0 : index
    %12 = vector.load %arg5[%c0_9, %c0_10] : memref<1x64xf32, #tpu.memory_space<vmem>>, vector<1x64xf32>
    %13 = vector.broadcast %12 : vector<1x64xf32> to vector<200x64xf32>
    %14 = arith.addf %11, %13 : vector<200x64xf32>
    %cst_11 = arith.constant 0.000000e+00 : f32
    %15 = vector.broadcast %cst_11 : f32 to vector<200x64xf32>
    %16 = arith.maximumf %14, %15 : vector<200x64xf32>
    %17 = arith.truncf %16 : vector<200x64xf32> to vector<200x64xbf16>
    %c0_12 = arith.constant 0 : index
    %c0_13 = arith.constant 0 : index
    %18 = vector.load %arg6[%c0_12, %c0_13] : memref<64x10xbf16, #tpu.memory_space<vmem>>, vector<64x10xbf16>
    %cst_14 = arith.constant dense<0.000000e+00> : vector<200x10xf32>
    %19 = tpu.matmul %17, %18, %cst_14 {dimension_numbers = #tpu.dot_dimension_numbers<[1], [0], [0], [1], [0, 0, 1, 1], [], []>} : vector<200x64xbf16>, vector<64x10xbf16>, vector<200x10xf32> -> vector<200x10xf32>
    %c0_15 = arith.constant 0 : index
    %c0_16 = arith.constant 0 : index
    %20 = vector.load %arg7[%c0_15, %c0_16] : memref<1x10xf32, #tpu.memory_space<vmem>>, vector<1x10xf32>
    %21 = vector.broadcast %20 : vector<1x10xf32> to vector<200x10xf32>
    %22 = arith.addf %19, %21 : vector<200x10xf32>
    %c0_17 = arith.constant 0 : index
    %c0_18 = arith.constant 0 : index
    %23 = vector.load %arg8[%c0_17, %c0_18] : memref<200x10xf32, #tpu.memory_space<vmem>>, vector<200x10xf32>
    tpu.vector_store %arg8[%c0_17, %c0_18], %22 {strides = array<i32>} : memref<200x10xf32, #tpu.memory_space<vmem>>, vector<200x10xf32>,
    return
  }
  func.func @transform_0(%arg0: i32) -> (i32, i32) {
    %c0_i32 = arith.constant 0 : i32
    %c0_i32_0 = arith.constant 0 : i32
    return %arg0, %c0_i32 : i32, i32
  }
  func.func @transform_1(%arg0: i32) -> (i32, i32) {
    %c0_i32 = arith.constant 0 : i32
    %c0_i32_0 = arith.constant 0 : i32
    %c0_i32_1 = arith.constant 0 : i32
    return %c0_i32, %c0_i32_0 : i32, i32
  }
  func.func @transform_2(%arg0: i32) -> (i32, i32) {
    %c0_i32 = arith.constant 0 : i32
    %c0_i32_0 = arith.constant 0 : i32
    %c0_i32_1 = arith.constant 0 : i32
    return %c0_i32, %c0_i32_0 : i32, i32
  }
  func.func @transform_3(%arg0: i32) -> (i32, i32) {
    %c0_i32 = arith.constant 0 : i32
    %c0_i32_0 = arith.constant 0 : i32
    %c0_i32_1 = arith.constant 0 : i32
    return %c0_i32, %c0_i32_0 : i32, i32
  }
  func.func @transform_4(%arg0: i32) -> (i32, i32) {
    %c0_i32 = arith.constant 0 : i32
    %c0_i32_0 = arith.constant 0 : i32
    %c0_i32_1 = arith.constant 0 : i32
    return %c0_i32, %c0_i32_0 : i32, i32
  }
  func.func @transform_5(%arg0: i32) -> (i32, i32) {
    %c0_i32 = arith.constant 0 : i32
    %c0_i32_0 = arith.constant 0 : i32
    %c0_i32_1 = arith.constant 0 : i32
    return %c0_i32, %c0_i32_0 : i32, i32
  }
  func.func @transform_6(%arg0: i32) -> (i32, i32) {
    %c0_i32 = arith.constant 0 : i32
    %c0_i32_0 = arith.constant 0 : i32
    %c0_i32_1 = arith.constant 0 : i32
    return %c0_i32, %c0_i32_0 : i32, i32
  }
  func.func @transform_7(%arg0: i32) -> (i32, i32) {
    %c0_i32 = arith.constant 0 : i32
    %c0_i32_0 = arith.constant 0 : i32
    return %arg0, %c0_i32 : i32, i32
  }
}

</mosaic_0001>

<bundles_post_ra>
// kernel: mlp_forward.1
= control target key start
LH: loop header
LB: loop body
LE: loop exit
PB: predicated region body
PF: predicated region fallthrough
CT: control target
= control target key end

     0   :  { %12 = vsyncpa [#allocation3], 0  ;;  %s7896_s0 = inlined_call_operand.hbm [shape: f32[200,3072], index: 0, kind: input, shape index: {}]   ;;  %s7897_s1 = inlined_call_operand.vmem [shape: bf16[3072,64], index: 1, kind: input, shape index: {}]   ;;  %s7898_s2 = inlined_call_operand.hbm [shape: f32[1,64], index: 2, kind: input, shape index: {}]   ;;  %s7899_s3 = inlined_call_operand.hbm [shape: bf16[64,64], index: 3, kind: input, shape index: {}]   ;;  %s7900_s4 = inlined_call_operand.hbm [shape: f32[1,64], index: 4, kind: input, shape index: {}]   ;;  %s7901_s5 = inlined_call_operand.vmem [shape: bf16[64,10], index: 5, kind: input, shape index: {}]   ;;  %s7902_s6 = inlined_call_operand.hbm [shape: f32[1,10], index: 6, kind: input, shape index: {}]   ;;  %s7903_s7 = inlined_call_operand.vmem [shape: f32[200,10], index: 7, kind: output, shape index: {}]  }
   0x1   :  { %13 = vsyncpa [#allocation5], 0 }
   0x2   :  { %14 = vsyncpa [#allocation8], 0  ;;  %s6553_s24 = smov [#allocation4]   ;;  %s6554_s26 = smov [#allocation7]  }
   0x3   :  { %s35_s25 = sshll.u32 %s6553_s24, 4  ;;  %s57_s27 = sshll.u32 %s6554_s26, 4  ;;  %s36_s25 = int_to_ptr.vmem [resolvable:$true] %s35_s25  ;;  %s58_s27 = int_to_ptr.vmem [resolvable:$true] %s57_s27 }
   0x4   :  { %s6437_s30 = scalar_lea.hbm %s7898_s2, 16 }
   0x5   :  { %p6438_p0 = scmp.ne.s32.totalorder %s7898_s2, %s6437_s30  ;;  %p6441_p1 = scmp.lt.u32.totalorder %s6437_s30, %s7898_s2 }
   0x7   :  { %p6443_p2 = pnand %p6441_p1, %p6438_p0 }
   0x9   :  { %6446 = shalt.err (!%p6443_p2)
}
   0xa   :  { %s6447_s12 = scalar_lea.vmem %s36_s25, 16  ;;  %s6451_s13 = scalar_lea.vmem %s36_s25, 32 }
   0xb   :  { %p6448_p3 = scmp.ne.s32.totalorder %s36_s25, %s6447_s12  ;;  %p6452_p4 = scmp.lt.s32.totalorder %s36_s25, %s36_s25 }
   0xc   :  { %p6453_p5 = scmp.lt.s32.totalorder %s6451_s13, %s6447_s12 }
   0xe   :  { %p6454_p6 = por %p6453_p5, %p6452_p4 }
  0x10   :  { %p6455_p7 = pnand %p6454_p6, %p6448_p3 }
  0x12   :  { %6458 = shalt.err (!%p6455_p7)
}
  0x13   :  { %38 = dma.hbm_to_vmem [thread:$0]  %s7898_s2, 16, %s36_s25, [#allocation5]  }
  0x14   :  { %s6459_s18 = scalar_lea.hbm %s7900_s4, 16 }
  0x15   :  { %p6460_p8 = scmp.ne.s32.totalorder %s7900_s4, %s6459_s18  ;;  %p6463_p9 = scmp.lt.u32.totalorder %s6459_s18, %s7900_s4 }
  0x17   :  { %p6465_p10 = pnand %p6463_p9, %p6460_p8 }
  0x19   :  { %6468 = shalt.err (!%p6465_p10)
}
  0x1a   :  { %s6469_s23 = scalar_lea.vmem %s58_s27, 16  ;;  %s6473_s24 = scalar_lea.vmem %s58_s27, 32 }
  0x1b   :  { %p6470_p11 = scmp.ne.s32.totalorder %s58_s27, %s6469_s23  ;;  %p6474_p12 = scmp.lt.s32.totalorder %s58_s27, %s58_s27 }
  0x1c   :  { %p6475_p13 = scmp.lt.s32.totalorder %s6473_s24, %s6469_s23 }
  0x1e   :  { %p6476_p0 = por %p6475_p13, %p6474_p12 }
  0x20   :  { %p6477_p1 = pnand %p6476_p0, %p6470_p11 }
  0x22   :  { %6480 = shalt.err (!%p6477_p1)
}
  0x23   :  { %60 = dma.hbm_to_vmem [thread:$0]  %s7900_s4, 16, %s58_s27, [#allocation8]  }
  0x24   :  { %s6555_s26 = smov [#allocation2]   ;;  %s6481_s8 = scalar_lea.hbm %s7896_s0, 76800 }
  0x25   :  { %s20_s28 = sshll.u32 %s6555_s26, 4  ;;  %p6482_p2 = scmp.ne.s32.totalorder %s7896_s0, %s6481_s8  ;;  %s21_s28 = int_to_ptr.vmem [resolvable:$true] %s20_s28 }
  0x26   :  { %p6485_p3 = scmp.lt.u32.totalorder %s6481_s8, %s7896_s0 }
  0x28   :  { %p6487_p4 = pnand %p6485_p3, %p6482_p2 }
  0x2a   :  { %6490 = shalt.err (!%p6487_p4)
}
  0x2b   :  { %s6491_s13 = scalar_lea.vmem %s21_s28, 76800  ;;  %p6496_p6 = scmp.lt.s32.totalorder %s21_s28, %s21_s28 }
  0x2c   :  { %p6492_p5 = scmp.ne.s32.totalorder %s21_s28, %s6491_s13  ;;  %p6497_p7 = scmp.lt.s32.totalorder %s6491_s13, %s6491_s13 }
  0x2e   :  { %p6498_p8 = por %p6497_p7, %p6496_p6 }
  0x30   :  { %p6499_p9 = pnand %p6498_p8, %p6492_p5 }
  0x32   :  { %6502 = shalt.err (!%p6499_p9)
}
  0x33   :  { %s6556_s4 = smov 3072   ;;  %s6557_s27 = smov 192  }
  0x34   :  { %26 = dma.hbm_to_vmem [thread:$0]  %s7896_s0, 76800, %s21_s28, [#allocation3], %s6556_s4, %s6556_s4, %s6557_s27  }
  0x35   :  { %s6558_s16 = smov [#allocation6]   ;;  %s6503_s20 = scalar_lea.hbm %s7899_s3, 512 }
  0x36   :  { %s44_s17 = sshll.u32 %s6558_s16, 4  ;;  %p6504_p10 = scmp.ne.s32.totalorder %s7899_s3, %s6503_s20  ;;  %s45_s17 = int_to_ptr.vmem [resolvable:$true] %s44_s17 }
  0x37   :  { %p6507_p11 = scmp.lt.u32.totalorder %s6503_s20, %s7899_s3 }
  0x39   :  { %p6509_p12 = pnand %p6507_p11, %p6504_p10 }
  0x3b   :  { %6512 = shalt.err (!%p6509_p12)
}
  0x3c   :  { %s6513_s2 = scalar_lea.vmem %s45_s17, 512  ;;  %p6518_p0 = scmp.lt.s32.totalorder %s45_s17, %s45_s17 }
  0x3d   :  { %p6514_p13 = scmp.ne.s32.totalorder %s45_s17, %s6513_s2  ;;  %p6519_p1 = scmp.lt.s32.totalorder %s6513_s2, %s6513_s2 }
  0x3f   :  { %p6520_p2 = por %p6519_p1, %p6518_p0 }
  0x41   :  { %p6521_p3 = pnand %p6520_p2, %p6514_p13 }
  0x43   :  { %6524 = shalt.err (!%p6521_p3)
}
  0x44   :  { %s6559_s0 = smov 64   ;;  %s6560_s25 = smov 4  }
  0x45   :  { %50 = dma.hbm_to_vmem [thread:$0]  %s7899_s3, 512, %s45_s17, [#allocation5], %s6559_s0, %s6559_s0, %s6560_s25  }
  0x46   :  { %s6561_s29 = smov [#allocation9]   ;;  %s6525_s10 = scalar_lea.hbm %s7902_s6, 16 }
  0x47   :  { %s69_s30 = sshll.u32 %s6561_s29, 4  ;;  %p6526_p4 = scmp.ne.s32.totalorder %s7902_s6, %s6525_s10  ;;  %s70_s30 = int_to_ptr.vmem [resolvable:$true] %s69_s30 }
  0x48   :  { %p6529_p5 = scmp.lt.u32.totalorder %s6525_s10, %s7902_s6 }
  0x4a   :  { %p6531_p6 = pnand %p6529_p5, %p6526_p4 }
  0x4c   :  { %6534 = shalt.err (!%p6531_p6)
}
  0x4d   :  { %s6535_s27 = scalar_lea.vmem %s70_s30, 16  ;;  %s6539_s3 = scalar_lea.vmem %s70_s30, 32 }
  0x4e   :  { %p6536_p7 = scmp.ne.s32.totalorder %s70_s30, %s6535_s27  ;;  %p6540_p8 = scmp.lt.s32.totalorder %s70_s30, %s70_s30 }
  0x4f   :  { %p6541_p9 = scmp.lt.s32.totalorder %s6539_s3, %s6535_s27 }
  0x51   :  { %p6542_p10 = por %p6541_p9, %p6540_p8 }
  0x53   :  { %p6543_p11 = pnand %p6542_p10, %p6536_p7 }
  0x55   :  { %6546 = shalt.err (!%p6543_p11)
}
  0x56   :  { %72 = dma.hbm_to_vmem [thread:$0]  %s7902_s6, 16, %s70_s30, [#allocation8]  }
  0x57   :  { %6547 = dma.done.wait [#allocation3], 76800  }
  0x58   :  { %6548 = vsyncadd [#allocation3], 4294890496 }
  0x59   :  { %6549 = dma.done.wait [#allocation5], 528  }
  0x5a   :  { %6550 = vsyncadd [#allocation5], 4294966768 }
  0x5b   :  { %6551 = dma.done.wait [#allocation8], 32  }
  0x5c   :  { %6552 = vsyncadd [#allocation8], 4294967264  ;;  %v6236_v0 = vld [vmem:[%s7897_s1 + $0x40] sm:$0xff]   ;;  %v6240_v4 = vld [vmem:[%s7897_s1 + $0x48] sm:$0xff]   ;;  %vm6563_vm0 = vmmov 0   ;;  %vm4253_vm1 = vcmask 523264  }
  0x5d   :  { %v6237_v1 = vld [vmem:[%s7897_s1 + $0xc0] sm:$0xff]   ;;  %4943 = vmatprep.subr.bf16.mxu0 %v6236_v0  ;;  %v6241_v5 = vld [vmem:[%s7897_s1 + $0xc8] sm:$0xff]   ;;  %v6244_v8 = vld [vmem:[%s7897_s1 + $0x50] sm:$0xff]   ;;  %vm4681_vm2 = vcmask 80896  }
  0x5e   :  { %v6238_v2 = vld [vmem:[%s7897_s1] sm:$0xff]   ;;  %5037 = vmatprep.subr.bf16.mxu1 %v6237_v1  ;;  %v6242_v6 = vld [vmem:[%s7897_s1 + $0x8] sm:$0xff]   ;;  %v6245_v9 = vld [vmem:[%s7897_s1 + $0xd0] sm:$0xff]  }
  0x5f   :  { %v6239_v3 = vld [vmem:[%s7897_s1 + $0x80] sm:$0xff]   ;;  %4944 = vmatpush3.bf16.msra.mxu0 %v6238_v2  ;;  %v6243_v7 = vld [vmem:[%s7897_s1 + $0x88] sm:$0xff]   ;;  %v6246_v10 = vld [vmem:[%s7897_s1 + $0x10] sm:$0xff]  }
  0x60   :  { %5038 = vmatpush3.bf16.msra.mxu1 %v6239_v3  ;;  %4945 = vmatprep.subr.bf16.mxu0 %v6240_v4  ;;  %v6247_v11 = vld [vmem:[%s7897_s1 + $0x90] sm:$0xff]   ;;  %v6248_v12 = vld [vmem:[%s7897_s1 + $0x58] sm:$0xff]   ;;  %v6252_v16 = vld [vmem:[%s7897_s1 + $0x60] sm:$0xff]  }
  0x61   :  { %5039 = vmatprep.subr.bf16.mxu1 %v6241_v5  ;;  %v6249_v13 = vld [vmem:[%s7897_s1 + $0xd8] sm:$0xff]   ;;  %v6253_v17 = vld [vmem:[%s7897_s1 + $0xe0] sm:$0xff]   ;;  %v6256_v20 = vld [vmem:[%s7897_s1 + $0x68] sm:$0xff]  }
  0x62   :  { %v6250_v14 = vld [vmem:[%s7897_s1 + $0x18] sm:$0xff]   ;;  %v6254_v18 = vld [vmem:[%s7897_s1 + $0x20] sm:$0xff]   ;;  %v6257_v21 = vld [vmem:[%s7897_s1 + $0xe8] sm:$0xff]  }
  0x63   :  { %4946 = vmatpush3.bf16.msra.mxu0 %v6242_v6  ;;  %v6251_v15 = vld [vmem:[%s7897_s1 + $0x98] sm:$0xff]   ;;  %v6255_v19 = vld [vmem:[%s7897_s1 + $0xa0] sm:$0xff]   ;;  %v6258_v22 = vld [vmem:[%s7897_s1 + $0x28] sm:$0xff]  }
  0x64   :  { %5040 = vmatpush3.bf16.msra.mxu1 %v6243_v7  ;;  %4947 = vmatprep.subr.bf16.mxu0 %v6244_v8  ;;  %v6259_v23 = vld [vmem:[%s7897_s1 + $0xa8] sm:$0xff]   ;;  %v6260_v24 = vld [vmem:[%s7897_s1 + $0x70] sm:$0xff]   ;;  %v6264_v28 = vld [vmem:[%s7897_s1 + $0x78] sm:$0xff]  }
  0x65   :  { %5041 = vmatprep.subr.bf16.mxu1 %v6245_v9  ;;  %v6261_v25 = vld [vmem:[%s7897_s1 + $0xf0] sm:$0xff]   ;;  %v6265_v29 = vld [vmem:[%s7897_s1 + $0xf8] sm:$0xff]   ;;  %v90_v32 = vld [vmem:[#allocation2 + $0x8] sm:$0xff] }
  0x66   :  { %v6262_v26 = vld [vmem:[%s7897_s1 + $0x30] sm:$0xff]   ;;  %v6266_v30 = vld [vmem:[%s7897_s1 + $0x38] sm:$0xff]   ;;  %v114_v33 = vld [vmem:[#allocation2 + $0xc8] sm:$0xff] }
  0x67   :  { %4948 = vmatpush3.bf16.msra.mxu0 %v6246_v10  ;;  %v6263_v27 = vld [vmem:[%s7897_s1 + $0xb0] sm:$0xff]   ;;  %v6267_v31 = vld [vmem:[%s7897_s1 + $0xb8] sm:$0xff]   ;;  %v690_v35 = vpack.c.bf16 %v114_v33, %v90_v32  ;;  %v89_v37 = vld [vmem:[#allocation2] sm:$0xff] }
  0x68   :  { %5042 = vmatpush3.bf16.msra.mxu1 %v6247_v11  ;;  %4949 = vmatprep.subr.bf16.mxu0 %v6248_v12  ;;  %v92_v34 = vld [vmem:[#allocation2 + $0x18] sm:$0xff]  ;;  %v113_v38 = vld [vmem:[#allocation2 + $0xc0] sm:$0xff]  ;;  %v91_v41 = vld [vmem:[#allocation2 + $0x10] sm:$0xff] }
  0x69   :  { %5043 = vmatprep.subr.bf16.mxu1 %v6249_v13  ;;  %v116_v36 = vld [vmem:[#allocation2 + $0xd8] sm:$0xff]  ;;  %v689_v40 = vpack.c.bf16 %v113_v38, %v89_v37  ;;  %v115_v42 = vld [vmem:[#allocation2 + $0xd0] sm:$0xff]  ;;  %2576 = vmatprep.mubr.bf16.mxu0 %v690_v35  ;;  %v6268_v44 = vld [vmem:[%s7897_s1 + $0x140] sm:$0xff]  }
  0x6a   :  { %v692_v39 = vpack.c.bf16 %v116_v36, %v92_v34  ;;  %v691_v43 = vpack.c.bf16 %v115_v42, %v91_v41  ;;  %v6269_v45 = vld [vmem:[%s7897_s1 + $0x100] sm:$0xff]   ;;  %v138_v48 = vld [vmem:[#allocation2 + $0x188] sm:$0xff]  ;;  %v140_v50 = vld [vmem:[#allocation2 + $0x198] sm:$0xff] }
  0x6b   :  { %4950 = vmatpush3.bf16.msra.mxu0 %v6250_v14  ;;  %v6270_v46 = vld [vmem:[%s7897_s1 + $0x1c0] sm:$0xff]   ;;  %v162_v49 = vld [vmem:[#allocation2 + $0x248] sm:$0xff]  ;;  %v164_v51 = vld [vmem:[#allocation2 + $0x258] sm:$0xff] }
  0x6c   :  { %5044 = vmatpush3.bf16.msra.mxu1 %v6251_v15  ;;  %4951 = vmatprep.subr.bf16.mxu0 %v6252_v16  ;;  %v6271_v47 = vld [vmem:[%s7897_s1 + $0x180] sm:$0xff]   ;;  %v714_v52 = vpack.c.bf16 %v162_v49, %v138_v48  ;;  %v716_v53 = vpack.c.bf16 %v164_v51, %v140_v50  ;;  %v139_v56 = vld [vmem:[#allocation2 + $0x190] sm:$0xff]  ;;  %v6272_v60 = vld [vmem:[%s7897_s1 + $0x148] sm:$0xff]  }
  0x6d   :  { %5045 = vmatprep.subr.bf16.mxu1 %v6253_v17  ;;  %2712 = vmatprep.mubr.bf16.mxu1 %v692_v39  ;;  %v137_v54 = vld [vmem:[#allocation2 + $0x180] sm:$0xff]  ;;  %v163_v58 = vld [vmem:[#allocation2 + $0x250] sm:$0xff]  ;;  %v6273_v61 = vld [vmem:[%s7897_s1 + $0x108] sm:$0xff]  }
  0x6e   :  { %v161_v55 = vld [vmem:[#allocation2 + $0x240] sm:$0xff]  ;;  %v715_v59 = vpack.c.bf16 %v163_v58, %v139_v56  ;;  %v186_v62 = vld [vmem:[#allocation2 + $0x308] sm:$0xff]  ;;  %v188_v1 = vld [vmem:[#allocation2 + $0x318] sm:$0xff] }
  0x6f   :  { %4952 = vmatpush3.bf16.msra.mxu0 %v6254_v18  ;;  %v713_v57 = vpack.c.bf16 %v161_v55, %v137_v54  ;;  %v210_v63 = vld [vmem:[#allocation2 + $0x3c8] sm:$0xff]  ;;  %v212_v2 = vld [vmem:[#allocation2 + $0x3d8] sm:$0xff]  ;;  %v185_v5 = vld [vmem:[#allocation2 + $0x300] sm:$0xff] }
  0x70   :  { %5046 = vmatpush3.bf16.msra.mxu1 %v6255_v19  ;;  %4953 = vmatprep.subr.bf16.mxu0 %v6256_v20  ;;  %v738_v0 = vpack.c.bf16 %v210_v63, %v186_v62  ;;  %v740_v3 = vpack.c.bf16 %v212_v2, %v188_v1  ;;  %v6274_v4 = vld [vmem:[%s7897_s1 + $0x1c8] sm:$0xff]   ;;  %v209_v6 = vld [vmem:[#allocation2 + $0x3c0] sm:$0xff]  ;;  %v187_v7 = vld [vmem:[#allocation2 + $0x310] sm:$0xff] }
  0x71   :  { %5047 = vmatprep.subr.bf16.mxu1 %v6257_v21  ;;  %v211_v8 = vld [vmem:[#allocation2 + $0x3d0] sm:$0xff]  ;;  %v6275_v9 = vld [vmem:[%s7897_s1 + $0x188] sm:$0xff]   ;;  %v737_v10 = vpack.c.bf16 %v209_v6, %v185_v5  ;;  %v236_v13 = vld [vmem:[#allocation2 + $0x498] sm:$0xff] }
  0x72   :  { %v234_v11 = vld [vmem:[#allocation2 + $0x488] sm:$0xff]  ;;  %v739_v14 = vpack.c.bf16 %v211_v8, %v187_v7  ;;  %v260_v16 = vld [vmem:[#allocation2 + $0x558] sm:$0xff]  ;;  %v233_v18 = vld [vmem:[#allocation2 + $0x480] sm:$0xff] }
  0x73   :  { %4954 = vmatpush3.bf16.msra.mxu0 %v6258_v22  ;;  %v258_v12 = vld [vmem:[#allocation2 + $0x548] sm:$0xff]  ;;  %v764_v17 = vpack.c.bf16 %v260_v16, %v236_v13  ;;  %v257_v19 = vld [vmem:[#allocation2 + $0x540] sm:$0xff]  ;;  %v6276_v20 = vld [vmem:[%s7897_s1 + $0x150] sm:$0xff]  }
  0x74   :  { %5048 = vmatpush3.bf16.msra.mxu1 %v6259_v23  ;;  %4955 = vmatprep.subr.bf16.mxu0 %v6260_v24  ;;  %v762_v15 = vpack.c.bf16 %v258_v12, %v234_v11  ;;  %v235_v21 = vld [vmem:[#allocation2 + $0x490] sm:$0xff]  ;;  %v281_v34 = vld [vmem:[#allocation2 + $0x600] sm:$0xff]  ;;  %v6280_v36 = vld [vmem:[%s7897_s1 + $0x158] sm:$0xff]  }
  0x75   :  { %5049 = vmatprep.subr.bf16.mxu1 %v6261_v25  ;;  %v259_v22 = vld [vmem:[#allocation2 + $0x550] sm:$0xff]  ;;  %v305_v35 = vld [vmem:[#allocation2 + $0x6c0] sm:$0xff]  ;;  %v330_v39 = vld [vmem:[#allocation2 + $0x788] sm:$0xff] }
  0x76   :  { %v6277_v23 = vld [vmem:[%s7897_s1 + $0x110] sm:$0xff]   ;;  %v332_v41 = vld [vmem:[#allocation2 + $0x798] sm:$0xff]  ;;  %v329_v50 = vld [vmem:[#allocation2 + $0x780] sm:$0xff] }
  0x77   :  { %4956 = vmatpush3.bf16.msra.mxu0 %v6262_v26  ;;  %v6278_v24 = vld [vmem:[%s7897_s1 + $0x1d0] sm:$0xff]   ;;  %v282_v26 = vld [vmem:[#allocation2 + $0x608] sm:$0xff]  ;;  %v356_v42 = vld [vmem:[#allocation2 + $0x858] sm:$0xff] }
  0x78   :  { %5050 = vmatpush3.bf16.msra.mxu1 %v6263_v27  ;;  %4957 = vmatprep.subr.bf16.mxu0 %v6264_v28  ;;  %v6279_v25 = vld [vmem:[%s7897_s1 + $0x190] sm:$0xff]   ;;  %v306_v27 = vld [vmem:[#allocation2 + $0x6c8] sm:$0xff]  ;;  %v284_v28 = vld [vmem:[#allocation2 + $0x618] sm:$0xff]  ;;  %v812_v49 = vpack.c.bf16 %v356_v42, %v332_v41 }
  0x79   :  { %5051 = vmatprep.subr.bf16.mxu1 %v6265_v29  ;;  %v308_v29 = vld [vmem:[#allocation2 + $0x6d8] sm:$0xff]  ;;  %v786_v32 = vpack.c.bf16 %v306_v27, %v282_v26  ;;  %v283_v37 = vld [vmem:[#allocation2 + $0x610] sm:$0xff]  ;;  %v353_v51 = vld [vmem:[#allocation2 + $0x840] sm:$0xff] }
  0x7a   :  { %v788_v33 = vpack.c.bf16 %v308_v29, %v284_v28  ;;  %v307_v38 = vld [vmem:[#allocation2 + $0x6d0] sm:$0xff]  ;;  %v6285_v55 = vld [vmem:[%s7897_s1 + $0x120] sm:$0xff]   ;;  %v378_v56 = vld [vmem:[#allocation2 + $0x908] sm:$0xff]  ;;  %v809_v62 = vpack.c.bf16 %v353_v51, %v329_v50 }
  0x7b   :  { %4958 = vmatpush3.bf16.msra.mxu0 %v6266_v30  ;;  %v761_v30 = vpack.c.bf16 %v257_v19, %v233_v18  ;;  %v355_v54 = vld [vmem:[#allocation2 + $0x850] sm:$0xff]  ;;  %v402_v58 = vld [vmem:[#allocation2 + $0x9c8] sm:$0xff]  ;;  %v377_v2 = vld [vmem:[#allocation2 + $0x900] sm:$0xff] }
  0x7c   :  { %5052 = vmatpush3.bf16.msra.mxu1 %v6267_v31  ;;  %5131 = vmatprep.subr.bf16.mxu0 %v6268_v44  ;;  %v763_v31 = vpack.c.bf16 %v259_v22, %v235_v21  ;;  %v6282_v44 = vld [vmem:[%s7897_s1 + $0x1d8] sm:$0xff]   ;;  %v403_v5 = vld [vmem:[#allocation2 + $0x9d0] sm:$0xff]  ;;  %v426_v6 = vld [vmem:[#allocation2 + $0xa88] sm:$0xff] }
  0x7d   :  { %5225 = vmatprep.subr.bf16.mxu1 %v6270_v46  ;;  %v785_v46 = vpack.c.bf16 %v305_v35, %v281_v34  ;;  %v450_v7 = vld [vmem:[#allocation2 + $0xb48] sm:$0xff]  ;;  %v425_v18 = vld [vmem:[#allocation2 + $0xa80] sm:$0xff]  ;;  %v6292_v19 = vld [vmem:[%s7897_s1 + $0x170] sm:$0xff]  }
  0x7e   :  { %2577 = vmatmul.mubr.bf16.vlgmr.msra.gmra.mrb[0].mxu0 %v689_v40  ;;  %v354_v40 = vld [vmem:[#allocation2 + $0x848] sm:$0xff]  ;;  %v858_v16 = vpack.c.bf16 %v450_v7, %v426_v6  ;;  %v427_v21 = vld [vmem:[#allocation2 + $0xa90] sm:$0xff]  ;;  %v476_v26 = vld [vmem:[#allocation2 + $0xc18] sm:$0xff] }
  0x7f   :  { %2713 = vmatmul.mubr.bf16.vlgmr.msra.gmra.mrb[0].mxu1 %v691_v43  ;;  %5132 = vmatpush3.bf16.msra.mxu0 %v6269_v45  ;;  %v6281_v43 = vld [vmem:[%s7897_s1 + $0x118] sm:$0xff]   ;;  %v810_v48 = vpack.c.bf16 %v354_v40, %v330_v39  ;;  %v6288_v8 = vld [vmem:[%s7897_s1 + $0x168] sm:$0xff]   ;;  %v451_v22 = vld [vmem:[#allocation2 + $0xb50] sm:$0xff] }
  0x80   :  { %5226 = vmatpush3.bf16.msra.mxu1 %v6271_v47  ;;  %2584 = vmatprep.mubr.bf16.mxu0 %v714_v52  ;;  %v6283_v45 = vld [vmem:[%s7897_s1 + $0x198] sm:$0xff]   ;;  %v787_v47 = vpack.c.bf16 %v307_v38, %v283_v37  ;;  %v6284_v52 = vld [vmem:[%s7897_s1 + $0x160] sm:$0xff]   ;;  %v6289_v11 = vld [vmem:[%s7897_s1 + $0x128] sm:$0xff]  }
  0x81   :  { %2720 = vmatprep.mubr.bf16.mxu1 %v716_v53  ;;  %5133 = vmatprep.subr.bf16.mxu0 %v6272_v60  ;;  %v331_v53 = vld [vmem:[#allocation2 + $0x790] sm:$0xff]  ;;  %v404_v60 = vld [vmem:[#allocation2 + $0x9d8] sm:$0xff]  ;;  %v6290_v12 = vld [vmem:[%s7897_s1 + $0x1e8] sm:$0xff]  }
  0x82   :  { %5227 = vmatprep.subr.bf16.mxu1 %v6274_v4  ;;  %v811_v63 = vpack.c.bf16 %v355_v54, %v331_v53  ;;  %v379_v4 = vld [vmem:[#allocation2 + $0x910] sm:$0xff]  ;;  %v6291_v13 = vld [vmem:[%s7897_s1 + $0x1a8] sm:$0xff]   ;;  %v500_v27 = vld [vmem:[#allocation2 + $0xcd8] sm:$0xff] }
  0x83   :  { %5134 = vmatpush3.bf16.msra.mxu0 %v6273_v61  ;;  %v6287_v61 = vld [vmem:[%s7897_s1 + $0x1a0] sm:$0xff]   ;;  %v6294_v29 = vld [vmem:[%s7897_s1 + $0x1f0] sm:$0xff]   ;;  %v522_v38 = vld [vmem:[#allocation2 + $0xd88] sm:$0xff] }
  0x84   :  { %5228 = vmatpush3.bf16.msra.mxu1 %v6275_v9  ;;  %5135 = vmatprep.subr.bf16.mxu0 %v6276_v20  ;;  %v428_v9 = vld [vmem:[#allocation2 + $0xa98] sm:$0xff]  ;;  %v449_v20 = vld [vmem:[#allocation2 + $0xb40] sm:$0xff]  ;;  %v499_v37 = vld [vmem:[#allocation2 + $0xcd0] sm:$0xff] }
  0x85   :  { %5229 = vmatprep.subr.bf16.mxu1 %v6278_v24  ;;  %v474_v24 = vld [vmem:[#allocation2 + $0xc08] sm:$0xff]  ;;  %v857_v28 = vpack.c.bf16 %v449_v20, %v425_v18  ;;  %v473_v34 = vld [vmem:[#allocation2 + $0xc00] sm:$0xff]  ;;  %v6296_v40 = vld [vmem:[%s7897_s1 + $0x178] sm:$0xff]  }
  0x86   :  { %2585 = vmatmul.mubr.bf16.gmra.mrb[4].mxu0 %v713_v57  ;;  %v6286_v57 = vld [vmem:[%s7897_s1 + $0x1e0] sm:$0xff]   ;;  %v546_v39 = vld [vmem:[#allocation2 + $0xe48] sm:$0xff]  ;;  %v524_v41 = vld [vmem:[#allocation2 + $0xd98] sm:$0xff] }
  0x87   :  { %2721 = vmatmul.mubr.bf16.gmra.mrb[4].mxu1 %v715_v59  ;;  %2592 = vmatprep.mubr.bf16.mxu0 %v738_v0  ;;  %v380_v59 = vld [vmem:[#allocation2 + $0x918] sm:$0xff]  ;;  %v834_v0 = vpack.c.bf16 %v402_v58, %v378_v56  ;;  %v497_v35 = vld [vmem:[#allocation2 + $0xcc0] sm:$0xff]  ;;  %v547_v53 = vld [vmem:[#allocation2 + $0xe50] sm:$0xff] }
  0x88   :  { %2728 = vmatprep.mubr.bf16.mxu1 %v740_v3  ;;  %5136 = vmatpush3.bf16.msra.mxu0 %v6277_v23  ;;  %v836_v1 = vpack.c.bf16 %v404_v60, %v380_v59  ;;  %v401_v3 = vld [vmem:[#allocation2 + $0x9c0] sm:$0xff]  ;;  %v6293_v23 = vld [vmem:[%s7897_s1 + $0x130] sm:$0xff]   ;;  %v548_v42 = vld [vmem:[#allocation2 + $0xe58] sm:$0xff] }
  0x89   :  { %5230 = vmatpush3.bf16.msra.mxu1 %v6279_v25  ;;  %5137 = vmatprep.subr.bf16.mxu0 %v6280_v36  ;;  %v498_v25 = vld [vmem:[#allocation2 + $0xcc8] sm:$0xff]  ;;  %v475_v36 = vld [vmem:[#allocation2 + $0xc10] sm:$0xff]  ;;  %v521_v50 = vld [vmem:[#allocation2 + $0xd80] sm:$0xff] }
  0x8a   :  { %5231 = vmatprep.subr.bf16.mxu1 %v6282_v44  ;;  %v6298_v44 = vld [vmem:[%s7897_s1 + $0x1f8] sm:$0xff]   ;;  %v545_v51 = vld [vmem:[#allocation2 + $0xe40] sm:$0xff]  ;;  %v570_v54 = vld [vmem:[#allocation2 + $0xf08] sm:$0xff] }
  0x8b   :  { %v6300_v56 = vld [vmem:[%s7897_s1 + $0x240] sm:$0xff]   ;;  %v596_v59 = vld [vmem:[#allocation2 + $0xfd8] sm:$0xff]  ;;  %v905_v60 = vpack.c.bf16 %v545_v51, %v521_v50  ;;  %v143_v50 = vld [vmem:[#allocation2 + $0x1b0] sm:$0xff] }
  0x8c   :  { %5138 = vmatpush3.bf16.msra.mxu0 %v6281_v43  ;;  %v6297_v43 = vld [vmem:[%s7897_s1 + $0x138] sm:$0xff]   ;;  %v6302_v58 = vld [vmem:[%s7897_s1 + $0x2c0] sm:$0xff]   ;;  %v167_v51 = vld [vmem:[#allocation2 + $0x270] sm:$0xff] }
  0x8d   :  { %5232 = vmatpush3.bf16.msra.mxu1 %v6283_v45  ;;  %5139 = vmatprep.subr.bf16.mxu0 %v6284_v52  ;;  %v6299_v45 = vld [vmem:[%s7897_s1 + $0x1b8] sm:$0xff]   ;;  %v523_v52 = vld [vmem:[#allocation2 + $0xd90] sm:$0xff] }
  0x8e   :  { %2593 = vmatmul.mubr.bf16.gmra.mrb[8].mxu0 %v737_v10  ;;  %5233 = vmatprep.subr.bf16.mxu1 %v6286_v57  ;;  %v452_v10 = vld [vmem:[#allocation2 + $0xb58] sm:$0xff] }
  0x8f   :  { %2729 = vmatmul.mubr.bf16.gmra.mrb[8].mxu1 %v739_v14  ;;  %2600 = vmatprep.mubr.bf16.mxu0 %v762_v15  ;;  %v833_v14 = vpack.c.bf16 %v401_v3, %v377_v2  ;;  %v835_v15 = vpack.c.bf16 %v403_v5, %v379_v4  ;;  %v572_v57 = vld [vmem:[#allocation2 + $0xf18] sm:$0xff]  ;;  %v571_v2 = vld [vmem:[#allocation2 + $0xf10] sm:$0xff]  ;;  %v618_v4 = vld [vmem:[#allocation2 + $0x1088] sm:$0xff] }
  0x90   :  { %2736 = vmatprep.mubr.bf16.mxu1 %v764_v17  ;;  %5140 = vmatpush3.bf16.msra.mxu0 %v6285_v55  ;;  %v860_v17 = vpack.c.bf16 %v452_v10, %v428_v9  ;;  %v594_v55 = vld [vmem:[#allocation2 + $0xfc8] sm:$0xff]  ;;  %v595_v3 = vld [vmem:[#allocation2 + $0xfd0] sm:$0xff]  ;;  %v620_v6 = vld [vmem:[#allocation2 + $0x1098] sm:$0xff] }
  0x91   :  { %5234 = vmatpush3.bf16.msra.mxu1 %v6287_v61  ;;  %5141 = vmatprep.subr.bf16.mxu0 %v6288_v8  ;;  %v907_v61 = vpack.c.bf16 %v547_v53, %v523_v52  ;;  %v642_v5 = vld [vmem:[#allocation2 + $0x1148] sm:$0xff]  ;;  %v644_v7 = vld [vmem:[#allocation2 + $0x1158] sm:$0xff]  ;;  %v931_v9 = vpack.c.bf16 %v595_v3, %v571_v2  ;;  %v213_v2 = vld [vmem:[#allocation2 + $0x3e0] sm:$0xff] }
  0x92   :  { %5235 = vmatprep.subr.bf16.mxu1 %v6290_v12  ;;  %v954_v10 = vpack.c.bf16 %v642_v5, %v618_v4  ;;  %v617_v12 = vld [vmem:[#allocation2 + $0x1080] sm:$0xff]  ;;  %v190_v52 = vld [vmem:[#allocation2 + $0x328] sm:$0xff]  ;;  %v6311_v3 = vld [vmem:[%s7897_s1 + $0x290] sm:$0xff]  }
  0x93   :  { %v214_v53 = vld [vmem:[#allocation2 + $0x3e8] sm:$0xff]  ;;  %v6312_v4 = vld [vmem:[%s7897_s1 + $0x258] sm:$0xff]   ;;  %v191_v5 = vld [vmem:[#allocation2 + $0x330] sm:$0xff] }
  0x94   :  { %5142 = vmatpush3.bf16.msra.mxu0 %v6289_v11  ;;  %v956_v11 = vpack.c.bf16 %v644_v7, %v620_v6  ;;  %v215_v6 = vld [vmem:[#allocation2 + $0x3f0] sm:$0xff]  ;;  %v6314_v7 = vld [vmem:[%s7897_s1 + $0x2d8] sm:$0xff]  }
  0x95   :  { %5236 = vmatpush3.bf16.msra.mxu1 %v6291_v13  ;;  %5143 = vmatprep.subr.bf16.mxu0 %v6292_v19  ;;  %v641_v13 = vld [vmem:[#allocation2 + $0x1140] sm:$0xff] }
  0x96   :  { %2601 = vmatmul.mubr.bf16.gmra.mrb[12].mxu0 %v761_v30  ;;  %v859_v30 = vpack.c.bf16 %v451_v22, %v427_v21  ;;  %5237 = vmatprep.subr.bf16.mxu1 %v6294_v29  ;;  %v953_v18 = vpack.c.bf16 %v641_v13, %v617_v12  ;;  %v665_v22 = vld [vmem:[#allocation2 + $0x1200] sm:$0xff]  ;;  %v264_v12 = vld [vmem:[#allocation2 + $0x578] sm:$0xff] }
  0x97   :  { %2737 = vmatmul.mubr.bf16.gmra.mrb[12].mxu1 %v763_v31  ;;  %2608 = vmatprep.mubr.bf16.mxu0 %v786_v32  ;;  %v882_v31 = vpack.c.bf16 %v498_v25, %v474_v24  ;;  %v6295_v32 = vld [vmem:[%s7897_s1 + $0x1b0] sm:$0xff]   ;;  %v94_v24 = vld [vmem:[#allocation2 + $0x28] sm:$0xff]  ;;  %v6315_v13 = vld [vmem:[%s7897_s1 + $0x298] sm:$0xff]  }
  0x98   :  { %2744 = vmatprep.mubr.bf16.mxu1 %v788_v33  ;;  %5144 = vmatpush3.bf16.msra.mxu0 %v6293_v23  ;;  %v884_v33 = vpack.c.bf16 %v500_v27, %v476_v26  ;;  %v667_v23 = vld [vmem:[#allocation2 + $0x1210] sm:$0xff]  ;;  %v118_v25 = vld [vmem:[#allocation2 + $0xe8] sm:$0xff]  ;;  %v96_v26 = vld [vmem:[#allocation2 + $0x38] sm:$0xff] }
  0x99   :  { %5238 = vmatpush3.bf16.msra.mxu1 %v6295_v32  ;;  %5145 = vmatprep.subr.bf16.mxu0 %v6296_v40  ;;  %v120_v27 = vld [vmem:[#allocation2 + $0xf8] sm:$0xff]  ;;  %v979_v29 = vpack.c.bf16 %v667_v23, %v667_v23  ;;  %v93_v32 = vld [vmem:[#allocation2 + $0x20] sm:$0xff] }
  0x9a   :  { %5239 = vmatprep.subr.bf16.mxu1 %v6298_v44  ;;  %v168_v40 = vld [vmem:[#allocation2 + $0x278] sm:$0xff]  ;;  %v6319_v23 = vld [vmem:[%s7897_s1 + $0x2a0] sm:$0xff]  }
  0x9c   :  { %5146 = vmatpush3.bf16.msra.mxu0 %v6297_v43  ;;  %v6303_v43 = vld [vmem:[%s7897_s1 + $0x280] sm:$0xff]  }
  0x9d   :  { %5240 = vmatpush3.bf16.msra.mxu1 %v6299_v45  ;;  %5319 = vmatprep.subr.bf16.mxu0 %v6300_v56  ;;  %v216_v56 = vld [vmem:[#allocation2 + $0x3f8] sm:$0xff] }
  0x9e   :  { %2609 = vmatmul.mubr.bf16.gmra.mrb[16].mxu0 %v785_v46  ;;  %v881_v46 = vpack.c.bf16 %v497_v35, %v473_v34  ;;  %5413 = vmatprep.subr.bf16.mxu1 %v6302_v58  ;;  %v95_v34 = vld [vmem:[#allocation2 + $0x30] sm:$0xff] }
  0x9f   :  { %2745 = vmatmul.mubr.bf16.gmra.mrb[16].mxu1 %v787_v47  ;;  %2616 = vmatprep.mubr.bf16.mxu0 %v810_v48  ;;  %v883_v47 = vpack.c.bf16 %v499_v37, %v475_v36  ;;  %v906_v48 = vpack.c.bf16 %v546_v39, %v522_v38  ;;  %v119_v35 = vld [vmem:[#allocation2 + $0xf0] sm:$0xff]  ;;  %v142_v36 = vld [vmem:[#allocation2 + $0x1a8] sm:$0xff]  ;;  %v144_v38 = vld [vmem:[#allocation2 + $0x1b8] sm:$0xff] }
  0xa0   :  { %2752 = vmatprep.mubr.bf16.mxu1 %v812_v49  ;;  %v908_v49 = vpack.c.bf16 %v548_v42, %v524_v41  ;;  %v166_v37 = vld [vmem:[#allocation2 + $0x268] sm:$0xff]  ;;  %v695_v41 = vpack.c.bf16 %v119_v35, %v95_v34  ;;  %v6301_v42 = vld [vmem:[%s7897_s1 + $0x200] sm:$0xff]   ;;  %v720_v45 = vpack.c.bf16 %v168_v40, %v144_v38  ;;  %v6308_v58 = vld [vmem:[%s7897_s1 + $0x250] sm:$0xff]  }
  0xa1   :  { %v718_v44 = vpack.c.bf16 %v166_v37, %v142_v36  ;;  %v6324_v34 = vld [vmem:[%s7897_s1 + $0x270] sm:$0xff]  }
  0xa2   :  { %v6326_v36 = vld [vmem:[%s7897_s1 + $0x2f0] sm:$0xff]  }
  0xa3   :  { %v6325_v40 = vld [vmem:[%s7897_s1 + $0x230] sm:$0xff]  }
  0xa6   :  { %2617 = vmatmul.mubr.bf16.gmra.mrb[20].mxu0 %v809_v62  ;;  %v930_v62 = vpack.c.bf16 %v594_v55, %v570_v54  ;;  %v6306_v54 = vld [vmem:[%s7897_s1 + $0x2c8] sm:$0xff]   ;;  %v192_v55 = vld [vmem:[#allocation2 + $0x338] sm:$0xff] }
  0xa7   :  { %2753 = vmatmul.mubr.bf16.gmra.mrb[20].mxu1 %v811_v63  ;;  %2624 = vmatprep.mubr.bf16.mxu0 %v834_v0  ;;  %v932_v63 = vpack.c.bf16 %v596_v59, %v572_v57  ;;  %v569_v0 = vld [vmem:[#allocation2 + $0xf00] sm:$0xff]  ;;  %v6307_v57 = vld [vmem:[%s7897_s1 + $0x288] sm:$0xff]   ;;  %v6310_v59 = vld [vmem:[%s7897_s1 + $0x2d0] sm:$0xff]  }
  0xa8   :  { %2760 = vmatprep.mubr.bf16.mxu1 %v836_v1  ;;  %v593_v1 = vld [vmem:[#allocation2 + $0xfc0] sm:$0xff] }
  0xa9   :  { %v929_v8 = vpack.c.bf16 %v593_v1, %v569_v0  ;;  %v6309_v0 = vld [vmem:[%s7897_s1 + $0x210] sm:$0xff]   ;;  %v189_v1 = vld [vmem:[#allocation2 + $0x320] sm:$0xff] }
  0xae   :  { %2625 = vmatmul.mubr.bf16.gmra.mrb[24].mxu0 %v833_v14  ;;  %v619_v14 = vld [vmem:[#allocation2 + $0x1090] sm:$0xff] }
  0xaf   :  { %2761 = vmatmul.mubr.bf16.gmra.mrb[24].mxu1 %v835_v15  ;;  %2632 = vmatprep.mubr.bf16.mxu0 %v858_v16  ;;  %v643_v15 = vld [vmem:[#allocation2 + $0x1150] sm:$0xff]  ;;  %v666_v16 = vld [vmem:[#allocation2 + $0x1208] sm:$0xff] }
  0xb0   :  { %2768 = vmatprep.mubr.bf16.mxu1 %v860_v17  ;;  %v668_v17 = vld [vmem:[#allocation2 + $0x1218] sm:$0xff]  ;;  %v955_v19 = vpack.c.bf16 %v643_v15, %v619_v14  ;;  %v978_v20 = vpack.c.bf16 %v666_v16, %v666_v16  ;;  %v6316_v14 = vld [vmem:[%s7897_s1 + $0x260] sm:$0xff]   ;;  %v741_v15 = vpack.c.bf16 %v213_v2, %v189_v1  ;;  %v406_v1 = vld [vmem:[#allocation2 + $0x9e8] sm:$0xff] }
  0xb1   :  { %v980_v21 = vpack.c.bf16 %v668_v17, %v668_v17  ;;  %v6318_v16 = vld [vmem:[%s7897_s1 + $0x2e0] sm:$0xff]   ;;  %v743_v17 = vpack.c.bf16 %v215_v6, %v191_v5  ;;  %v384_v2 = vld [vmem:[#allocation2 + $0x938] sm:$0xff] }
  0xb6   :  { %2633 = vmatmul.mubr.bf16.gmra.mrb[28].mxu0 %v857_v28  ;;  %v977_v28 = vpack.c.bf16 %v665_v22, %v665_v22  ;;  %v261_v22 = vld [vmem:[#allocation2 + $0x560] sm:$0xff] }
  0xb7   :  { %2769 = vmatmul.mubr.bf16.gmra.mrb[28].mxu1 %v859_v30  ;;  %2640 = vmatprep.mubr.bf16.mxu0 %v882_v31  ;;  %v694_v30 = vpack.c.bf16 %v118_v25, %v94_v24  ;;  %v696_v31 = vpack.c.bf16 %v120_v27, %v96_v26  ;;  %v6320_v24 = vld [vmem:[%s7897_s1 + $0x268] sm:$0xff]   ;;  %v239_v25 = vld [vmem:[#allocation2 + $0x4b0] sm:$0xff] }
  0xb8   :  { %2776 = vmatprep.mubr.bf16.mxu1 %v884_v33  ;;  %v117_v33 = vld [vmem:[#allocation2 + $0xe0] sm:$0xff]  ;;  %v263_v26 = vld [vmem:[#allocation2 + $0x570] sm:$0xff]  ;;  %v286_v27 = vld [vmem:[#allocation2 + $0x628] sm:$0xff] }
  0xb9   :  { %v693_v39 = vpack.c.bf16 %v117_v33, %v93_v32  ;;  %v6321_v32 = vld [vmem:[%s7897_s1 + $0x228] sm:$0xff]   ;;  %v767_v37 = vpack.c.bf16 %v263_v26, %v239_v25  ;;  %v480_v26 = vld [vmem:[#allocation2 + $0xc38] sm:$0xff] }
  0xba   :  { %v6323_v33 = vld [vmem:[%s7897_s1 + $0x2a8] sm:$0xff]  }
  0xbb   :  { %v502_v25 = vld [vmem:[#allocation2 + $0xce8] sm:$0xff] }
  0xbe   :  { %2641 = vmatmul.mubr.bf16.gmra.mrb[32].mxu0 %v881_v46  ;;  %v141_v46 = vld [vmem:[#allocation2 + $0x1a0] sm:$0xff] }
  0xbf   :  { %2777 = vmatmul.mubr.bf16.gmra.mrb[32].mxu1 %v883_v47  ;;  %2648 = vmatprep.mubr.bf16.mxu0 %v906_v48  ;;  %v165_v47 = vld [vmem:[#allocation2 + $0x260] sm:$0xff]  ;;  %v6304_v48 = vld [vmem:[%s7897_s1 + $0x248] sm:$0xff]  }
  0xc0   :  { %2784 = vmatprep.mubr.bf16.mxu1 %v908_v49  ;;  %v6305_v49 = vld [vmem:[%s7897_s1 + $0x208] sm:$0xff]  }
  0xc6   :  { %2649 = vmatmul.mubr.bf16.gmra.mrb[36].mxu0 %v905_v60  ;;  %v717_v60 = vpack.c.bf16 %v165_v47, %v141_v46  ;;  %v311_v46 = vld [vmem:[#allocation2 + $0x6f0] sm:$0xff]  ;;  %v334_v47 = vld [vmem:[#allocation2 + $0x7a8] sm:$0xff] }
  0xc7   :  { %2785 = vmatmul.mubr.bf16.gmra.mrb[36].mxu1 %v907_v61  ;;  %2656 = vmatprep.mubr.bf16.mxu0 %v930_v62  ;;  %v719_v61 = vpack.c.bf16 %v167_v51, %v143_v50  ;;  %v742_v62 = vpack.c.bf16 %v214_v53, %v190_v52  ;;  %v336_v50 = vld [vmem:[#allocation2 + $0x7b8] sm:$0xff] }
  0xc8   :  { %2792 = vmatprep.mubr.bf16.mxu1 %v932_v63  ;;  %v744_v63 = vpack.c.bf16 %v216_v56, %v192_v55  ;;  %v360_v51 = vld [vmem:[#allocation2 + $0x878] sm:$0xff]  ;;  %v6334_v56 = vld [vmem:[%s7897_s1 + $0x3c0] sm:$0xff]  }
  0xc9   :  { %v6329_v52 = vld [vmem:[%s7897_s1 + $0x238] sm:$0xff]  }
  0xca   :  { %v6331_v53 = vld [vmem:[%s7897_s1 + $0x2b8] sm:$0xff]  }
  0xce   :  { %2657 = vmatmul.mubr.bf16.gmra.mrb[40].mxu0 %v929_v8  ;;  %v238_v8 = vld [vmem:[#allocation2 + $0x4a8] sm:$0xff] }
  0xcf   :  { %2793 = vmatmul.mubr.bf16.gmra.mrb[40].mxu1 %v931_v9  ;;  %2664 = vmatprep.mubr.bf16.mxu0 %v954_v10  ;;  %v262_v9 = vld [vmem:[#allocation2 + $0x568] sm:$0xff]  ;;  %v240_v10 = vld [vmem:[#allocation2 + $0x4b8] sm:$0xff] }
  0xd0   :  { %2800 = vmatprep.mubr.bf16.mxu1 %v956_v11  ;;  %v6313_v11 = vld [vmem:[%s7897_s1 + $0x218] sm:$0xff]  }
  0xd6   :  { %2665 = vmatmul.mubr.bf16.gmra.mrb[44].mxu0 %v953_v18  ;;  %v766_v18 = vpack.c.bf16 %v262_v9, %v238_v8  ;;  %v381_v8 = vld [vmem:[#allocation2 + $0x920] sm:$0xff] }
  0xd7   :  { %2801 = vmatmul.mubr.bf16.gmra.mrb[44].mxu1 %v955_v19  ;;  %2672 = vmatprep.mubr.bf16.mxu0 %v978_v20  ;;  %v768_v19 = vpack.c.bf16 %v264_v12, %v240_v10  ;;  %v6317_v20 = vld [vmem:[%s7897_s1 + $0x220] sm:$0xff]   ;;  %v383_v10 = vld [vmem:[#allocation2 + $0x930] sm:$0xff]  ;;  %v430_v12 = vld [vmem:[#allocation2 + $0xaa8] sm:$0xff] }
  0xd8   :  { %2808 = vmatprep.mubr.bf16.mxu1 %v980_v21  ;;  %v237_v21 = vld [vmem:[#allocation2 + $0x4a0] sm:$0xff] }
  0xd9   :  { %v765_v35 = vpack.c.bf16 %v261_v22, %v237_v21  ;;  %v405_v9 = vld [vmem:[#allocation2 + $0x9e0] sm:$0xff]  ;;  %v431_v22 = vld [vmem:[#allocation2 + $0xab0] sm:$0xff] }
  0xda   :  { %v453_v21 = vld [vmem:[#allocation2 + $0xb60] sm:$0xff] }
  0xde   :  { %2673 = vmatmul.mubr.bf16.gmra.mrb[48].mxu0 %v977_v28  ;;  %v310_v28 = vld [vmem:[#allocation2 + $0x6e8] sm:$0xff] }
  0xdf   :  { %2809 = vmatmul.mubr.bf16.gmra.mrb[48].mxu1 %v979_v29  ;;  %2848 = vmatprep.mubr.bf16.mxu0 %v694_v30  ;;  %v6322_v29 = vld [vmem:[%s7897_s1 + $0x2e8] sm:$0xff]   ;;  %v288_v30 = vld [vmem:[#allocation2 + $0x638] sm:$0xff]  ;;  %v790_v38 = vpack.c.bf16 %v310_v28, %v286_v27 }
  0xe0   :  { %2984 = vmatprep.mubr.bf16.mxu1 %v696_v31  ;;  %v312_v31 = vld [vmem:[#allocation2 + $0x6f8] sm:$0xff] }
  0xe1   :  { %v504_v27 = vld [vmem:[#allocation2 + $0xcf8] sm:$0xff] }
  0xe6   :  { %2849 = vmatmul.mubr.bf16.vlgmr.msra.gmra.mrb[52].mxu0 %v693_v39  ;;  %v792_v39 = vpack.c.bf16 %v312_v31, %v288_v30  ;;  %v888_v31 = vpack.c.bf16 %v504_v27, %v480_v26  ;;  %v99_v26 = vld [vmem:[#allocation2 + $0x50] sm:$0xff] }
  0xe7   :  { %2985 = vmatmul.mubr.bf16.vlgmr.msra.gmra.mrb[52].mxu1 %v695_v41  ;;  %5320 = vmatpush3.bf16.msra.mxu0 %v6301_v42  ;;  %v285_v41 = vld [vmem:[#allocation2 + $0x620] sm:$0xff]  ;;  %v123_v27 = vld [vmem:[#allocation2 + $0x110] sm:$0xff] }
  0xe8   :  { %5414 = vmatpush3.bf16.msra.mxu1 %v6303_v43  ;;  %2856 = vmatprep.mubr.bf16.mxu0 %v718_v44  ;;  %v309_v42 = vld [vmem:[#allocation2 + $0x6e0] sm:$0xff]  ;;  %v6327_v43 = vld [vmem:[%s7897_s1 + $0x2b0] sm:$0xff]   ;;  %v6328_v44 = vld [vmem:[%s7897_s1 + $0x278] sm:$0xff]  }
  0xe9   :  { %2992 = vmatprep.mubr.bf16.mxu1 %v720_v45  ;;  %5321 = vmatprep.subr.bf16.mxu0 %v6304_v48  ;;  %v287_v45 = vld [vmem:[#allocation2 + $0x630] sm:$0xff]  ;;  %v358_v48 = vld [vmem:[#allocation2 + $0x868] sm:$0xff]  ;;  %v789_v55 = vpack.c.bf16 %v309_v42, %v285_v41 }
  0xea   :  { %5415 = vmatprep.subr.bf16.mxu1 %v6306_v54  ;;  %v6332_v54 = vld [vmem:[%s7897_s1 + $0x340] sm:$0xff]  }
  0xeb   :  { %5322 = vmatpush3.bf16.msra.mxu0 %v6305_v49  ;;  %v6330_v49 = vld [vmem:[%s7897_s1 + $0x2f8] sm:$0xff]  }
  0xec   :  { %5416 = vmatpush3.bf16.msra.mxu1 %v6307_v57  ;;  %5323 = vmatprep.subr.bf16.mxu0 %v6308_v58  ;;  %v791_v57 = vpack.c.bf16 %v311_v46, %v287_v45  ;;  %v814_v58 = vpack.c.bf16 %v358_v48, %v334_v47  ;;  %v549_v45 = vld [vmem:[#allocation2 + $0xe60] sm:$0xff]  ;;  %v527_v46 = vld [vmem:[#allocation2 + $0xdb0] sm:$0xff]  ;;  %v574_v48 = vld [vmem:[#allocation2 + $0xf28] sm:$0xff] }
  0xed   :  { %5417 = vmatprep.subr.bf16.mxu1 %v6310_v59  ;;  %v816_v59 = vpack.c.bf16 %v360_v51, %v336_v50  ;;  %v551_v47 = vld [vmem:[#allocation2 + $0xe70] sm:$0xff]  ;;  %v576_v50 = vld [vmem:[#allocation2 + $0xf38] sm:$0xff] }
  0xee   :  { %2857 = vmatmul.mubr.bf16.gmra.mrb[56].mxu0 %v717_v60  ;;  %v333_v60 = vld [vmem:[#allocation2 + $0x7a0] sm:$0xff]  ;;  %v600_v51 = vld [vmem:[#allocation2 + $0xff8] sm:$0xff] }
  0xef   :  { %2993 = vmatmul.mubr.bf16.gmra.mrb[56].mxu1 %v719_v61  ;;  %2864 = vmatprep.mubr.bf16.mxu0 %v742_v62  ;;  %v357_v61 = vld [vmem:[#allocation2 + $0x860] sm:$0xff]  ;;  %v335_v62 = vld [vmem:[#allocation2 + $0x7b0] sm:$0xff] }
  0xf0   :  { %3000 = vmatprep.mubr.bf16.mxu1 %v744_v63  ;;  %5324 = vmatpush3.bf16.msra.mxu0 %v6309_v0  ;;  %v359_v63 = vld [vmem:[#allocation2 + $0x870] sm:$0xff]  ;;  %v382_v0 = vld [vmem:[#allocation2 + $0x928] sm:$0xff] }
  0xf1   :  { %5418 = vmatpush3.bf16.msra.mxu1 %v6311_v3  ;;  %5325 = vmatprep.subr.bf16.mxu0 %v6312_v4  ;;  %v408_v3 = vld [vmem:[#allocation2 + $0x9f8] sm:$0xff]  ;;  %v813_v4 = vpack.c.bf16 %v357_v61, %v333_v60  ;;  %v815_v5 = vpack.c.bf16 %v359_v63, %v335_v62  ;;  %v838_v6 = vpack.c.bf16 %v406_v1, %v382_v0  ;;  %v622_v60 = vld [vmem:[#allocation2 + $0x10a8] sm:$0xff] }
  0xf2   :  { %5419 = vmatprep.subr.bf16.mxu1 %v6314_v7  ;;  %v840_v7 = vpack.c.bf16 %v408_v3, %v384_v2  ;;  %v646_v61 = vld [vmem:[#allocation2 + $0x1168] sm:$0xff]  ;;  %v624_v62 = vld [vmem:[#allocation2 + $0x10b8] sm:$0xff] }
  0xf3   :  { %v648_v63 = vld [vmem:[#allocation2 + $0x1178] sm:$0xff]  ;;  %v958_v2 = vpack.c.bf16 %v646_v61, %v622_v60 }
  0xf4   :  { %5326 = vmatpush3.bf16.msra.mxu0 %v6313_v11  ;;  %v407_v11 = vld [vmem:[#allocation2 + $0x9f0] sm:$0xff]  ;;  %v960_v3 = vpack.c.bf16 %v648_v63, %v624_v62 }
  0xf5   :  { %5420 = vmatpush3.bf16.msra.mxu1 %v6315_v13  ;;  %5327 = vmatprep.subr.bf16.mxu0 %v6316_v14  ;;  %v454_v13 = vld [vmem:[#allocation2 + $0xb68] sm:$0xff]  ;;  %v432_v14 = vld [vmem:[#allocation2 + $0xab8] sm:$0xff]  ;;  %v6341_v62 = vld [vmem:[%s7897_s1 + $0x310] sm:$0xff]  }
  0xf6   :  { %2865 = vmatmul.mubr.bf16.gmra.mrb[60].mxu0 %v741_v15  ;;  %5421 = vmatprep.subr.bf16.mxu1 %v6318_v16  ;;  %v456_v15 = vld [vmem:[#allocation2 + $0xb78] sm:$0xff]  ;;  %v837_v16 = vpack.c.bf16 %v405_v9, %v381_v8  ;;  %v670_v8 = vld [vmem:[#allocation2 + $0x1228] sm:$0xff] }
  0xf7   :  { %3001 = vmatmul.mubr.bf16.gmra.mrb[60].mxu1 %v743_v17  ;;  %2872 = vmatprep.mubr.bf16.mxu0 %v766_v18  ;;  %v839_v17 = vpack.c.bf16 %v407_v11, %v383_v10  ;;  %v862_v18 = vpack.c.bf16 %v454_v13, %v430_v12  ;;  %v672_v9 = vld [vmem:[#allocation2 + $0x1238] sm:$0xff]  ;;  %v982_v12 = vpack.c.bf16 %v670_v8, %v670_v8  ;;  %v6343_v8 = vld [vmem:[%s7897_s1 + $0x390] sm:$0xff]  }
  0xf8   :  { %3008 = vmatprep.mubr.bf16.mxu1 %v768_v19  ;;  %5328 = vmatpush3.bf16.msra.mxu0 %v6317_v20  ;;  %v864_v19 = vpack.c.bf16 %v456_v15, %v432_v14  ;;  %v429_v20 = vld [vmem:[#allocation2 + $0xaa0] sm:$0xff]  ;;  %v984_v13 = vpack.c.bf16 %v672_v9, %v672_v9  ;;  %v671_v15 = vld [vmem:[#allocation2 + $0x1230] sm:$0xff]  ;;  %v6344_v9 = vld [vmem:[%s7897_s1 + $0x358] sm:$0xff]  }
  0xf9   :  { %5422 = vmatpush3.bf16.msra.mxu1 %v6319_v23  ;;  %5329 = vmatprep.subr.bf16.mxu0 %v6320_v24  ;;  %v455_v23 = vld [vmem:[#allocation2 + $0xb70] sm:$0xff]  ;;  %v478_v24 = vld [vmem:[#allocation2 + $0xc28] sm:$0xff]  ;;  %v861_v28 = vpack.c.bf16 %v453_v21, %v429_v20  ;;  %v669_v14 = vld [vmem:[#allocation2 + $0x1220] sm:$0xff]  ;;  %v983_v21 = vpack.c.bf16 %v671_v15, %v671_v15 }
  0xfa   :  { %5423 = vmatprep.subr.bf16.mxu1 %v6322_v29  ;;  %v863_v29 = vpack.c.bf16 %v455_v23, %v431_v22  ;;  %v886_v30 = vpack.c.bf16 %v502_v25, %v478_v24  ;;  %v981_v20 = vpack.c.bf16 %v669_v14, %v669_v14  ;;  %v97_v24 = vld [vmem:[#allocation2 + $0x40] sm:$0xff]  ;;  %v266_v14 = vld [vmem:[#allocation2 + $0x588] sm:$0xff]  ;;  %v6346_v15 = vld [vmem:[%s7897_s1 + $0x3d8] sm:$0xff]  }
  0xfb   :  { %v121_v25 = vld [vmem:[#allocation2 + $0x100] sm:$0xff] }
  0xfc   :  { %5330 = vmatpush3.bf16.msra.mxu0 %v6321_v32  ;;  %v477_v32 = vld [vmem:[#allocation2 + $0xc20] sm:$0xff] }
  0xfd   :  { %5424 = vmatpush3.bf16.msra.mxu1 %v6323_v33  ;;  %5331 = vmatprep.subr.bf16.mxu0 %v6324_v34  ;;  %v501_v33 = vld [vmem:[#allocation2 + $0xce0] sm:$0xff]  ;;  %v479_v34 = vld [vmem:[#allocation2 + $0xc30] sm:$0xff] }
  0xfe   :  { %2873 = vmatmul.mubr.bf16.gmra.mrb[64].mxu0 %v765_v35  ;;  %5425 = vmatprep.subr.bf16.mxu1 %v6326_v36  ;;  %v503_v35 = vld [vmem:[#allocation2 + $0xcf0] sm:$0xff]  ;;  %v526_v36 = vld [vmem:[#allocation2 + $0xda8] sm:$0xff] }
  0xff   :  { %3009 = vmatmul.mubr.bf16.gmra.mrb[64].mxu1 %v767_v37  ;;  %2880 = vmatprep.mubr.bf16.mxu0 %v790_v38  ;;  %v550_v37 = vld [vmem:[#allocation2 + $0xe68] sm:$0xff]  ;;  %v528_v38 = vld [vmem:[#allocation2 + $0xdb8] sm:$0xff]  ;;  %v887_v41 = vpack.c.bf16 %v503_v35, %v479_v34  ;;  %v6333_v34 = vld [vmem:[%s7897_s1 + $0x300] sm:$0xff]  }
 0x100   :  { %3016 = vmatprep.mubr.bf16.mxu1 %v792_v39  ;;  %5332 = vmatpush3.bf16.msra.mxu0 %v6325_v40  ;;  %v552_v39 = vld [vmem:[#allocation2 + $0xe78] sm:$0xff]  ;;  %v885_v40 = vpack.c.bf16 %v501_v33, %v477_v32  ;;  %v910_v42 = vpack.c.bf16 %v550_v37, %v526_v36  ;;  %v699_v33 = vpack.c.bf16 %v123_v27, %v99_v26  ;;  %v6335_v35 = vld [vmem:[%s7897_s1 + $0x380] sm:$0xff]  }
 0x101   :  { %5426 = vmatpush3.bf16.msra.mxu1 %v6327_v43  ;;  %5333 = vmatprep.subr.bf16.mxu0 %v6328_v44  ;;  %v912_v43 = vpack.c.bf16 %v552_v39, %v528_v38  ;;  %v525_v44 = vld [vmem:[#allocation2 + $0xda0] sm:$0xff]  ;;  %v172_v32 = vld [vmem:[#allocation2 + $0x298] sm:$0xff] }
 0x102   :  { %5427 = vmatprep.subr.bf16.mxu1 %v6330_v49  ;;  %v598_v49 = vld [vmem:[#allocation2 + $0xfe8] sm:$0xff]  ;;  %v145_v38 = vld [vmem:[#allocation2 + $0x1c0] sm:$0xff] }
 0x103   :  { %v169_v39 = vld [vmem:[#allocation2 + $0x280] sm:$0xff] }
 0x104   :  { %5334 = vmatpush3.bf16.msra.mxu0 %v6329_v52  ;;  %v909_v52 = vpack.c.bf16 %v549_v45, %v525_v44  ;;  %v6338_v44 = vld [vmem:[%s7897_s1 + $0x3c8] sm:$0xff]  }
 0x105   :  { %5428 = vmatpush3.bf16.msra.mxu1 %v6331_v53  ;;  %5507 = vmatprep.subr.bf16.mxu0 %v6332_v54  ;;  %v911_v53 = vpack.c.bf16 %v551_v47, %v527_v46  ;;  %v934_v54 = vpack.c.bf16 %v598_v49, %v574_v48  ;;  %v194_v45 = vld [vmem:[#allocation2 + $0x348] sm:$0xff]  ;;  %v196_v47 = vld [vmem:[#allocation2 + $0x358] sm:$0xff]  ;;  %v6973_v48 = vld [vmem:[#allocation4] ss:$0 sm:$0xff] }
 0x106   :  { %2881 = vmatmul.mubr.bf16.gmra.mrb[68].mxu0 %v789_v55  ;;  %5601 = vmatprep.subr.bf16.mxu1 %v6334_v56  ;;  %v936_v55 = vpack.c.bf16 %v600_v51, %v576_v50  ;;  %v573_v56 = vld [vmem:[#allocation2 + $0xf20] sm:$0xff]  ;;  %v218_v46 = vld [vmem:[#allocation2 + $0x408] sm:$0xff]  ;;  %v220_v49 = vld [vmem:[#allocation2 + $0x418] sm:$0xff] }
 0x107   :  { %3017 = vmatmul.mubr.bf16.gmra.mrb[68].mxu1 %v791_v57  ;;  %2888 = vmatprep.mubr.bf16.mxu0 %v814_v58  ;;  %v597_v57 = vld [vmem:[#allocation2 + $0xfe0] sm:$0xff]  ;;  %v575_v58 = vld [vmem:[#allocation2 + $0xf30] sm:$0xff]  ;;  %v6339_v50 = vld [vmem:[%s7897_s1 + $0x388] sm:$0xff]   ;;  %v746_v61 = vpack.c.bf16 %v218_v46, %v194_v45 }
 0x108   :  { %3024 = vmatprep.mubr.bf16.mxu1 %v816_v59  ;;  %v599_v59 = vld [vmem:[#allocation2 + $0xff0] sm:$0xff]  ;;  %v933_v0 = vpack.c.bf16 %v597_v57, %v573_v56  ;;  %v721_v56 = vpack.c.bf16 %v169_v39, %v145_v38  ;;  %v6349_v38 = vld [vmem:[%s7897_s1 + $0x320] sm:$0xff]   ;;  %v6352_v45 = vld [vmem:[%s7897_s1 + $0x368] sm:$0xff]  }
 0x109   :  { %v935_v1 = vpack.c.bf16 %v599_v59, %v575_v58  ;;  %v6340_v51 = vld [vmem:[%s7897_s1 + $0x350] sm:$0xff]   ;;  %v6351_v39 = vld [vmem:[%s7897_s1 + $0x3a0] sm:$0xff]   ;;  %v6354_v46 = vld [vmem:[%s7897_s1 + $0x3e8] sm:$0xff]  }
 0x10e   :  { %2889 = vmatmul.mubr.bf16.gmra.mrb[72].mxu0 %v813_v4  ;;  %v621_v4 = vld [vmem:[#allocation2 + $0x10a0] sm:$0xff] }
 0x10f   :  { %3025 = vmatmul.mubr.bf16.gmra.mrb[72].mxu1 %v815_v5  ;;  %2896 = vmatprep.mubr.bf16.mxu0 %v838_v6  ;;  %v645_v5 = vld [vmem:[#allocation2 + $0x1160] sm:$0xff]  ;;  %v623_v6 = vld [vmem:[#allocation2 + $0x10b0] sm:$0xff] }
 0x110   :  { %3032 = vmatprep.mubr.bf16.mxu1 %v840_v7  ;;  %v647_v7 = vld [vmem:[#allocation2 + $0x1170] sm:$0xff]  ;;  %v957_v10 = vpack.c.bf16 %v645_v5, %v621_v4 }
 0x111   :  { %v959_v11 = vpack.c.bf16 %v647_v7, %v623_v6  ;;  %v193_v6 = vld [vmem:[#allocation2 + $0x340] sm:$0xff] }
 0x112   :  { %v217_v7 = vld [vmem:[#allocation2 + $0x400] sm:$0xff] }
 0x116   :  { %2897 = vmatmul.mubr.bf16.gmra.mrb[76].mxu0 %v837_v16  ;;  %v98_v16 = vld [vmem:[#allocation2 + $0x48] sm:$0xff] }
 0x117   :  { %3033 = vmatmul.mubr.bf16.gmra.mrb[76].mxu1 %v839_v17  ;;  %2904 = vmatprep.mubr.bf16.mxu0 %v862_v18  ;;  %v122_v17 = vld [vmem:[#allocation2 + $0x108] sm:$0xff]  ;;  %v100_v18 = vld [vmem:[#allocation2 + $0x58] sm:$0xff] }
 0x118   :  { %3040 = vmatprep.mubr.bf16.mxu1 %v864_v19  ;;  %v124_v19 = vld [vmem:[#allocation2 + $0x118] sm:$0xff]  ;;  %v698_v22 = vpack.c.bf16 %v122_v17, %v98_v16 }
 0x119   :  { %v700_v23 = vpack.c.bf16 %v124_v19, %v100_v18  ;;  %v244_v18 = vld [vmem:[#allocation2 + $0x4d8] sm:$0xff] }
 0x11a   :  { %v268_v19 = vld [vmem:[#allocation2 + $0x598] sm:$0xff] }
 0x11e   :  { %2905 = vmatmul.mubr.bf16.gmra.mrb[80].mxu0 %v861_v28  ;;  %v146_v28 = vld [vmem:[#allocation2 + $0x1c8] sm:$0xff] }
 0x11f   :  { %3041 = vmatmul.mubr.bf16.gmra.mrb[80].mxu1 %v863_v29  ;;  %2912 = vmatprep.mubr.bf16.mxu0 %v886_v30  ;;  %v170_v29 = vld [vmem:[#allocation2 + $0x288] sm:$0xff]  ;;  %v697_v30 = vpack.c.bf16 %v121_v25, %v97_v24  ;;  %v6350_v25 = vld [vmem:[%s7897_s1 + $0x3e0] sm:$0xff]  }
 0x120   :  { %3048 = vmatprep.mubr.bf16.mxu1 %v888_v31  ;;  %v148_v31 = vld [vmem:[#allocation2 + $0x1d8] sm:$0xff]  ;;  %v722_v36 = vpack.c.bf16 %v170_v29, %v146_v28  ;;  %v745_v28 = vpack.c.bf16 %v217_v7, %v193_v6 }
 0x121   :  { %v724_v37 = vpack.c.bf16 %v172_v32, %v148_v31 }
 0x126   :  { %2913 = vmatmul.mubr.bf16.gmra.mrb[84].mxu0 %v885_v40  ;;  %v6336_v40 = vld [vmem:[%s7897_s1 + $0x348] sm:$0xff]  }
 0x127   :  { %3049 = vmatmul.mubr.bf16.gmra.mrb[84].mxu1 %v887_v41  ;;  %2920 = vmatprep.mubr.bf16.mxu0 %v910_v42  ;;  %v147_v41 = vld [vmem:[#allocation2 + $0x1d0] sm:$0xff] }
 0x128   :  { %3056 = vmatprep.mubr.bf16.mxu1 %v912_v43  ;;  %v171_v42 = vld [vmem:[#allocation2 + $0x290] sm:$0xff]  ;;  %v6337_v43 = vld [vmem:[%s7897_s1 + $0x308] sm:$0xff]  }
 0x129   :  { %v723_v60 = vpack.c.bf16 %v171_v42, %v147_v41 }
 0x12e   :  { %2921 = vmatmul.mubr.bf16.gmra.mrb[88].mxu0 %v909_v52 }
 0x12f   :  { %3057 = vmatmul.mubr.bf16.gmra.mrb[88].mxu1 %v911_v53  ;;  %2928 = vmatprep.mubr.bf16.mxu0 %v934_v54  ;;  %v6342_v53 = vld [vmem:[%s7897_s1 + $0x3d0] sm:$0xff]  }
 0x130   :  { %3064 = vmatprep.mubr.bf16.mxu1 %v936_v55 }
 0x136   :  { %2929 = vmatmul.mubr.bf16.gmra.mrb[92].mxu0 %v933_v0 }
 0x137   :  { %3065 = vmatmul.mubr.bf16.gmra.mrb[92].mxu1 %v935_v1  ;;  %2936 = vmatprep.mubr.bf16.mxu0 %v958_v2  ;;  %v748_v2 = vpack.c.bf16 %v220_v49, %v196_v47  ;;  %v243_v49 = vld [vmem:[#allocation2 + $0x4d0] sm:$0xff] }
 0x138   :  { %3072 = vmatprep.mubr.bf16.mxu1 %v960_v3 }
 0x13e   :  { %2937 = vmatmul.mubr.bf16.gmra.mrb[96].mxu0 %v957_v10 }
 0x13f   :  { %3073 = vmatmul.mubr.bf16.gmra.mrb[96].mxu1 %v959_v11  ;;  %2944 = vmatprep.mubr.bf16.mxu0 %v982_v12  ;;  %v195_v11 = vld [vmem:[#allocation2 + $0x350] sm:$0xff] }
 0x140   :  { %3080 = vmatprep.mubr.bf16.mxu1 %v984_v13  ;;  %v219_v12 = vld [vmem:[#allocation2 + $0x410] sm:$0xff]  ;;  %v242_v13 = vld [vmem:[#allocation2 + $0x4c8] sm:$0xff] }
 0x141   :  { %v747_v32 = vpack.c.bf16 %v219_v12, %v195_v11  ;;  %v6357_v11 = vld [vmem:[%s7897_s1 + $0x330] sm:$0xff]  }
 0x142   :  { %v6359_v12 = vld [vmem:[%s7897_s1 + $0x3b0] sm:$0xff]  }
 0x146   :  { %2945 = vmatmul.mubr.bf16.gmra.mrb[100].mxu0 %v981_v20  ;;  %v6345_v20 = vld [vmem:[%s7897_s1 + $0x318] sm:$0xff]  }
 0x147   :  { %3081 = vmatmul.mubr.bf16.gmra.mrb[100].mxu1 %v983_v21  ;;  %3120 = vmatprep.mubr.bf16.mxu0 %v698_v22  ;;  %v6347_v21 = vld [vmem:[%s7897_s1 + $0x398] sm:$0xff]   ;;  %v6348_v22 = vld [vmem:[%s7897_s1 + $0x360] sm:$0xff]  }
 0x148   :  { %3256 = vmatprep.mubr.bf16.mxu1 %v700_v23 }
 0x14e   :  { %3121 = vmatmul.mubr.bf16.vlgmr.msra.gmra.mrb[104].mxu0 %v697_v30 }
 0x14f   :  { %3257 = vmatmul.mubr.bf16.vlgmr.msra.gmra.mrb[104].mxu1 %v699_v33  ;;  %5508 = vmatpush3.bf16.msra.mxu0 %v6333_v34  ;;  %v770_v33 = vpack.c.bf16 %v266_v14, %v242_v13 }
 0x150   :  { %5602 = vmatpush3.bf16.msra.mxu1 %v6335_v35  ;;  %3128 = vmatprep.mubr.bf16.mxu0 %v722_v36 }
 0x151   :  { %v4959_v52 = vpop.f32.mrb[0].mxu0  ;;  %3264 = vmatprep.mubr.bf16.mxu1 %v724_v37  ;;  %5509 = vmatprep.subr.bf16.mxu0 %v6336_v40  ;;  %v772_v37 = vpack.c.bf16 %v268_v19, %v244_v18  ;;  %v313_v18 = vld [vmem:[#allocation2 + $0x700] sm:$0xff]  ;;  %v6360_v19 = vld [vmem:[%s7897_s1 + $0x378] sm:$0xff]  }
 0x152   :  { %v5053_v54 = vpop.f32.mrb[0].mxu1  ;;  %v4960_v55 = vpop.f32.mrb[1].mxu0  ;;  %5603 = vmatprep.subr.bf16.mxu1 %v6338_v44  ;;  %v265_v44 = vld [vmem:[#allocation2 + $0x580] sm:$0xff] }
 0x153   :  { %v4961_v57 = vadd.f32 %v4960_v55, %v4959_v52  ;;  %v5054_v58 = vpop.f32.mrb[1].mxu1  ;;  %v4962_v59 = vpop.f32.mrb[2].mxu0  ;;  %5510 = vmatpush3.bf16.msra.mxu0 %v6337_v43  ;;  %v241_v43 = vld [vmem:[#allocation2 + $0x4c0] sm:$0xff]  ;;  %v314_v52 = vld [vmem:[#allocation2 + $0x708] sm:$0xff]  ;;  %v292_v55 = vld [vmem:[#allocation2 + $0x658] sm:$0xff] }
 0x154   :  { %v5055_v63 = vadd.f32 %v5054_v58, %v5053_v54  ;;  %v5056_v0 = vpop.f32.mrb[2].mxu1  ;;  %v4963_v1 = vpop.f32.mrb[3].mxu0  ;;  %5604 = vmatpush3.bf16.msra.mxu1 %v6339_v50  ;;  %5511 = vmatprep.subr.bf16.mxu0 %v6340_v51  ;;  %v267_v50 = vld [vmem:[#allocation2 + $0x590] sm:$0xff]  ;;  %v290_v51 = vld [vmem:[#allocation2 + $0x648] sm:$0xff] }
 0x155   :  { %v2579_v3 = vadd.f32 %v4961_v57, %v6973_v48  ;;  %v4964_v4 = vadd.f32 %v4963_v1, %v4962_v59  ;;  %v5057_v5 = vpop.f32.mrb[3].mxu1  ;;  %5605 = vmatprep.subr.bf16.mxu1 %v6342_v53  ;;  %v6353_v57 = vld [vmem:[%s7897_s1 + $0x328] sm:$0xff]   ;;  %v6356_v59 = vld [vmem:[%s7897_s1 + $0x370] sm:$0xff]   ;;  %v769_v1 = vpack.c.bf16 %v265_v44, %v241_v43  ;;  %v794_v6 = vpack.c.bf16 %v314_v52, %v290_v51 }
 0x156   :  { %v5058_v10 = vadd.f32 %v5057_v5, %v5056_v0  ;;  %3129 = vmatmul.mubr.bf16.gmra.mrb[108].mxu0 %v721_v56  ;;  %v316_v56 = vld [vmem:[#allocation2 + $0x718] sm:$0xff]  ;;  %v6355_v58 = vld [vmem:[%s7897_s1 + $0x3a8] sm:$0xff]   ;;  %v771_v5 = vpack.c.bf16 %v267_v50, %v243_v49 }
 0x157   :  { %v6997_v16 = vadd.f32 %v5055_v63, %v2579_v3  ;;  %v2582_v17 = vadd.f32 %v4964_v4, %v6973_v48  ;;  %3265 = vmatmul.mubr.bf16.gmra.mrb[108].mxu1 %v723_v60  ;;  %3136 = vmatprep.mubr.bf16.mxu0 %v746_v61 }
 0x158   :  { %3272 = vmatprep.mubr.bf16.mxu1 %v748_v2  ;;  %5512 = vmatpush3.bf16.msra.mxu0 %v6341_v62  ;;  %v6358_v62 = vld [vmem:[%s7897_s1 + $0x3f0] sm:$0xff]  }
 0x159   :  { %v7009_v23 = vadd.f32 %v5058_v10, %v2582_v17  ;;  %v4965_v24 = vpop.f32.mrb[4].mxu0  ;;  %5606 = vmatpush3.bf16.msra.mxu1 %v6343_v8  ;;  %5513 = vmatprep.subr.bf16.mxu0 %v6344_v9  ;;  %v796_v10 = vpack.c.bf16 %v316_v56, %v292_v55  ;;  %v289_v17 = vld [vmem:[#allocation2 + $0x640] sm:$0xff] }
 0x15a   :  { %v5059_v26 = vpop.f32.mrb[4].mxu1  ;;  %v4966_v27 = vpop.f32.mrb[5].mxu0  ;;  %5607 = vmatprep.subr.bf16.mxu1 %v6346_v15  ;;  %v361_v55 = vld [vmem:[#allocation2 + $0x880] sm:$0xff] }
 0x15b   :  { %v4967_v29 = vadd.f32 %v4966_v27, %v4965_v24  ;;  %v5060_v30 = vpop.f32.mrb[5].mxu1  ;;  %v4968_v31 = vpop.f32.mrb[6].mxu0  ;;  %v315_v24 = vld [vmem:[#allocation2 + $0x710] sm:$0xff]  ;;  %v6361_v27 = vld [vmem:[%s7897_s1 + $0x338] sm:$0xff]  }
 0x15c   :  { %v5061_v34 = vadd.f32 %v5060_v30, %v5059_v26  ;;  %v5062_v35 = vpop.f32.mrb[6].mxu1  ;;  %v4969_v36 = vpop.f32.mrb[7].mxu0  ;;  %5514 = vmatpush3.bf16.msra.mxu0 %v6345_v20  ;;  %v6362_v20 = vld [vmem:[%s7897_s1 + $0x3f8] sm:$0xff]   ;;  %v362_v26 = vld [vmem:[#allocation2 + $0x888] sm:$0xff] }
 0x15d   :  { %v2587_v40 = vadd.f32 %v4967_v29, %v6973_v48  ;;  %v4970_v41 = vadd.f32 %v4969_v36, %v4968_v31  ;;  %v5063_v42 = vpop.f32.mrb[7].mxu1  ;;  %5608 = vmatpush3.bf16.msra.mxu1 %v6347_v21  ;;  %5515 = vmatprep.subr.bf16.mxu0 %v6348_v22  ;;  %v291_v22 = vld [vmem:[#allocation2 + $0x650] sm:$0xff]  ;;  %v340_v30 = vld [vmem:[#allocation2 + $0x7d8] sm:$0xff]  ;;  %v6366_v36 = vld [vmem:[%s7897_s1 + $0x4c0] sm:$0xff]  }
 0x15e   :  { %v5064_v47 = vadd.f32 %v5063_v42, %v5062_v35  ;;  %3137 = vmatmul.mubr.bf16.gmra.mrb[112].mxu0 %v745_v28  ;;  %5609 = vmatprep.subr.bf16.mxu1 %v6350_v25  ;;  %v338_v25 = vld [vmem:[#allocation2 + $0x7c8] sm:$0xff]  ;;  %v364_v31 = vld [vmem:[#allocation2 + $0x898] sm:$0xff]  ;;  %v795_v43 = vpack.c.bf16 %v315_v24, %v291_v22  ;;  %v387_v24 = vld [vmem:[#allocation2 + $0x950] sm:$0xff] }
 0x15f   :  { %v7027_v53 = vadd.f32 %v5061_v34, %v2587_v40  ;;  %v2590_v54 = vadd.f32 %v4970_v41, %v6973_v48  ;;  %3273 = vmatmul.mubr.bf16.gmra.mrb[112].mxu1 %v747_v32  ;;  %3144 = vmatprep.mubr.bf16.mxu0 %v770_v33  ;;  %v6363_v32 = vld [vmem:[%s7897_s1 + $0x3b8] sm:$0xff]   ;;  %v6364_v33 = vld [vmem:[%s7897_s1 + $0x440] sm:$0xff]   ;;  %v818_v44 = vpack.c.bf16 %v362_v26, %v338_v25  ;;  %v411_v25 = vld [vmem:[#allocation2 + $0xa10] sm:$0xff] }
 0x160   :  { %3280 = vmatprep.mubr.bf16.mxu1 %v772_v37  ;;  %5516 = vmatpush3.bf16.msra.mxu0 %v6349_v38  ;;  %v820_v49 = vpack.c.bf16 %v364_v31, %v340_v30  ;;  %v434_v26 = vld [vmem:[#allocation2 + $0xac8] sm:$0xff]  ;;  %v436_v31 = vld [vmem:[#allocation2 + $0xad8] sm:$0xff] }
 0x161   :  { %v7039_v60 = vadd.f32 %v5064_v47, %v2590_v54  ;;  %v4971_v61 = vpop.f32.mrb[8].mxu0  ;;  %5610 = vmatpush3.bf16.msra.mxu1 %v6351_v39  ;;  %5517 = vmatprep.subr.bf16.mxu0 %v6352_v45  ;;  %v793_v39 = vpack.c.bf16 %v313_v18, %v289_v17  ;;  %v337_v54 = vld [vmem:[#allocation2 + $0x7c0] sm:$0xff]  ;;  %v458_v30 = vld [vmem:[#allocation2 + $0xb88] sm:$0xff] }
 0x162   :  { %v5065_v63 = vpop.f32.mrb[8].mxu1  ;;  %v4972_v0 = vpop.f32.mrb[9].mxu0  ;;  %5611 = vmatprep.subr.bf16.mxu1 %v6354_v46 }
 0x163   :  { %v4973_v2 = vadd.f32 %v4972_v0, %v4971_v61  ;;  %v5066_v3 = vpop.f32.mrb[9].mxu1  ;;  %v4974_v4 = vpop.f32.mrb[10].mxu0  ;;  %v388_v0 = vld [vmem:[#allocation2 + $0x958] sm:$0xff] }
 0x164   :  { %v5067_v7 = vadd.f32 %v5066_v3, %v5065_v63  ;;  %v5068_v8 = vpop.f32.mrb[10].mxu1  ;;  %v4975_v9 = vpop.f32.mrb[11].mxu0  ;;  %5518 = vmatpush3.bf16.msra.mxu0 %v6353_v57  ;;  %v339_v57 = vld [vmem:[#allocation2 + $0x7d0] sm:$0xff]  ;;  %v410_v63 = vld [vmem:[#allocation2 + $0xa08] sm:$0xff]  ;;  %v412_v3 = vld [vmem:[#allocation2 + $0xa18] sm:$0xff] }
 0x165   :  { %v2595_v13 = vadd.f32 %v4973_v2, %v6973_v48  ;;  %v4976_v14 = vadd.f32 %v4975_v9, %v4974_v4  ;;  %v5069_v15 = vpop.f32.mrb[11].mxu1  ;;  %5612 = vmatpush3.bf16.msra.mxu1 %v6355_v58  ;;  %5519 = vmatprep.subr.bf16.mxu0 %v6356_v59  ;;  %v363_v58 = vld [vmem:[#allocation2 + $0x890] sm:$0xff]  ;;  %v386_v59 = vld [vmem:[#allocation2 + $0x948] sm:$0xff] }
 0x166   :  { %v5070_v21 = vadd.f32 %v5069_v15, %v5068_v8  ;;  %3145 = vmatmul.mubr.bf16.gmra.mrb[116].mxu0 %v769_v1  ;;  %5613 = vmatprep.subr.bf16.mxu1 %v6358_v62  ;;  %v844_v15 = vpack.c.bf16 %v412_v3, %v388_v0  ;;  %v484_v0 = vld [vmem:[#allocation2 + $0xc58] sm:$0xff] }
 0x167   :  { %v7060_v28 = vadd.f32 %v5067_v7, %v2595_v13  ;;  %v2598_v29 = vadd.f32 %v4976_v14, %v6973_v48  ;;  %3281 = vmatmul.mubr.bf16.gmra.mrb[116].mxu1 %v771_v5  ;;  %3152 = vmatprep.mubr.bf16.mxu0 %v794_v6  ;;  %v817_v6 = vpack.c.bf16 %v361_v55, %v337_v54  ;;  %v457_v54 = vld [vmem:[#allocation2 + $0xb80] sm:$0xff] }
 0x168   :  { %3288 = vmatprep.mubr.bf16.mxu1 %v796_v10  ;;  %5520 = vmatpush3.bf16.msra.mxu0 %v6357_v11  ;;  %v819_v10 = vpack.c.bf16 %v363_v58, %v339_v57  ;;  %v842_v11 = vpack.c.bf16 %v410_v63, %v386_v59  ;;  %v459_v57 = vld [vmem:[#allocation2 + $0xb90] sm:$0xff]  ;;  %v482_v58 = vld [vmem:[#allocation2 + $0xc48] sm:$0xff] }
 0x169   :  { %v7069_v34 = vadd.f32 %v5070_v21, %v2598_v29  ;;  %v4977_v35 = vpop.f32.mrb[12].mxu0  ;;  %5614 = vmatpush3.bf16.msra.mxu1 %v6359_v12  ;;  %5521 = vmatprep.subr.bf16.mxu0 %v6360_v19  ;;  %v409_v21 = vld [vmem:[#allocation2 + $0xa00] sm:$0xff]  ;;  %v506_v59 = vld [vmem:[#allocation2 + $0xd08] sm:$0xff] }
 0x16a   :  { %v5071_v37 = vpop.f32.mrb[12].mxu1  ;;  %v4978_v38 = vpop.f32.mrb[13].mxu0  ;;  %5615 = vmatprep.subr.bf16.mxu1 %v6362_v20  ;;  %v385_v20 = vld [vmem:[#allocation2 + $0x940] sm:$0xff] }
 0x16b   :  { %v4979_v40 = vadd.f32 %v4978_v38, %v4977_v35  ;;  %v5072_v41 = vpop.f32.mrb[13].mxu1  ;;  %v4980_v42 = vpop.f32.mrb[14].mxu0  ;;  %v460_v35 = vld [vmem:[#allocation2 + $0xb98] sm:$0xff]  ;;  %v841_v38 = vpack.c.bf16 %v409_v21, %v385_v20  ;;  %v481_v21 = vld [vmem:[#allocation2 + $0xc40] sm:$0xff] }
 0x16c   :  { %v5073_v45 = vadd.f32 %v5072_v41, %v5071_v37  ;;  %v5074_v46 = vpop.f32.mrb[14].mxu1  ;;  %v4981_v47 = vpop.f32.mrb[15].mxu0  ;;  %5522 = vmatpush3.bf16.msra.mxu0 %v6361_v27 }
 0x16d   :  { %v2603_v50 = vadd.f32 %v4979_v40, %v6973_v48  ;;  %v4982_v51 = vadd.f32 %v4981_v47, %v4980_v42  ;;  %v5075_v52 = vpop.f32.mrb[15].mxu1  ;;  %5616 = vmatpush3.bf16.msra.mxu1 %v6363_v32  ;;  %5695 = vmatprep.subr.bf16.mxu0 %v6364_v33  ;;  %v843_v42 = vpack.c.bf16 %v411_v25, %v387_v24  ;;  %v483_v25 = vld [vmem:[#allocation2 + $0xc50] sm:$0xff] }
 0x16e   :  { %v5076_v56 = vadd.f32 %v5075_v52, %v5074_v46  ;;  %3153 = vmatmul.mubr.bf16.gmra.mrb[120].mxu0 %v793_v39  ;;  %5789 = vmatprep.subr.bf16.mxu1 %v6366_v36  ;;  %v868_v47 = vpack.c.bf16 %v460_v35, %v436_v31  ;;  %v433_v52 = vld [vmem:[#allocation2 + $0xac0] sm:$0xff]  ;;  %v530_v31 = vld [vmem:[#allocation2 + $0xdc8] sm:$0xff]  ;;  %v532_v35 = vld [vmem:[#allocation2 + $0xdd8] sm:$0xff] }
 0x16f   :  { %v7075_v61 = vadd.f32 %v5073_v45, %v2603_v50  ;;  %v2606_v62 = vadd.f32 %v4982_v51, %v6973_v48  ;;  %3289 = vmatmul.mubr.bf16.gmra.mrb[120].mxu1 %v795_v43  ;;  %3160 = vmatprep.mubr.bf16.mxu0 %v818_v44  ;;  %v866_v43 = vpack.c.bf16 %v458_v30, %v434_v26  ;;  %v507_v30 = vld [vmem:[#allocation2 + $0xd10] sm:$0xff] }
 0x170   :  { %3296 = vmatprep.mubr.bf16.mxu1 %v820_v49 }
 0x171   :  { %v7078_v1 = vadd.f32 %v5076_v56, %v2606_v62  ;;  %v4983_v2 = vpop.f32.mrb[16].mxu0  ;;  %v435_v56 = vld [vmem:[#allocation2 + $0xad0] sm:$0xff] }
 0x172   :  { %v5077_v4 = vpop.f32.mrb[16].mxu1  ;;  %v4984_v5 = vpop.f32.mrb[17].mxu0 }
 0x173   :  { %v4985_v7 = vadd.f32 %v4984_v5, %v4983_v2  ;;  %v5078_v8 = vpop.f32.mrb[17].mxu1  ;;  %v4986_v9 = vpop.f32.mrb[18].mxu0 }
 0x174   :  { %v5079_v12 = vadd.f32 %v5078_v8, %v5077_v4  ;;  %v5080_v13 = vpop.f32.mrb[18].mxu1  ;;  %v4987_v14 = vpop.f32.mrb[19].mxu0  ;;  %v508_v4 = vld [vmem:[#allocation2 + $0xd18] sm:$0xff] }
 0x175   :  { %v2611_v17 = vadd.f32 %v4985_v7, %v6973_v48  ;;  %v4988_v18 = vadd.f32 %v4987_v14, %v4986_v9  ;;  %v5081_v19 = vpop.f32.mrb[19].mxu1  ;;  %v865_v7 = vpack.c.bf16 %v457_v54, %v433_v52 }
 0x176   :  { %v5082_v22 = vadd.f32 %v5081_v19, %v5080_v13  ;;  %3161 = vmatmul.mubr.bf16.gmra.mrb[124].mxu0 %v817_v6 }
 0x177   :  { %v7081_v27 = vadd.f32 %v5079_v12, %v2611_v17  ;;  %v2614_v29 = vadd.f32 %v4988_v18, %v6973_v48  ;;  %3297 = vmatmul.mubr.bf16.gmra.mrb[124].mxu1 %v819_v10  ;;  %3168 = vmatprep.mubr.bf16.mxu0 %v842_v11  ;;  %v867_v11 = vpack.c.bf16 %v459_v57, %v435_v56  ;;  %v529_v56 = vld [vmem:[#allocation2 + $0xdc0] sm:$0xff] }
 0x178   :  { %3304 = vmatprep.mubr.bf16.mxu1 %v844_v15  ;;  %v890_v12 = vpack.c.bf16 %v506_v59, %v482_v58  ;;  %v892_v17 = vpack.c.bf16 %v508_v4, %v484_v0  ;;  %v553_v57 = vld [vmem:[#allocation2 + $0xe80] sm:$0xff]  ;;  %v531_v59 = vld [vmem:[#allocation2 + $0xdd0] sm:$0xff]  ;;  %v578_v0 = vld [vmem:[#allocation2 + $0xf48] sm:$0xff] }
 0x179   :  { %v7084_v32 = vadd.f32 %v5082_v22, %v2614_v29  ;;  %v4989_v33 = vpop.f32.mrb[20].mxu0  ;;  %v505_v22 = vld [vmem:[#allocation2 + $0xd00] sm:$0xff] }
 0x17a   :  { %v5083_v36 = vpop.f32.mrb[20].mxu1  ;;  %v4990_v37 = vpop.f32.mrb[21].mxu0 }
 0x17b   :  { %v4991_v39 = vadd.f32 %v4990_v37, %v4989_v33  ;;  %v5084_v40 = vpop.f32.mrb[21].mxu1  ;;  %v4992_v41 = vpop.f32.mrb[22].mxu0  ;;  %v554_v33 = vld [vmem:[#allocation2 + $0xe88] sm:$0xff] }
 0x17c   :  { %v5085_v44 = vadd.f32 %v5084_v40, %v5083_v36  ;;  %v5086_v45 = vpop.f32.mrb[22].mxu1  ;;  %v4993_v46 = vpop.f32.mrb[23].mxu0 }
 0x17d   :  { %v2619_v49 = vadd.f32 %v4991_v39, %v6973_v48  ;;  %v4994_v50 = vadd.f32 %v4993_v46, %v4992_v41  ;;  %v5087_v51 = vpop.f32.mrb[23].mxu1  ;;  %v889_v41 = vpack.c.bf16 %v505_v22, %v481_v21  ;;  %v914_v46 = vpack.c.bf16 %v554_v33, %v530_v31  ;;  %v601_v31 = vld [vmem:[#allocation2 + $0x1000] sm:$0xff] }
 0x17e   :  { %v5088_v55 = vadd.f32 %v5087_v51, %v5086_v45  ;;  %3169 = vmatmul.mubr.bf16.gmra.mrb[128].mxu0 %v841_v38  ;;  %v556_v38 = vld [vmem:[#allocation2 + $0xe98] sm:$0xff]  ;;  %v891_v45 = vpack.c.bf16 %v507_v30, %v483_v25  ;;  %v577_v30 = vld [vmem:[#allocation2 + $0xf40] sm:$0xff] }
 0x17f   :  { %v7087_v62 = vadd.f32 %v5085_v44, %v2619_v49  ;;  %v2622_v63 = vadd.f32 %v4994_v50, %v6973_v48  ;;  %3305 = vmatmul.mubr.bf16.gmra.mrb[128].mxu1 %v843_v42  ;;  %3176 = vmatprep.mubr.bf16.mxu0 %v866_v43  ;;  %v916_v51 = vpack.c.bf16 %v556_v38, %v532_v35  ;;  %v579_v35 = vld [vmem:[#allocation2 + $0xf50] sm:$0xff]  ;;  %v626_v38 = vld [vmem:[#allocation2 + $0x10c8] sm:$0xff] }
 0x180   :  { %3312 = vmatprep.mubr.bf16.mxu1 %v868_v47 }
 0x181   :  { %v7090_v2 = vadd.f32 %v5088_v55, %v2622_v63  ;;  %v4995_v3 = vpop.f32.mrb[24].mxu0  ;;  %v555_v63 = vld [vmem:[#allocation2 + $0xe90] sm:$0xff] }
 0x182   :  { %v5089_v5 = vpop.f32.mrb[24].mxu1  ;;  %v4996_v6 = vpop.f32.mrb[25].mxu0 }
 0x183   :  { %v4997_v8 = vadd.f32 %v4996_v6, %v4995_v3  ;;  %v5090_v9 = vpop.f32.mrb[25].mxu1  ;;  %v4998_v10 = vpop.f32.mrb[26].mxu0  ;;  %v602_v3 = vld [vmem:[#allocation2 + $0x1008] sm:$0xff]  ;;  %v580_v6 = vld [vmem:[#allocation2 + $0xf58] sm:$0xff] }
 0x184   :  { %v5091_v13 = vadd.f32 %v5090_v9, %v5089_v5  ;;  %v5092_v14 = vpop.f32.mrb[26].mxu1  ;;  %v4999_v15 = vpop.f32.mrb[27].mxu0  ;;  %v604_v9 = vld [vmem:[#allocation2 + $0x1018] sm:$0xff] }
 0x185   :  { %v2627_v18 = vadd.f32 %v4997_v8, %v6973_v48  ;;  %v5000_v19 = vadd.f32 %v4999_v15, %v4998_v10  ;;  %v5093_v20 = vpop.f32.mrb[27].mxu1  ;;  %v940_v22 = vpack.c.bf16 %v604_v9, %v580_v6  ;;  %v649_v6 = vld [vmem:[#allocation2 + $0x1180] sm:$0xff] }
 0x186   :  { %v5094_v24 = vadd.f32 %v5093_v20, %v5092_v14  ;;  %3177 = vmatmul.mubr.bf16.gmra.mrb[132].mxu0 %v865_v7 }
 0x187   :  { %v7093_v26 = vadd.f32 %v5091_v13, %v2627_v18  ;;  %v2630_v29 = vadd.f32 %v5000_v19, %v6973_v48  ;;  %3313 = vmatmul.mubr.bf16.gmra.mrb[132].mxu1 %v867_v11  ;;  %3184 = vmatprep.mubr.bf16.mxu0 %v890_v12  ;;  %v913_v12 = vpack.c.bf16 %v553_v57, %v529_v56 }
 0x188   :  { %3320 = vmatprep.mubr.bf16.mxu1 %v892_v17  ;;  %v915_v17 = vpack.c.bf16 %v555_v63, %v531_v59  ;;  %v938_v18 = vpack.c.bf16 %v602_v3, %v578_v0 }
 0x189   :  { %v7096_v36 = vadd.f32 %v5094_v24, %v2630_v29  ;;  %v5001_v37 = vpop.f32.mrb[28].mxu0 }
 0x18a   :  { %v5095_v39 = vpop.f32.mrb[28].mxu1  ;;  %v5002_v40 = vpop.f32.mrb[29].mxu0 }
 0x18b   :  { %v5003_v42 = vadd.f32 %v5002_v40, %v5001_v37  ;;  %v5096_v43 = vpop.f32.mrb[29].mxu1  ;;  %v5004_v44 = vpop.f32.mrb[30].mxu0  ;;  %v603_v37 = vld [vmem:[#allocation2 + $0x1010] sm:$0xff] }
 0x18c   :  { %v5097_v47 = vadd.f32 %v5096_v43, %v5095_v39  ;;  %v5098_v49 = vpop.f32.mrb[30].mxu1  ;;  %v5005_v50 = vpop.f32.mrb[31].mxu0  ;;  %v650_v39 = vld [vmem:[#allocation2 + $0x1188] sm:$0xff] }
 0x18d   :  { %v2635_v52 = vadd.f32 %v5003_v42, %v6973_v48  ;;  %v5006_v54 = vadd.f32 %v5005_v50, %v5004_v44  ;;  %v5099_v55 = vpop.f32.mrb[31].mxu1  ;;  %v628_v42 = vld [vmem:[#allocation2 + $0x10d8] sm:$0xff] }
 0x18e   :  { %v5100_v58 = vadd.f32 %v5099_v55, %v5098_v49  ;;  %3185 = vmatmul.mubr.bf16.gmra.mrb[136].mxu0 %v889_v41  ;;  %v937_v49 = vpack.c.bf16 %v601_v31, %v577_v30  ;;  %v962_v55 = vpack.c.bf16 %v650_v39, %v626_v38 }
 0x18f   :  { %v7099_v4 = vadd.f32 %v5097_v47, %v2635_v52  ;;  %v2638_v5 = vadd.f32 %v5006_v54, %v6973_v48  ;;  %3321 = vmatmul.mubr.bf16.gmra.mrb[136].mxu1 %v891_v45  ;;  %3192 = vmatprep.mubr.bf16.mxu0 %v914_v46  ;;  %v652_v45 = vld [vmem:[#allocation2 + $0x1198] sm:$0xff]  ;;  %v939_v54 = vpack.c.bf16 %v603_v37, %v579_v35  ;;  %v7116_v35 = vld [vmem:[#allocation4] ss:$0 sm:$0xff] }
 0x190   :  { %3328 = vmatprep.mubr.bf16.mxu1 %v916_v51  ;;  %v964_v59 = vpack.c.bf16 %v652_v45, %v628_v42 }
 0x191   :  { %v7102_v7 = vadd.f32 %v5100_v58, %v2638_v5  ;;  %v5007_v8 = vpop.f32.mrb[32].mxu0  ;;  %v625_v5 = vld [vmem:[#allocation2 + $0x10c0] sm:$0xff] }
 0x192   :  { %v5101_v10 = vpop.f32.mrb[32].mxu1  ;;  %v5008_v11 = vpop.f32.mrb[33].mxu0 }
 0x193   :  { %v5009_v13 = vadd.f32 %v5008_v11, %v5007_v8  ;;  %v5102_v14 = vpop.f32.mrb[33].mxu1  ;;  %v5010_v15 = vpop.f32.mrb[34].mxu0  ;;  %v627_v11 = vld [vmem:[#allocation2 + $0x10d0] sm:$0xff] }
 0x194   :  { %v5103_v19 = vadd.f32 %v5102_v14, %v5101_v10  ;;  %v5104_v20 = vpop.f32.mrb[34].mxu1  ;;  %v5011_v21 = vpop.f32.mrb[35].mxu0 }
 0x195   :  { %v2643_v24 = vadd.f32 %v5009_v13, %v6973_v48  ;;  %v5012_v25 = vadd.f32 %v5011_v21, %v5010_v15  ;;  %v5105_v29 = vpop.f32.mrb[35].mxu1  ;;  %v674_v13 = vld [vmem:[#allocation2 + $0x1248] sm:$0xff] }
 0x196   :  { %v5106_v33 = vadd.f32 %v5105_v29, %v5104_v20  ;;  %3193 = vmatmul.mubr.bf16.gmra.mrb[140].mxu0 %v913_v12  ;;  %v651_v12 = vld [vmem:[#allocation2 + $0x1190] sm:$0xff]  ;;  %v961_v20 = vpack.c.bf16 %v649_v6, %v625_v5  ;;  %v986_v29 = vpack.c.bf16 %v674_v13, %v674_v13 }
 0x197   :  { %v7105_v40 = vadd.f32 %v5103_v19, %v2643_v24  ;;  %v2646_v41 = vadd.f32 %v5012_v25, %v6973_v48  ;;  %3329 = vmatmul.mubr.bf16.gmra.mrb[140].mxu1 %v915_v17  ;;  %3200 = vmatprep.mubr.bf16.mxu0 %v938_v18  ;;  %v676_v17 = vld [vmem:[#allocation2 + $0x1258] sm:$0xff]  ;;  %v963_v25 = vpack.c.bf16 %v651_v12, %v627_v11 }
 0x198   :  { %3336 = vmatprep.mubr.bf16.mxu1 %v940_v22 }
 0x199   :  { %v7108_v43 = vadd.f32 %v5106_v33, %v2646_v41  ;;  %v5013_v44 = vpop.f32.mrb[36].mxu0  ;;  %v988_v33 = vpack.c.bf16 %v676_v17, %v676_v17  ;;  %v673_v41 = vld [vmem:[#allocation2 + $0x1240] sm:$0xff] }
 0x19a   :  { %v5107_v46 = vpop.f32.mrb[36].mxu1  ;;  %v5014_v47 = vpop.f32.mrb[37].mxu0 }
 0x19b   :  { %v5015_v50 = vadd.f32 %v5014_v47, %v5013_v44  ;;  %v5108_v51 = vpop.f32.mrb[37].mxu1  ;;  %v5016_v52 = vpop.f32.mrb[38].mxu0  ;;  %v675_v44 = vld [vmem:[#allocation2 + $0x1250] sm:$0xff]  ;;  %v102_v47 = vld [vmem:[#allocation2 + $0x68] sm:$0xff] }
 0x19c   :  { %v5109_v56 = vadd.f32 %v5108_v51, %v5107_v46  ;;  %v5110_v57 = vpop.f32.mrb[38].mxu1  ;;  %v5017_v58 = vpop.f32.mrb[39].mxu0 }
 0x19d   :  { %v2651_v63 = vadd.f32 %v5015_v50, %v6973_v48  ;;  %v5018_v0 = vadd.f32 %v5017_v58, %v5016_v52  ;;  %v5111_v3 = vpop.f32.mrb[39].mxu1  ;;  %v104_v52 = vld [vmem:[#allocation2 + $0x78] sm:$0xff] }
 0x19e   :  { %v5112_v8 = vadd.f32 %v5111_v3, %v5110_v57  ;;  %3201 = vmatmul.mubr.bf16.gmra.mrb[144].mxu0 %v937_v49  ;;  %v126_v49 = vld [vmem:[#allocation2 + $0x128] sm:$0xff]  ;;  %v985_v57 = vpack.c.bf16 %v673_v41, %v673_v41 }
 0x19f   :  { %v7111_v9 = vadd.f32 %v5109_v56, %v2651_v63  ;;  %v2654_v10 = vadd.f32 %v5018_v0, %v6973_v48  ;;  %3337 = vmatmul.mubr.bf16.gmra.mrb[144].mxu1 %v939_v54  ;;  %3208 = vmatprep.mubr.bf16.mxu0 %v962_v55  ;;  %v128_v54 = vld [vmem:[#allocation2 + $0x138] sm:$0xff]  ;;  %v987_v0 = vpack.c.bf16 %v675_v44, %v675_v44 }
 0x1a0   :  { %3344 = vmatprep.mubr.bf16.mxu1 %v964_v59  ;;  %v702_v3 = vpack.c.bf16 %v126_v49, %v102_v47 }
 0x1a1   :  { %v7114_v14 = vadd.f32 %v5112_v8, %v2654_v10  ;;  %v5019_v15 = vpop.f32.mrb[40].mxu0  ;;  %v704_v10 = vpack.c.bf16 %v128_v54, %v104_v52  ;;  %v6367_v52 = vld [vmem:[%s7897_s1 + $0x480] sm:$0xff]  }
 0x1a2   :  { %v5113_v18 = vpop.f32.mrb[40].mxu1  ;;  %v5020_v19 = vpop.f32.mrb[41].mxu0 }
 0x1a3   :  { %v5021_v21 = vadd.f32 %v5020_v19, %v5019_v15  ;;  %v5114_v22 = vpop.f32.mrb[41].mxu1  ;;  %v5022_v24 = vpop.f32.mrb[42].mxu0  ;;  %v101_v19 = vld [vmem:[#allocation2 + $0x60] sm:$0xff] }
 0x1a4   :  { %v5115_v30 = vadd.f32 %v5114_v22, %v5113_v18  ;;  %v5116_v48 = vpop.f32.mrb[42].mxu1  ;;  %v5023_v31 = vpop.f32.mrb[43].mxu0  ;;  %v127_v22 = vld [vmem:[#allocation2 + $0x130] sm:$0xff] }
 0x1a5   :  { %v2659_v37 = vadd.f32 %v7116_v35, %v5021_v21  ;;  %v5024_v38 = vadd.f32 %v5023_v31, %v5022_v24  ;;  %v5117_v39 = vpop.f32.mrb[43].mxu1  ;;  %v103_v21 = vld [vmem:[#allocation2 + $0x70] sm:$0xff] }
 0x1a6   :  { %v5118_v42 = vadd.f32 %v5117_v39, %v5116_v48  ;;  %3209 = vmatmul.mubr.bf16.gmra.mrb[148].mxu0 %v961_v20  ;;  %v125_v20 = vld [vmem:[#allocation2 + $0x120] sm:$0xff]  ;;  %v703_v44 = vpack.c.bf16 %v127_v22, %v103_v21 }
 0x1a7   :  { %v7119_v45 = vadd.f32 %v5115_v30, %v2659_v37  ;;  %v2662_v46 = vadd.f32 %v7116_v35, %v5024_v38  ;;  %3345 = vmatmul.mubr.bf16.gmra.mrb[148].mxu1 %v963_v25  ;;  %3216 = vmatprep.mubr.bf16.mxu0 %v986_v29  ;;  %v150_v29 = vld [vmem:[#allocation2 + $0x1e8] sm:$0xff]  ;;  %v152_v37 = vld [vmem:[#allocation2 + $0x1f8] sm:$0xff] }
 0x1a8   :  { %3352 = vmatprep.mubr.bf16.mxu1 %v988_v33  ;;  %v174_v30 = vld [vmem:[#allocation2 + $0x2a8] sm:$0xff]  ;;  %v701_v33 = vpack.c.bf16 %v125_v20, %v101_v19  ;;  %v176_v38 = vld [vmem:[#allocation2 + $0x2b8] sm:$0xff]  ;;  %v6374_v19 = vld [vmem:[%s7897_s1 + $0x4d0] sm:$0xff]  }
 0x1a9   :  { %v7122_v50 = vadd.f32 %v5118_v42, %v2662_v46  ;;  %v5025_v51 = vpop.f32.mrb[44].mxu0  ;;  %v6365_v46 = vld [vmem:[%s7897_s1 + $0x400] sm:$0xff]   ;;  %v726_v54 = vpack.c.bf16 %v174_v30, %v150_v29 }
 0x1aa   :  { %v5119_v55 = vpop.f32.mrb[44].mxu1  ;;  %v5026_v56 = vpop.f32.mrb[45].mxu0 }
 0x1ab   :  { %v5027_v58 = vadd.f32 %v5026_v56, %v5025_v51  ;;  %v5120_v59 = vpop.f32.mrb[45].mxu1  ;;  %v5028_v63 = vpop.f32.mrb[46].mxu0 }
 0x1ac   :  { %v5121_v5 = vadd.f32 %v5120_v59, %v5119_v55  ;;  %v5122_v6 = vpop.f32.mrb[46].mxu1  ;;  %v5029_v8 = vpop.f32.mrb[47].mxu0  ;;  %v6368_v59 = vld [vmem:[%s7897_s1 + $0x448] sm:$0xff]  }
 0x1ad   :  { %v2667_v11 = vadd.f32 %v7116_v35, %v5027_v58  ;;  %v5030_v12 = vadd.f32 %v5029_v8, %v5028_v63  ;;  %v5123_v13 = vpop.f32.mrb[47].mxu1  ;;  %v149_v58 = vld [vmem:[#allocation2 + $0x1e0] sm:$0xff]  ;;  %v198_v8 = vld [vmem:[#allocation2 + $0x368] sm:$0xff] }
 0x1ae   :  { %v5124_v15 = vadd.f32 %v5123_v13, %v5122_v6  ;;  %3217 = vmatmul.mubr.bf16.gmra.mrb[152].mxu0 %v985_v57  ;;  %v728_v57 = vpack.c.bf16 %v176_v38, %v152_v37  ;;  %v173_v63 = vld [vmem:[#allocation2 + $0x2a0] sm:$0xff]  ;;  %v175_v6 = vld [vmem:[#allocation2 + $0x2b0] sm:$0xff] }
 0x1af   :  { %v7125_v17 = vadd.f32 %v5121_v5, %v2667_v11  ;;  %v2670_v18 = vadd.f32 %v7116_v35, %v5030_v12  ;;  %3353 = vmatmul.mubr.bf16.gmra.mrb[152].mxu1 %v987_v0  ;;  %3392 = vmatprep.mubr.bf16.mxu0 %v702_v3  ;;  %v151_v0 = vld [vmem:[#allocation2 + $0x1f0] sm:$0xff]  ;;  %v6370_v3 = vld [vmem:[%s7897_s1 + $0x4c8] sm:$0xff]   ;;  %v725_v22 = vpack.c.bf16 %v173_v63, %v149_v58 }
 0x1b0   :  { %3528 = vmatprep.mubr.bf16.mxu1 %v704_v10  ;;  %v222_v10 = vld [vmem:[#allocation2 + $0x428] sm:$0xff]  ;;  %v6372_v12 = vld [vmem:[%s7897_s1 + $0x450] sm:$0xff]  }
 0x1b1   :  { %v7128_v24 = vadd.f32 %v5124_v15, %v2670_v18  ;;  %v5031_v25 = vpop.f32.mrb[48].mxu0  ;;  %v6371_v11 = vld [vmem:[%s7897_s1 + $0x488] sm:$0xff]   ;;  %v200_v15 = vld [vmem:[#allocation2 + $0x378] sm:$0xff]  ;;  %v223_v58 = vld [vmem:[#allocation2 + $0x430] sm:$0xff] }
 0x1b2   :  { %v5125_v48 = vpop.f32.mrb[48].mxu1  ;;  %v5032_v31 = vpop.f32.mrb[49].mxu0  ;;  %v224_v18 = vld [vmem:[#allocation2 + $0x438] sm:$0xff]  ;;  %v270_v63 = vld [vmem:[#allocation2 + $0x5a8] sm:$0xff] }
 0x1b3   :  { %v5033_v39 = vadd.f32 %v5032_v31, %v5031_v25  ;;  %v5126_v41 = vpop.f32.mrb[49].mxu1  ;;  %v5034_v42 = vpop.f32.mrb[50].mxu0  ;;  %v750_v31 = vpack.c.bf16 %v222_v10, %v198_v8  ;;  %v272_v8 = vld [vmem:[#allocation2 + $0x5b8] sm:$0xff]  ;;  %v6380_v10 = vld [vmem:[%s7897_s1 + $0x460] sm:$0xff]  }
 0x1b4   :  { %v5127_v47 = vadd.f32 %v5126_v41, %v5125_v48  ;;  %v5128_v49 = vpop.f32.mrb[50].mxu1  ;;  %v5035_v51 = vpop.f32.mrb[51].mxu0  ;;  %v727_v48 = vpack.c.bf16 %v175_v6, %v151_v0  ;;  %v6373_v41 = vld [vmem:[%s7897_s1 + $0x410] sm:$0xff]   ;;  %v248_v0 = vld [vmem:[#allocation2 + $0x4f8] sm:$0xff] }
 0x1b5   :  { %v2675_v55 = vadd.f32 %v7116_v35, %v5033_v39  ;;  %v5129_v56 = vpop.f32.mrb[51].mxu1  ;;  %v6369_v35 = vld [vmem:[%s7897_s1 + $0x408] sm:$0xff]   ;;  %v752_v39 = vpack.c.bf16 %v224_v18, %v200_v15  ;;  %v6376_v49 = vld [vmem:[%s7897_s1 + $0x458] sm:$0xff]   ;;  %v6382_v15 = vld [vmem:[%s7897_s1 + $0x4e0] sm:$0xff]  }
 0x1b6   :  { %3393 = vmatmul.mubr.bf16.vlgmr.msra.gmra.mrb[156].mxu0 %v701_v33 }
 0x1b7   :  { %v7143_v5 = vadd.f32 %v5127_v47, %v2675_v55  ;;  %3529 = vmatmul.mubr.bf16.vlgmr.msra.gmra.mrb[156].mxu1 %v703_v44  ;;  %5696 = vmatpush3.bf16.msra.mxu0 %v6365_v46  ;;  %v6375_v47 = vld [vmem:[%s7897_s1 + $0x490] sm:$0xff]   ;;  %v6378_v55 = vld [vmem:[%s7897_s1 + $0x4d8] sm:$0xff]  }
 0x1b8   :  { %5790 = vmatpush3.bf16.msra.mxu1 %v6367_v52  ;;  %3400 = vmatprep.mubr.bf16.mxu0 %v726_v54  ;;  %v197_v52 = vld [vmem:[#allocation2 + $0x360] sm:$0xff] }
 0x1b9   :  { %v5147_v13 = vpop.f32.mrb[52].mxu0  ;;  %3536 = vmatprep.mubr.bf16.mxu1 %v728_v57  ;;  %5697 = vmatprep.subr.bf16.mxu0 %v6368_v59  ;;  %v221_v54 = vld [vmem:[#allocation2 + $0x420] sm:$0xff]  ;;  %v199_v57 = vld [vmem:[#allocation2 + $0x370] sm:$0xff]  ;;  %v246_v59 = vld [vmem:[#allocation2 + $0x4e8] sm:$0xff] }
 0x1ba   :  { %v5241_v20 = vpop.f32.mrb[52].mxu1  ;;  %v5148_v21 = vpop.f32.mrb[53].mxu0  ;;  %5791 = vmatprep.subr.bf16.mxu1 %v6370_v3  ;;  %v6377_v3 = vld [vmem:[%s7897_s1 + $0x418] sm:$0xff]  }
 0x1bb   :  { %v5149_v25 = vadd.f32 %v5148_v21, %v5147_v13  ;;  %v5242_v29 = vpop.f32.mrb[53].mxu1  ;;  %v5150_v30 = vpop.f32.mrb[54].mxu0  ;;  %5698 = vmatpush3.bf16.msra.mxu0 %v6369_v35  ;;  %v749_v13 = vpack.c.bf16 %v221_v54, %v197_v52  ;;  %v751_v21 = vpack.c.bf16 %v223_v58, %v199_v57  ;;  %v294_v52 = vld [vmem:[#allocation2 + $0x668] sm:$0xff] }
 0x1bc   :  { %v5243_v33 = vadd.f32 %v5242_v29, %v5241_v20  ;;  %v5244_v37 = vpop.f32.mrb[54].mxu1  ;;  %v5151_v38 = vpop.f32.mrb[55].mxu0  ;;  %5792 = vmatpush3.bf16.msra.mxu1 %v6371_v11  ;;  %5699 = vmatprep.subr.bf16.mxu0 %v6372_v12  ;;  %v6385_v57 = vld [vmem:[%s7897_s1 + $0x428] sm:$0xff]  }
 0x1bd   :  { %v2851_v42 = vadd.f32 %v5149_v25, %v6997_v16  ;;  %v5152_v44 = vadd.f32 %v5151_v38, %v5150_v30  ;;  %v5245_v46 = vpop.f32.mrb[55].mxu1  ;;  %5793 = vmatprep.subr.bf16.mxu1 %v6374_v19 }
 0x1be   :  { %v5246_v51 = vadd.f32 %v5245_v46, %v5244_v37  ;;  %3401 = vmatmul.mubr.bf16.gmra.mrb[160].mxu0 %v725_v22  ;;  %v774_v22 = vpack.c.bf16 %v270_v63, %v246_v59  ;;  %v269_v46 = vld [vmem:[#allocation2 + $0x5a0] sm:$0xff]  ;;  %v320_v59 = vld [vmem:[#allocation2 + $0x738] sm:$0xff]  ;;  %v6388_v63 = vld [vmem:[%s7897_s1 + $0x470] sm:$0xff]  }
 0x1bf   :  { %v7170_v16 = vadd.f32 %v5243_v33, %v2851_v42  ;;  %v2854_v56 = vadd.f32 %v5152_v44, %v7009_v23  ;;  %3537 = vmatmul.mubr.bf16.gmra.mrb[160].mxu1 %v727_v48  ;;  %3408 = vmatprep.mubr.bf16.mxu0 %v750_v31  ;;  %v6379_v23 = vld [vmem:[%s7897_s1 + $0x498] sm:$0xff]   ;;  %v776_v48 = vpack.c.bf16 %v272_v8, %v248_v0  ;;  %v6381_v31 = vld [vmem:[%s7897_s1 + $0x420] sm:$0xff]  }
 0x1c0   :  { %3544 = vmatprep.mubr.bf16.mxu1 %v752_v39  ;;  %5700 = vmatpush3.bf16.msra.mxu0 %v6373_v41  ;;  %v6383_v39 = vld [vmem:[%s7897_s1 + $0x4a0] sm:$0xff]   ;;  %v6384_v41 = vld [vmem:[%s7897_s1 + $0x468] sm:$0xff]  }
 0x1c1   :  { %v7176_v6 = vadd.f32 %v5246_v51, %v2854_v56  ;;  %v5153_v35 = vpop.f32.mrb[56].mxu0  ;;  %5794 = vmatpush3.bf16.msra.mxu1 %v6375_v47  ;;  %5701 = vmatprep.subr.bf16.mxu0 %v6376_v49  ;;  %v245_v44 = vld [vmem:[#allocation2 + $0x4e0] sm:$0xff]  ;;  %v247_v49 = vld [vmem:[#allocation2 + $0x4f0] sm:$0xff]  ;;  %v296_v56 = vld [vmem:[#allocation2 + $0x678] sm:$0xff] }
 0x1c2   :  { %v5247_v11 = vpop.f32.mrb[56].mxu1  ;;  %v5154_v12 = vpop.f32.mrb[57].mxu0  ;;  %5795 = vmatprep.subr.bf16.mxu1 %v6378_v55  ;;  %v271_v51 = vld [vmem:[#allocation2 + $0x5b0] sm:$0xff]  ;;  %v318_v55 = vld [vmem:[#allocation2 + $0x728] sm:$0xff]  ;;  %v773_v8 = vpack.c.bf16 %v269_v46, %v245_v44 }
 0x1c3   :  { %v5155_v18 = vadd.f32 %v5154_v12, %v5153_v35  ;;  %v5248_v19 = vpop.f32.mrb[57].mxu1  ;;  %v5156_v20 = vpop.f32.mrb[58].mxu0  ;;  %v342_v44 = vld [vmem:[#allocation2 + $0x7e8] sm:$0xff] }
 0x1c4   :  { %v5249_v25 = vadd.f32 %v5248_v19, %v5247_v11  ;;  %v5250_v29 = vpop.f32.mrb[58].mxu1  ;;  %v5157_v30 = vpop.f32.mrb[59].mxu0  ;;  %5702 = vmatpush3.bf16.msra.mxu0 %v6377_v3 }
 0x1c5   :  { %v2859_v33 = vadd.f32 %v5155_v18, %v7027_v53  ;;  %v5158_v37 = vadd.f32 %v5157_v30, %v5156_v20  ;;  %v5251_v38 = vpop.f32.mrb[59].mxu1  ;;  %5796 = vmatpush3.bf16.msra.mxu1 %v6379_v23  ;;  %5703 = vmatprep.subr.bf16.mxu0 %v6380_v10  ;;  %v6386_v53 = vld [vmem:[%s7897_s1 + $0x4e8] sm:$0xff]   ;;  %v6390_v23 = vld [vmem:[%s7897_s1 + $0x4f0] sm:$0xff]  }
 0x1c6   :  { %v5252_v42 = vadd.f32 %v5251_v38, %v5250_v29  ;;  %3409 = vmatmul.mubr.bf16.gmra.mrb[164].mxu0 %v749_v13  ;;  %5797 = vmatprep.subr.bf16.mxu1 %v6382_v15  ;;  %v775_v13 = vpack.c.bf16 %v271_v51, %v247_v49  ;;  %v798_v15 = vpack.c.bf16 %v318_v55, %v294_v52  ;;  %v317_v38 = vld [vmem:[#allocation2 + $0x720] sm:$0xff]  ;;  %v6393_v49 = vld [vmem:[%s7897_s1 + $0x438] sm:$0xff]  }
 0x1c7   :  { %v2862_v47 = vadd.f32 %v5158_v37, %v7039_v60  ;;  %3545 = vmatmul.mubr.bf16.gmra.mrb[164].mxu1 %v751_v21  ;;  %3416 = vmatprep.mubr.bf16.mxu0 %v774_v22  ;;  %v7201_v54 = vadd.f32 %v5249_v25, %v2859_v33  ;;  %v6387_v60 = vld [vmem:[%s7897_s1 + $0x4a8] sm:$0xff]   ;;  %v800_v21 = vpack.c.bf16 %v320_v59, %v296_v56  ;;  %v6389_v22 = vld [vmem:[%s7897_s1 + $0x430] sm:$0xff]   ;;  %v293_v37 = vld [vmem:[#allocation2 + $0x660] sm:$0xff] }
 0x1c8   :  { %3552 = vmatprep.mubr.bf16.mxu1 %v776_v48  ;;  %5704 = vmatpush3.bf16.msra.mxu0 %v6381_v31  ;;  %v6391_v48 = vld [vmem:[%s7897_s1 + $0x4b0] sm:$0xff]   ;;  %v6392_v31 = vld [vmem:[%s7897_s1 + $0x478] sm:$0xff]   ;;  %v6396_v55 = vld [vmem:[%s7897_s1 + $0x540] sm:$0xff]   ;;  %v797_v59 = vpack.c.bf16 %v317_v38, %v293_v37 }
 0x1c9   :  { %v5159_v58 = vpop.f32.mrb[60].mxu0  ;;  %5798 = vmatpush3.bf16.msra.mxu1 %v6383_v39  ;;  %5705 = vmatprep.subr.bf16.mxu0 %v6384_v41  ;;  %v7212_v0 = vadd.f32 %v5252_v42, %v2862_v47  ;;  %v295_v41 = vld [vmem:[#allocation2 + $0x670] sm:$0xff]  ;;  %v344_v47 = vld [vmem:[#allocation2 + $0x7f8] sm:$0xff] }
 0x1ca   :  { %v5253_v3 = vpop.f32.mrb[60].mxu1  ;;  %v5160_v35 = vpop.f32.mrb[61].mxu0  ;;  %5799 = vmatprep.subr.bf16.mxu1 %v6386_v53  ;;  %v319_v42 = vld [vmem:[#allocation2 + $0x730] sm:$0xff]  ;;  %v366_v53 = vld [vmem:[#allocation2 + $0x8a8] sm:$0xff]  ;;  %v368_v52 = vld [vmem:[#allocation2 + $0x8b8] sm:$0xff] }
 0x1cb   :  { %v5161_v10 = vadd.f32 %v5160_v35, %v5159_v58  ;;  %v5254_v11 = vpop.f32.mrb[61].mxu1  ;;  %v5162_v12 = vpop.f32.mrb[62].mxu0  ;;  %v392_v37 = vld [vmem:[#allocation2 + $0x978] sm:$0xff] }
 0x1cc   :  { %v5255_v18 = vadd.f32 %v5254_v11, %v5253_v3  ;;  %v5256_v19 = vpop.f32.mrb[62].mxu1  ;;  %v5163_v20 = vpop.f32.mrb[63].mxu0  ;;  %5706 = vmatpush3.bf16.msra.mxu0 %v6385_v57  ;;  %v416_v38 = vld [vmem:[#allocation2 + $0xa38] sm:$0xff] }
 0x1cd   :  { %v2867_v25 = vadd.f32 %v5161_v10, %v7060_v28  ;;  %v5164_v29 = vadd.f32 %v5163_v20, %v5162_v12  ;;  %v5257_v30 = vpop.f32.mrb[63].mxu1  ;;  %5800 = vmatpush3.bf16.msra.mxu1 %v6387_v60  ;;  %5707 = vmatprep.subr.bf16.mxu0 %v6388_v63  ;;  %v6394_v28 = vld [vmem:[%s7897_s1 + $0x4f8] sm:$0xff]   ;;  %v6398_v60 = vld [vmem:[%s7897_s1 + $0x5c0] sm:$0xff]  }
 0x1ce   :  { %v5258_v33 = vadd.f32 %v5257_v30, %v5256_v19  ;;  %3417 = vmatmul.mubr.bf16.gmra.mrb[168].mxu0 %v773_v8  ;;  %5801 = vmatprep.subr.bf16.mxu1 %v6390_v23  ;;  %v799_v8 = vpack.c.bf16 %v319_v42, %v295_v41  ;;  %v822_v23 = vpack.c.bf16 %v366_v53, %v342_v44 }
 0x1cf   :  { %v2870_v39 = vadd.f32 %v5164_v29, %v7069_v34  ;;  %3553 = vmatmul.mubr.bf16.gmra.mrb[168].mxu1 %v775_v13  ;;  %3424 = vmatprep.mubr.bf16.mxu0 %v798_v15  ;;  %v7231_v46 = vadd.f32 %v5255_v18, %v2867_v25  ;;  %v6395_v34 = vld [vmem:[%s7897_s1 + $0x4b8] sm:$0xff]   ;;  %v824_v13 = vpack.c.bf16 %v368_v52, %v344_v47  ;;  %v365_v25 = vld [vmem:[#allocation2 + $0x8a0] sm:$0xff]  ;;  %v343_v29 = vld [vmem:[#allocation2 + $0x7f0] sm:$0xff] }
 0x1d0   :  { %3560 = vmatprep.mubr.bf16.mxu1 %v800_v21  ;;  %5708 = vmatpush3.bf16.msra.mxu0 %v6389_v22  ;;  %v341_v22 = vld [vmem:[#allocation2 + $0x7e0] sm:$0xff] }
 0x1d1   :  { %v5165_v51 = vpop.f32.mrb[64].mxu0  ;;  %5802 = vmatpush3.bf16.msra.mxu1 %v6391_v48  ;;  %5709 = vmatprep.subr.bf16.mxu0 %v6392_v31  ;;  %v7242_v56 = vadd.f32 %v5258_v33, %v2870_v39  ;;  %v367_v48 = vld [vmem:[#allocation2 + $0x8b0] sm:$0xff]  ;;  %v390_v31 = vld [vmem:[#allocation2 + $0x968] sm:$0xff]  ;;  %v821_v42 = vpack.c.bf16 %v365_v25, %v341_v22 }
 0x1d2   :  { %v5259_v57 = vpop.f32.mrb[64].mxu1  ;;  %v5166_v58 = vpop.f32.mrb[65].mxu0  ;;  %5803 = vmatprep.subr.bf16.mxu1 %v6394_v28  ;;  %v823_v47 = vpack.c.bf16 %v367_v48, %v343_v29 }
 0x1d3   :  { %v5167_v63 = vadd.f32 %v5166_v58, %v5165_v51  ;;  %v5260_v3 = vpop.f32.mrb[65].mxu1  ;;  %v5168_v35 = vpop.f32.mrb[66].mxu0 }
 0x1d4   :  { %v5261_v10 = vadd.f32 %v5260_v3, %v5259_v57  ;;  %v5262_v11 = vpop.f32.mrb[66].mxu1  ;;  %v5169_v12 = vpop.f32.mrb[67].mxu0  ;;  %5710 = vmatpush3.bf16.msra.mxu0 %v6393_v49  ;;  %v389_v3 = vld [vmem:[#allocation2 + $0x960] sm:$0xff] }
 0x1d5   :  { %v2875_v15 = vadd.f32 %v5167_v63, %v7075_v61  ;;  %v5170_v18 = vadd.f32 %v5169_v12, %v5168_v35  ;;  %v5263_v19 = vpop.f32.mrb[67].mxu1  ;;  %5804 = vmatpush3.bf16.msra.mxu1 %v6395_v34  ;;  %5883 = vmatprep.subr.bf16.mxu0 %v6396_v55  ;;  %v414_v61 = vld [vmem:[#allocation2 + $0xa28] sm:$0xff]  ;;  %v848_v55 = vpack.c.bf16 %v416_v38, %v392_v37  ;;  %v413_v35 = vld [vmem:[#allocation2 + $0xa20] sm:$0xff] }
 0x1d6   :  { %v5264_v20 = vadd.f32 %v5263_v19, %v5262_v11  ;;  %3425 = vmatmul.mubr.bf16.gmra.mrb[172].mxu0 %v797_v59  ;;  %5977 = vmatprep.subr.bf16.mxu1 %v6398_v60  ;;  %v846_v49 = vpack.c.bf16 %v414_v61, %v390_v31  ;;  %v438_v11 = vld [vmem:[#allocation2 + $0xae8] sm:$0xff] }
 0x1d7   :  { %v2878_v21 = vadd.f32 %v5170_v18, %v7078_v1  ;;  %3561 = vmatmul.mubr.bf16.gmra.mrb[172].mxu1 %v799_v8  ;;  %3432 = vmatprep.mubr.bf16.mxu0 %v822_v23  ;;  %v7249_v30 = vadd.f32 %v5261_v10, %v2875_v15  ;;  %v391_v8 = vld [vmem:[#allocation2 + $0x970] sm:$0xff]  ;;  %v462_v12 = vld [vmem:[#allocation2 + $0xba8] sm:$0xff]  ;;  %v440_v15 = vld [vmem:[#allocation2 + $0xaf8] sm:$0xff] }
 0x1d8   :  { %3568 = vmatprep.mubr.bf16.mxu1 %v824_v13  ;;  %v415_v10 = vld [vmem:[#allocation2 + $0xa30] sm:$0xff]  ;;  %v870_v48 = vpack.c.bf16 %v462_v12, %v438_v11 }
 0x1d9   :  { %v5171_v33 = vpop.f32.mrb[68].mxu0  ;;  %v7251_v28 = vadd.f32 %v5264_v20, %v2878_v21  ;;  %v845_v21 = vpack.c.bf16 %v413_v35, %v389_v3  ;;  %v847_v29 = vpack.c.bf16 %v415_v10, %v391_v8 }
 0x1da   :  { %v5265_v39 = vpop.f32.mrb[68].mxu1  ;;  %v5172_v41 = vpop.f32.mrb[69].mxu0 }
 0x1db   :  { %v5173_v1 = vadd.f32 %v5172_v41, %v5171_v33  ;;  %v5266_v44 = vpop.f32.mrb[69].mxu1  ;;  %v5174_v53 = vpop.f32.mrb[70].mxu0 }
 0x1dc   :  { %v5267_v51 = vadd.f32 %v5266_v44, %v5265_v39  ;;  %v5268_v52 = vpop.f32.mrb[70].mxu1  ;;  %v5175_v34 = vpop.f32.mrb[71].mxu0  ;;  %v437_v44 = vld [vmem:[#allocation2 + $0xae0] sm:$0xff] }
 0x1dd   :  { %v2883_v57 = vadd.f32 %v5173_v1, %v7081_v27  ;;  %v5176_v58 = vadd.f32 %v5175_v34, %v5174_v53  ;;  %v5269_v59 = vpop.f32.mrb[71].mxu1  ;;  %v464_v27 = vld [vmem:[#allocation2 + $0xbb8] sm:$0xff]  ;;  %v461_v53 = vld [vmem:[#allocation2 + $0xba0] sm:$0xff]  ;;  %v510_v34 = vld [vmem:[#allocation2 + $0xd28] sm:$0xff] }
 0x1de   :  { %v5270_v60 = vadd.f32 %v5269_v59, %v5268_v52  ;;  %3433 = vmatmul.mubr.bf16.gmra.mrb[176].mxu0 %v821_v42  ;;  %v872_v37 = vpack.c.bf16 %v464_v27, %v440_v15  ;;  %v486_v52 = vld [vmem:[#allocation2 + $0xc68] sm:$0xff] }
 0x1df   :  { %v2886_v63 = vadd.f32 %v5176_v58, %v7084_v32  ;;  %3569 = vmatmul.mubr.bf16.gmra.mrb[176].mxu1 %v823_v47  ;;  %3440 = vmatprep.mubr.bf16.mxu0 %v846_v49  ;;  %v7255_v23 = vadd.f32 %v5267_v51, %v2883_v57  ;;  %v439_v47 = vld [vmem:[#allocation2 + $0xaf0] sm:$0xff]  ;;  %v488_v57 = vld [vmem:[#allocation2 + $0xc78] sm:$0xff]  ;;  %v894_v10 = vpack.c.bf16 %v510_v34, %v486_v52 }
 0x1e0   :  { %3576 = vmatprep.mubr.bf16.mxu1 %v848_v55  ;;  %v463_v51 = vld [vmem:[#allocation2 + $0xbb0] sm:$0xff] }
 0x1e1   :  { %v5177_v13 = vpop.f32.mrb[72].mxu0  ;;  %v7257_v18 = vadd.f32 %v5270_v60, %v2886_v63  ;;  %v869_v63 = vpack.c.bf16 %v461_v53, %v437_v44  ;;  %v871_v8 = vpack.c.bf16 %v463_v51, %v439_v47 }
 0x1e2   :  { %v5271_v19 = vpop.f32.mrb[72].mxu1  ;;  %v5178_v20 = vpop.f32.mrb[73].mxu0 }
 0x1e3   :  { %v5179_v32 = vadd.f32 %v5178_v20, %v5177_v13  ;;  %v5272_v22 = vpop.f32.mrb[73].mxu1  ;;  %v5180_v25 = vpop.f32.mrb[74].mxu0 }
 0x1e4   :  { %v5273_v31 = vadd.f32 %v5272_v22, %v5271_v19  ;;  %v5274_v61 = vpop.f32.mrb[74].mxu1  ;;  %v5181_v33 = vpop.f32.mrb[75].mxu0  ;;  %v485_v22 = vld [vmem:[#allocation2 + $0xc60] sm:$0xff] }
 0x1e5   :  { %v2891_v38 = vadd.f32 %v5179_v32, %v7087_v62  ;;  %v5182_v39 = vadd.f32 %v5181_v33, %v5180_v25  ;;  %v5275_v41 = vpop.f32.mrb[75].mxu1  ;;  %v512_v62 = vld [vmem:[#allocation2 + $0xd38] sm:$0xff]  ;;  %v509_v25 = vld [vmem:[#allocation2 + $0xd20] sm:$0xff]  ;;  %v558_v33 = vld [vmem:[#allocation2 + $0xea8] sm:$0xff] }
 0x1e6   :  { %v5276_v42 = vadd.f32 %v5275_v41, %v5274_v61  ;;  %3441 = vmatmul.mubr.bf16.gmra.mrb[180].mxu0 %v845_v21  ;;  %v896_v15 = vpack.c.bf16 %v512_v62, %v488_v57  ;;  %v534_v61 = vld [vmem:[#allocation2 + $0xde8] sm:$0xff] }
 0x1e7   :  { %v2894_v1 = vadd.f32 %v5182_v39, %v7090_v2  ;;  %3577 = vmatmul.mubr.bf16.gmra.mrb[180].mxu1 %v847_v29  ;;  %3448 = vmatprep.mubr.bf16.mxu0 %v870_v48  ;;  %v7261_v49 = vadd.f32 %v5273_v31, %v2891_v38  ;;  %v487_v29 = vld [vmem:[#allocation2 + $0xc70] sm:$0xff]  ;;  %v536_v38 = vld [vmem:[#allocation2 + $0xdf8] sm:$0xff]  ;;  %v918_v51 = vpack.c.bf16 %v558_v33, %v534_v61 }
 0x1e8   :  { %3584 = vmatprep.mubr.bf16.mxu1 %v872_v37  ;;  %v511_v31 = vld [vmem:[#allocation2 + $0xd30] sm:$0xff] }
 0x1e9   :  { %v5183_v55 = vpop.f32.mrb[76].mxu0  ;;  %v7263_v58 = vadd.f32 %v5276_v42, %v2894_v1  ;;  %v893_v1 = vpack.c.bf16 %v509_v25, %v485_v22  ;;  %v895_v47 = vpack.c.bf16 %v511_v31, %v487_v29 }
 0x1ea   :  { %v5277_v59 = vpop.f32.mrb[76].mxu1  ;;  %v5184_v60 = vpop.f32.mrb[77].mxu0 }
 0x1eb   :  { %v5185_v2 = vadd.f32 %v5184_v60, %v5183_v55  ;;  %v5278_v3 = vpop.f32.mrb[77].mxu1  ;;  %v5186_v35 = vpop.f32.mrb[78].mxu0 }
 0x1ec   :  { %v5279_v11 = vadd.f32 %v5278_v3, %v5277_v59  ;;  %v5280_v12 = vpop.f32.mrb[78].mxu1  ;;  %v5187_v13 = vpop.f32.mrb[79].mxu0  ;;  %v533_v3 = vld [vmem:[#allocation2 + $0xde0] sm:$0xff] }
 0x1ed   :  { %v2899_v27 = vadd.f32 %v5185_v2, %v7093_v26  ;;  %v5188_v19 = vadd.f32 %v5187_v13, %v5186_v35  ;;  %v5281_v20 = vpop.f32.mrb[79].mxu1  ;;  %v560_v26 = vld [vmem:[#allocation2 + $0xeb8] sm:$0xff]  ;;  %v557_v35 = vld [vmem:[#allocation2 + $0xea0] sm:$0xff]  ;;  %v606_v13 = vld [vmem:[#allocation2 + $0x1028] sm:$0xff] }
 0x1ee   :  { %v5282_v21 = vadd.f32 %v5281_v20, %v5280_v12  ;;  %3449 = vmatmul.mubr.bf16.gmra.mrb[184].mxu0 %v869_v63  ;;  %v920_v57 = vpack.c.bf16 %v560_v26, %v536_v38  ;;  %v582_v12 = vld [vmem:[#allocation2 + $0xf68] sm:$0xff] }
 0x1ef   :  { %v2902_v32 = vadd.f32 %v5188_v19, %v7096_v36  ;;  %3585 = vmatmul.mubr.bf16.gmra.mrb[184].mxu1 %v871_v8  ;;  %3456 = vmatprep.mubr.bf16.mxu0 %v894_v10  ;;  %v7267_v48 = vadd.f32 %v5279_v11, %v2899_v27  ;;  %v535_v8 = vld [vmem:[#allocation2 + $0xdf0] sm:$0xff]  ;;  %v584_v27 = vld [vmem:[#allocation2 + $0xf78] sm:$0xff]  ;;  %v942_v31 = vpack.c.bf16 %v606_v13, %v582_v12 }
 0x1f0   :  { %3592 = vmatprep.mubr.bf16.mxu1 %v896_v15  ;;  %v559_v11 = vld [vmem:[#allocation2 + $0xeb0] sm:$0xff] }
 0x1f1   :  { %v5189_v37 = vpop.f32.mrb[80].mxu0  ;;  %v7269_v39 = vadd.f32 %v5282_v21, %v2902_v32  ;;  %v917_v32 = vpack.c.bf16 %v557_v35, %v533_v3  ;;  %v919_v29 = vpack.c.bf16 %v559_v11, %v535_v8 }
 0x1f2   :  { %v5283_v41 = vpop.f32.mrb[80].mxu1  ;;  %v5190_v42 = vpop.f32.mrb[81].mxu0 }
 0x1f3   :  { %v5191_v36 = vadd.f32 %v5190_v42, %v5189_v37  ;;  %v5284_v44 = vpop.f32.mrb[81].mxu1  ;;  %v5192_v53 = vpop.f32.mrb[82].mxu0 }
 0x1f4   :  { %v5285_v52 = vadd.f32 %v5284_v44, %v5283_v41  ;;  %v5286_v34 = vpop.f32.mrb[82].mxu1  ;;  %v5193_v55 = vpop.f32.mrb[83].mxu0  ;;  %v581_v44 = vld [vmem:[#allocation2 + $0xf60] sm:$0xff] }
 0x1f5   :  { %v2907_v62 = vadd.f32 %v5191_v36, %v7099_v4  ;;  %v5194_v59 = vadd.f32 %v5193_v55, %v5192_v53  ;;  %v5287_v60 = vpop.f32.mrb[83].mxu1  ;;  %v608_v4 = vld [vmem:[#allocation2 + $0x1038] sm:$0xff]  ;;  %v605_v53 = vld [vmem:[#allocation2 + $0x1020] sm:$0xff]  ;;  %v654_v55 = vld [vmem:[#allocation2 + $0x11a8] sm:$0xff] }
 0x1f6   :  { %v5288_v63 = vadd.f32 %v5287_v60, %v5286_v34  ;;  %3457 = vmatmul.mubr.bf16.gmra.mrb[188].mxu0 %v893_v1  ;;  %v944_v38 = vpack.c.bf16 %v608_v4, %v584_v27  ;;  %v630_v34 = vld [vmem:[#allocation2 + $0x10e8] sm:$0xff] }
 0x1f7   :  { %v2910_v2 = vadd.f32 %v5194_v59, %v7102_v7  ;;  %3593 = vmatmul.mubr.bf16.gmra.mrb[188].mxu1 %v895_v47  ;;  %3464 = vmatprep.mubr.bf16.mxu0 %v918_v51  ;;  %v7273_v10 = vadd.f32 %v5285_v52, %v2907_v62  ;;  %v583_v47 = vld [vmem:[#allocation2 + $0xf70] sm:$0xff]  ;;  %v632_v62 = vld [vmem:[#allocation2 + $0x10f8] sm:$0xff]  ;;  %v966_v11 = vpack.c.bf16 %v654_v55, %v630_v34 }
 0x1f8   :  { %3600 = vmatprep.mubr.bf16.mxu1 %v920_v57  ;;  %v607_v52 = vld [vmem:[#allocation2 + $0x1030] sm:$0xff] }
 0x1f9   :  { %v5195_v15 = vpop.f32.mrb[84].mxu0  ;;  %v7275_v19 = vadd.f32 %v5288_v63, %v2910_v2  ;;  %v941_v2 = vpack.c.bf16 %v605_v53, %v581_v44  ;;  %v943_v8 = vpack.c.bf16 %v607_v52, %v583_v47 }
 0x1fa   :  { %v5289_v20 = vpop.f32.mrb[84].mxu1  ;;  %v5196_v21 = vpop.f32.mrb[85].mxu0 }
 0x1fb   :  { %v5197_v7 = vadd.f32 %v5196_v21, %v5195_v15  ;;  %v5290_v22 = vpop.f32.mrb[85].mxu1  ;;  %v5198_v25 = vpop.f32.mrb[86].mxu0 }
 0x1fc   :  { %v5291_v61 = vadd.f32 %v5290_v22, %v5289_v20  ;;  %v5292_v33 = vpop.f32.mrb[86].mxu1  ;;  %v5199_v37 = vpop.f32.mrb[87].mxu0  ;;  %v629_v22 = vld [vmem:[#allocation2 + $0x10e0] sm:$0xff] }
 0x1fd   :  { %v2915_v26 = vadd.f32 %v5197_v7, %v7105_v40  ;;  %v5200_v41 = vadd.f32 %v5199_v37, %v5198_v25  ;;  %v5293_v42 = vpop.f32.mrb[87].mxu1  ;;  %v656_v40 = vld [vmem:[#allocation2 + $0x11b8] sm:$0xff]  ;;  %v653_v25 = vld [vmem:[#allocation2 + $0x11a0] sm:$0xff] }
 0x1fe   :  { %v5294_v1 = vadd.f32 %v5293_v42, %v5292_v33  ;;  %3465 = vmatmul.mubr.bf16.gmra.mrb[192].mxu0 %v917_v32  ;;  %v968_v27 = vpack.c.bf16 %v656_v40, %v632_v62  ;;  %v678_v33 = vld [vmem:[#allocation2 + $0x1268] sm:$0xff]  ;;  %v965_v42 = vpack.c.bf16 %v653_v25, %v629_v22 }
 0x1ff   :  { %v2918_v36 = vadd.f32 %v5200_v41, %v7108_v43  ;;  %3601 = vmatmul.mubr.bf16.gmra.mrb[192].mxu1 %v919_v29  ;;  %3472 = vmatprep.mubr.bf16.mxu0 %v942_v31  ;;  %v7279_v51 = vadd.f32 %v5291_v61, %v2915_v26  ;;  %v631_v31 = vld [vmem:[#allocation2 + $0x10f0] sm:$0xff]  ;;  %v990_v53 = vpack.c.bf16 %v678_v33, %v678_v33 }
 0x200   :  { %3608 = vmatprep.mubr.bf16.mxu1 %v944_v38  ;;  %v655_v61 = vld [vmem:[#allocation2 + $0x11b0] sm:$0xff]  ;;  %v680_v38 = vld [vmem:[#allocation2 + $0x1278] sm:$0xff] }
 0x201   :  { %v5201_v57 = vpop.f32.mrb[88].mxu0  ;;  %v7281_v59 = vadd.f32 %v5294_v1, %v2918_v36  ;;  %v967_v44 = vpack.c.bf16 %v655_v61, %v631_v31  ;;  %v992_v55 = vpack.c.bf16 %v680_v38, %v680_v38 }
 0x202   :  { %v5295_v60 = vpop.f32.mrb[88].mxu1  ;;  %v5202_v63 = vpop.f32.mrb[89].mxu0 }
 0x203   :  { %v5203_v43 = vadd.f32 %v5202_v63, %v5201_v57  ;;  %v5296_v3 = vpop.f32.mrb[89].mxu1  ;;  %v5204_v35 = vpop.f32.mrb[90].mxu0 }
 0x204   :  { %v5297_v12 = vadd.f32 %v5296_v3, %v5295_v60  ;;  %v5298_v13 = vpop.f32.mrb[90].mxu1  ;;  %v5205_v15 = vpop.f32.mrb[91].mxu0  ;;  %v679_v3 = vld [vmem:[#allocation2 + $0x1270] sm:$0xff] }
 0x205   :  { %v2923_v4 = vadd.f32 %v5203_v43, %v7111_v9  ;;  %v5206_v20 = vadd.f32 %v5205_v15, %v5204_v35  ;;  %v5299_v21 = vpop.f32.mrb[91].mxu1  ;;  %v106_v35 = vld [vmem:[#allocation2 + $0x88] sm:$0xff] }
 0x206   :  { %v5300_v32 = vadd.f32 %v5299_v21, %v5298_v13  ;;  %3473 = vmatmul.mubr.bf16.gmra.mrb[196].mxu0 %v941_v2  ;;  %v677_v2 = vld [vmem:[#allocation2 + $0x1260] sm:$0xff]  ;;  %v132_v13 = vld [vmem:[#allocation2 + $0x158] sm:$0xff] }
 0x207   :  { %v2926_v7 = vadd.f32 %v5206_v20, %v7114_v14  ;;  %3609 = vmatmul.mubr.bf16.gmra.mrb[196].mxu1 %v943_v8  ;;  %3480 = vmatprep.mubr.bf16.mxu0 %v966_v11  ;;  %v7285_v29 = vadd.f32 %v5297_v12, %v2923_v4  ;;  %v130_v8 = vld [vmem:[#allocation2 + $0x148] sm:$0xff]  ;;  %v108_v12 = vld [vmem:[#allocation2 + $0x98] sm:$0xff]  ;;  %v989_v4 = vpack.c.bf16 %v677_v2, %v677_v2 }
 0x208   :  { %3616 = vmatprep.mubr.bf16.mxu1 %v968_v27  ;;  %v708_v61 = vpack.c.bf16 %v132_v13, %v108_v12  ;;  %v6399_v12 = vld [vmem:[%s7897_s1 + $0x580] sm:$0xff]  }
 0x209   :  { %v5207_v37 = vpop.f32.mrb[92].mxu0  ;;  %v7287_v26 = vadd.f32 %v5300_v32, %v2926_v7  ;;  %v991_v32 = vpack.c.bf16 %v679_v3, %v679_v3  ;;  %v706_v7 = vpack.c.bf16 %v130_v8, %v106_v35  ;;  %v6397_v3 = vld [vmem:[%s7897_s1 + $0x500] sm:$0xff]  }
 0x20a   :  { %v5301_v9 = vpop.f32.mrb[92].mxu1  ;;  %v5208_v41 = vpop.f32.mrb[93].mxu0 }
 0x20b   :  { %v5209_v1 = vadd.f32 %v5208_v41, %v5207_v37  ;;  %v5302_v36 = vpop.f32.mrb[93].mxu1  ;;  %v5210_v14 = vpop.f32.mrb[94].mxu0 }
 0x20c   :  { %v5303_v47 = vadd.f32 %v5302_v36, %v5301_v9  ;;  %v5304_v52 = vpop.f32.mrb[94].mxu1  ;;  %v5211_v34 = vpop.f32.mrb[95].mxu0 }
 0x20d   :  { %v2931_v57 = vadd.f32 %v5209_v1, %v7119_v45  ;;  %v5212_v62 = vadd.f32 %v5211_v34, %v5210_v14  ;;  %v5305_v40 = vpop.f32.mrb[95].mxu1  ;;  %v129_v1 = vld [vmem:[#allocation2 + $0x140] sm:$0xff]  ;;  %v107_v14 = vld [vmem:[#allocation2 + $0x90] sm:$0xff] }
 0x20e   :  { %v5306_v60 = vadd.f32 %v5305_v40, %v5304_v52  ;;  %3481 = vmatmul.mubr.bf16.gmra.mrb[200].mxu0 %v965_v42  ;;  %v105_v42 = vld [vmem:[#allocation2 + $0x80] sm:$0xff]  ;;  %v178_v52 = vld [vmem:[#allocation2 + $0x2c8] sm:$0xff]  ;;  %v180_v40 = vld [vmem:[#allocation2 + $0x2d8] sm:$0xff] }
 0x20f   :  { %v2934_v63 = vadd.f32 %v5212_v62, %v7122_v50  ;;  %3617 = vmatmul.mubr.bf16.gmra.mrb[200].mxu1 %v967_v44  ;;  %3488 = vmatprep.mubr.bf16.mxu0 %v990_v53  ;;  %v7291_v43 = vadd.f32 %v5303_v47, %v2931_v57  ;;  %v131_v44 = vld [vmem:[#allocation2 + $0x150] sm:$0xff]  ;;  %v154_v47 = vld [vmem:[#allocation2 + $0x208] sm:$0xff]  ;;  %v705_v57 = vpack.c.bf16 %v129_v1, %v105_v42  ;;  %v156_v62 = vld [vmem:[#allocation2 + $0x218] sm:$0xff] }
 0x210   :  { %3624 = vmatprep.mubr.bf16.mxu1 %v992_v55  ;;  %v707_v2 = vpack.c.bf16 %v131_v44, %v107_v14  ;;  %v730_v13 = vpack.c.bf16 %v178_v52, %v154_v47  ;;  %v6406_v42 = vld [vmem:[%s7897_s1 + $0x5d0] sm:$0xff]  }
 0x211   :  { %v5213_v11 = vpop.f32.mrb[96].mxu0  ;;  %v7293_v15 = vadd.f32 %v5306_v60, %v2934_v63 }
 0x212   :  { %v5307_v45 = vpop.f32.mrb[96].mxu1  ;;  %v5214_v27 = vpop.f32.mrb[97].mxu0 }
 0x213   :  { %v5215_v20 = vadd.f32 %v5214_v27, %v5213_v11  ;;  %v5308_v21 = vpop.f32.mrb[97].mxu1  ;;  %v5216_v50 = vpop.f32.mrb[98].mxu0 }
 0x214   :  { %v5309_v22 = vadd.f32 %v5308_v21, %v5307_v45  ;;  %v5310_v25 = vpop.f32.mrb[98].mxu1  ;;  %v5217_v31 = vpop.f32.mrb[99].mxu0  ;;  %v6400_v21 = vld [vmem:[%s7897_s1 + $0x548] sm:$0xff]  }
 0x215   :  { %v2939_v33 = vadd.f32 %v5215_v20, %v7125_v17  ;;  %v5218_v37 = vadd.f32 %v5217_v31, %v5216_v50  ;;  %v5311_v38 = vpop.f32.mrb[99].mxu1  ;;  %v153_v20 = vld [vmem:[#allocation2 + $0x200] sm:$0xff] }
 0x216   :  { %v5312_v9 = vadd.f32 %v5311_v38, %v5310_v25  ;;  %3489 = vmatmul.mubr.bf16.gmra.mrb[204].mxu0 %v989_v4  ;;  %v732_v4 = vpack.c.bf16 %v180_v40, %v156_v62  ;;  %v177_v50 = vld [vmem:[#allocation2 + $0x2c0] sm:$0xff]  ;;  %v202_v25 = vld [vmem:[#allocation2 + $0x388] sm:$0xff] }
 0x217   :  { %v2942_v41 = vadd.f32 %v5218_v37, %v7128_v24  ;;  %3625 = vmatmul.mubr.bf16.gmra.mrb[204].mxu1 %v991_v32  ;;  %3664 = vmatprep.mubr.bf16.mxu0 %v706_v7  ;;  %v7297_v36 = vadd.f32 %v5309_v22, %v2939_v33  ;;  %v155_v32 = vld [vmem:[#allocation2 + $0x210] sm:$0xff]  ;;  %v6402_v7 = vld [vmem:[%s7897_s1 + $0x5c8] sm:$0xff]   ;;  %v729_v44 = vpack.c.bf16 %v177_v50, %v153_v20 }
 0x218   :  { %3800 = vmatprep.mubr.bf16.mxu1 %v708_v61  ;;  %v179_v22 = vld [vmem:[#allocation2 + $0x2d0] sm:$0xff]  ;;  %v226_v61 = vld [vmem:[#allocation2 + $0x448] sm:$0xff] }
 0x219   :  { %v5219_v53 = vpop.f32.mrb[100].mxu0  ;;  %v7299_v34 = vadd.f32 %v5312_v9, %v2942_v41  ;;  %v6403_v33 = vld [vmem:[%s7897_s1 + $0x588] sm:$0xff]   ;;  %v6404_v37 = vld [vmem:[%s7897_s1 + $0x550] sm:$0xff]   ;;  %v204_v9 = vld [vmem:[#allocation2 + $0x398] sm:$0xff] }
 0x21a   :  { %v5313_v17 = vpop.f32.mrb[100].mxu1  ;;  %v5220_v55 = vpop.f32.mrb[101].mxu0  ;;  %v228_v41 = vld [vmem:[#allocation2 + $0x458] sm:$0xff]  ;;  %v250_v20 = vld [vmem:[#allocation2 + $0x508] sm:$0xff] }
 0x21b   :  { %v5221_v24 = vadd.f32 %v5220_v55, %v5219_v53  ;;  %v5314_v60 = vpop.f32.mrb[101].mxu1  ;;  %v5222_v63 = vpop.f32.mrb[102].mxu0  ;;  %v754_v55 = vpack.c.bf16 %v226_v61, %v202_v25  ;;  %v274_v50 = vld [vmem:[#allocation2 + $0x5c8] sm:$0xff]  ;;  %v6412_v25 = vld [vmem:[%s7897_s1 + $0x560] sm:$0xff]  }
 0x21c   :  { %v5315_v35 = vadd.f32 %v5314_v60, %v5313_v17  ;;  %v5316_v8 = vpop.f32.mrb[102].mxu1  ;;  %v5223_v11 = vpop.f32.mrb[103].mxu0  ;;  %v731_v17 = vpack.c.bf16 %v179_v22, %v155_v32  ;;  %v6405_v60 = vld [vmem:[%s7897_s1 + $0x510] sm:$0xff]   ;;  %v252_v32 = vld [vmem:[#allocation2 + $0x518] sm:$0xff] }
 0x21d   :  { %v2947_v45 = vadd.f32 %v5221_v24, %v7143_v5  ;;  %v5317_v27 = vpop.f32.mrb[103].mxu1  ;;  %v6401_v5 = vld [vmem:[%s7897_s1 + $0x508] sm:$0xff]   ;;  %v756_v24 = vpack.c.bf16 %v228_v41, %v204_v9  ;;  %v6408_v8 = vld [vmem:[%s7897_s1 + $0x558] sm:$0xff]   ;;  %v6414_v9 = vld [vmem:[%s7897_s1 + $0x5e0] sm:$0xff]  }
 0x21e   :  { %3665 = vmatmul.mubr.bf16.vlgmr.msra.gmra.mrb[208].mxu0 %v705_v57  ;;  %v203_v27 = vld [vmem:[#allocation2 + $0x390] sm:$0xff] }
 0x21f   :  { %3801 = vmatmul.mubr.bf16.vlgmr.msra.gmra.mrb[208].mxu1 %v707_v2  ;;  %5884 = vmatpush3.bf16.msra.mxu0 %v6397_v3  ;;  %v7317_v31 = vadd.f32 %v5315_v35, %v2947_v45  ;;  %v6407_v35 = vld [vmem:[%s7897_s1 + $0x590] sm:$0xff]   ;;  %v6410_v45 = vld [vmem:[%s7897_s1 + $0x5d8] sm:$0xff]  }
 0x220   :  { %5978 = vmatpush3.bf16.msra.mxu1 %v6399_v12  ;;  %3672 = vmatprep.mubr.bf16.mxu0 %v730_v13  ;;  %v201_v12 = vld [vmem:[#allocation2 + $0x380] sm:$0xff] }
 0x221   :  { %v5335_v38 = vpop.f32.mrb[104].mxu0  ;;  %3808 = vmatprep.mubr.bf16.mxu1 %v732_v4  ;;  %5885 = vmatprep.subr.bf16.mxu0 %v6400_v21  ;;  %v225_v13 = vld [vmem:[#allocation2 + $0x440] sm:$0xff]  ;;  %v227_v4 = vld [vmem:[#allocation2 + $0x450] sm:$0xff] }
 0x222   :  { %v5429_v1 = vpop.f32.mrb[104].mxu1  ;;  %v5336_v14 = vpop.f32.mrb[105].mxu0  ;;  %5979 = vmatprep.subr.bf16.mxu1 %v6402_v7  ;;  %v6409_v7 = vld [vmem:[%s7897_s1 + $0x518] sm:$0xff]  }
 0x223   :  { %v5337_v53 = vadd.f32 %v5336_v14, %v5335_v38  ;;  %v5430_v47 = vpop.f32.mrb[105].mxu1  ;;  %v5338_v52 = vpop.f32.mrb[106].mxu0  ;;  %5886 = vmatpush3.bf16.msra.mxu0 %v6401_v5  ;;  %v276_v5 = vld [vmem:[#allocation2 + $0x5d8] sm:$0xff]  ;;  %v753_v38 = vpack.c.bf16 %v225_v13, %v201_v12  ;;  %v755_v14 = vpack.c.bf16 %v227_v4, %v203_v27  ;;  %v275_v12 = vld [vmem:[#allocation2 + $0x5d0] sm:$0xff]  ;;  %v298_v13 = vld [vmem:[#allocation2 + $0x688] sm:$0xff] }
 0x224   :  { %v5431_v57 = vadd.f32 %v5430_v47, %v5429_v1  ;;  %v5432_v62 = vpop.f32.mrb[106].mxu1  ;;  %v5339_v40 = vpop.f32.mrb[107].mxu0  ;;  %5980 = vmatpush3.bf16.msra.mxu1 %v6403_v33  ;;  %5887 = vmatprep.subr.bf16.mxu0 %v6404_v37  ;;  %v6417_v27 = vld [vmem:[%s7897_s1 + $0x528] sm:$0xff]  }
 0x225   :  { %v3123_v63 = vadd.f32 %v5337_v53, %v7170_v16  ;;  %v5340_v2 = vadd.f32 %v5339_v40, %v5338_v52  ;;  %v5433_v3 = vpop.f32.mrb[107].mxu1  ;;  %5981 = vmatprep.subr.bf16.mxu1 %v6406_v42 }
 0x226   :  { %v5434_v11 = vadd.f32 %v5433_v3, %v5432_v62  ;;  %3673 = vmatmul.mubr.bf16.gmra.mrb[212].mxu0 %v729_v44  ;;  %v778_v44 = vpack.c.bf16 %v274_v50, %v250_v20  ;;  %v273_v3 = vld [vmem:[#allocation2 + $0x5c0] sm:$0xff]  ;;  %v324_v50 = vld [vmem:[#allocation2 + $0x758] sm:$0xff] }
 0x227   :  { %v3126_v16 = vadd.f32 %v5340_v2, %v7176_v6  ;;  %3809 = vmatmul.mubr.bf16.gmra.mrb[212].mxu1 %v731_v17  ;;  %3680 = vmatprep.mubr.bf16.mxu0 %v754_v55  ;;  %v7342_v21 = vadd.f32 %v5431_v57, %v3123_v63  ;;  %v6411_v6 = vld [vmem:[%s7897_s1 + $0x598] sm:$0xff]   ;;  %v780_v17 = vpack.c.bf16 %v276_v5, %v252_v32  ;;  %v6413_v55 = vld [vmem:[%s7897_s1 + $0x520] sm:$0xff]   ;;  %v6420_v32 = vld [vmem:[%s7897_s1 + $0x570] sm:$0xff]  }
 0x228   :  { %3816 = vmatprep.mubr.bf16.mxu1 %v756_v24  ;;  %5888 = vmatpush3.bf16.msra.mxu0 %v6405_v60  ;;  %v6415_v24 = vld [vmem:[%s7897_s1 + $0x5a0] sm:$0xff]   ;;  %v6416_v60 = vld [vmem:[%s7897_s1 + $0x568] sm:$0xff]  }
 0x229   :  { %v5341_v22 = vpop.f32.mrb[108].mxu0  ;;  %5982 = vmatpush3.bf16.msra.mxu1 %v6407_v35  ;;  %5889 = vmatprep.subr.bf16.mxu0 %v6408_v8  ;;  %v7353_v61 = vadd.f32 %v5434_v11, %v3126_v16  ;;  %v249_v2 = vld [vmem:[#allocation2 + $0x500] sm:$0xff]  ;;  %v251_v11 = vld [vmem:[#allocation2 + $0x510] sm:$0xff]  ;;  %v300_v16 = vld [vmem:[#allocation2 + $0x698] sm:$0xff] }
 0x22a   :  { %v5435_v33 = vpop.f32.mrb[108].mxu1  ;;  %v5342_v37 = vpop.f32.mrb[109].mxu0  ;;  %5983 = vmatprep.subr.bf16.mxu1 %v6410_v45  ;;  %v322_v45 = vld [vmem:[#allocation2 + $0x748] sm:$0xff]  ;;  %v777_v5 = vpack.c.bf16 %v273_v3, %v249_v2  ;;  %v323_v2 = vld [vmem:[#allocation2 + $0x750] sm:$0xff] }
 0x22b   :  { %v5343_v41 = vadd.f32 %v5342_v37, %v5341_v22  ;;  %v5436_v42 = vpop.f32.mrb[109].mxu1  ;;  %v5344_v1 = vpop.f32.mrb[110].mxu0  ;;  %v346_v3 = vld [vmem:[#allocation2 + $0x808] sm:$0xff] }
 0x22c   :  { %v5437_v53 = vadd.f32 %v5436_v42, %v5435_v33  ;;  %v5438_v47 = vpop.f32.mrb[110].mxu1  ;;  %v5345_v52 = vpop.f32.mrb[111].mxu0  ;;  %5890 = vmatpush3.bf16.msra.mxu0 %v6409_v7 }
 0x22d   :  { %v3131_v57 = vadd.f32 %v5343_v41, %v7201_v54  ;;  %v5346_v62 = vadd.f32 %v5345_v52, %v5344_v1  ;;  %v5439_v40 = vpop.f32.mrb[111].mxu1  ;;  %5984 = vmatpush3.bf16.msra.mxu1 %v6411_v6  ;;  %5891 = vmatprep.subr.bf16.mxu0 %v6412_v25  ;;  %v6418_v54 = vld [vmem:[%s7897_s1 + $0x5e8] sm:$0xff]   ;;  %v6422_v6 = vld [vmem:[%s7897_s1 + $0x5f0] sm:$0xff]  }
 0x22e   :  { %v5440_v63 = vadd.f32 %v5439_v40, %v5438_v47  ;;  %3681 = vmatmul.mubr.bf16.gmra.mrb[216].mxu0 %v753_v38  ;;  %5985 = vmatprep.subr.bf16.mxu1 %v6414_v9  ;;  %v779_v38 = vpack.c.bf16 %v275_v12, %v251_v11  ;;  %v802_v9 = vpack.c.bf16 %v322_v45, %v298_v13  ;;  %v348_v13 = vld [vmem:[#allocation2 + $0x818] sm:$0xff] }
 0x22f   :  { %v7371_v35 = vadd.f32 %v5437_v53, %v3131_v57  ;;  %v3134_v8 = vadd.f32 %v5346_v62, %v7212_v0  ;;  %3817 = vmatmul.mubr.bf16.gmra.mrb[216].mxu1 %v755_v14  ;;  %3688 = vmatprep.mubr.bf16.mxu0 %v778_v44  ;;  %v6419_v0 = vld [vmem:[%s7897_s1 + $0x5a8] sm:$0xff]   ;;  %v804_v14 = vpack.c.bf16 %v324_v50, %v300_v16  ;;  %v6421_v44 = vld [vmem:[%s7897_s1 + $0x530] sm:$0xff]   ;;  %v297_v62 = vld [vmem:[#allocation2 + $0x680] sm:$0xff] }
 0x230   :  { %3824 = vmatprep.mubr.bf16.mxu1 %v780_v17  ;;  %5892 = vmatpush3.bf16.msra.mxu0 %v6413_v55  ;;  %v6423_v17 = vld [vmem:[%s7897_s1 + $0x5b0] sm:$0xff]   ;;  %v6424_v55 = vld [vmem:[%s7897_s1 + $0x578] sm:$0xff]  }
 0x231   :  { %v7377_v4 = vadd.f32 %v5440_v63, %v3134_v8  ;;  %v5347_v20 = vpop.f32.mrb[112].mxu0  ;;  %5986 = vmatpush3.bf16.msra.mxu1 %v6415_v24  ;;  %5893 = vmatprep.subr.bf16.mxu0 %v6416_v60  ;;  %v321_v60 = vld [vmem:[#allocation2 + $0x740] sm:$0xff]  ;;  %v299_v63 = vld [vmem:[#allocation2 + $0x690] sm:$0xff]  ;;  %v6425_v8 = vld [vmem:[%s7897_s1 + $0x538] sm:$0xff]  }
 0x232   :  { %v5441_v7 = vpop.f32.mrb[112].mxu1  ;;  %v5348_v22 = vpop.f32.mrb[113].mxu0  ;;  %5987 = vmatprep.subr.bf16.mxu1 %v6418_v54  ;;  %v370_v54 = vld [vmem:[#allocation2 + $0x8c8] sm:$0xff]  ;;  %v372_v45 = vld [vmem:[#allocation2 + $0x8d8] sm:$0xff] }
 0x233   :  { %v5349_v25 = vadd.f32 %v5348_v22, %v5347_v20  ;;  %v5442_v33 = vpop.f32.mrb[113].mxu1  ;;  %v5350_v37 = vpop.f32.mrb[114].mxu0  ;;  %v801_v20 = vpack.c.bf16 %v321_v60, %v297_v62  ;;  %v826_v22 = vpack.c.bf16 %v370_v54, %v346_v3  ;;  %v420_v62 = vld [vmem:[#allocation2 + $0xa58] sm:$0xff] }
 0x234   :  { %v5443_v41 = vadd.f32 %v5442_v33, %v5441_v7  ;;  %v5444_v42 = vpop.f32.mrb[114].mxu1  ;;  %v5351_v1 = vpop.f32.mrb[115].mxu0  ;;  %5894 = vmatpush3.bf16.msra.mxu0 %v6417_v27  ;;  %v803_v7 = vpack.c.bf16 %v323_v2, %v299_v63  ;;  %v828_v33 = vpack.c.bf16 %v372_v45, %v348_v13 }
 0x235   :  { %v3139_v53 = vadd.f32 %v5349_v25, %v7231_v46  ;;  %v5352_v47 = vadd.f32 %v5351_v1, %v5350_v37  ;;  %v5445_v52 = vpop.f32.mrb[115].mxu1  ;;  %5988 = vmatpush3.bf16.msra.mxu1 %v6419_v0  ;;  %5895 = vmatprep.subr.bf16.mxu0 %v6420_v32  ;;  %v6426_v46 = vld [vmem:[%s7897_s1 + $0x5f8] sm:$0xff]  }
 0x236   :  { %v5446_v57 = vadd.f32 %v5445_v52, %v5444_v42  ;;  %3689 = vmatmul.mubr.bf16.gmra.mrb[220].mxu0 %v777_v5  ;;  %5989 = vmatprep.subr.bf16.mxu1 %v6422_v6  ;;  %v394_v52 = vld [vmem:[#allocation2 + $0x988] sm:$0xff] }
 0x237   :  { %v7401_v40 = vadd.f32 %v5443_v41, %v3139_v53  ;;  %v3142_v24 = vadd.f32 %v5352_v47, %v7242_v56  ;;  %3825 = vmatmul.mubr.bf16.gmra.mrb[220].mxu1 %v779_v38  ;;  %3696 = vmatprep.mubr.bf16.mxu0 %v802_v9  ;;  %v6427_v56 = vld [vmem:[%s7897_s1 + $0x5b8] sm:$0xff]   ;;  %v347_v53 = vld [vmem:[#allocation2 + $0x810] sm:$0xff] }
 0x238   :  { %3832 = vmatprep.mubr.bf16.mxu1 %v804_v14  ;;  %5896 = vmatpush3.bf16.msra.mxu0 %v6421_v44  ;;  %v345_v14 = vld [vmem:[#allocation2 + $0x800] sm:$0xff]  ;;  %v371_v47 = vld [vmem:[#allocation2 + $0x8d0] sm:$0xff] }
 0x239   :  { %v7407_v11 = vadd.f32 %v5446_v57, %v3142_v24  ;;  %v5353_v12 = vpop.f32.mrb[116].mxu0  ;;  %5990 = vmatpush3.bf16.msra.mxu1 %v6423_v17  ;;  %5897 = vmatprep.subr.bf16.mxu0 %v6424_v55  ;;  %v369_v44 = vld [vmem:[#allocation2 + $0x8c0] sm:$0xff]  ;;  %v418_v17 = vld [vmem:[#allocation2 + $0xa48] sm:$0xff]  ;;  %v396_v57 = vld [vmem:[#allocation2 + $0x998] sm:$0xff]  ;;  %v827_v3 = vpack.c.bf16 %v371_v47, %v347_v53 }
 0x23a   :  { %v5447_v16 = vpop.f32.mrb[116].mxu1  ;;  %v5354_v27 = vpop.f32.mrb[117].mxu0  ;;  %5991 = vmatprep.subr.bf16.mxu1 %v6426_v46  ;;  %v825_v60 = vpack.c.bf16 %v369_v44, %v345_v14  ;;  %v850_v54 = vpack.c.bf16 %v418_v17, %v394_v52  ;;  %v852_v45 = vpack.c.bf16 %v420_v62, %v396_v57 }
 0x23b   :  { %v5355_v50 = vadd.f32 %v5354_v27, %v5353_v12  ;;  %v5448_v0 = vpop.f32.mrb[117].mxu1  ;;  %v5356_v32 = vpop.f32.mrb[118].mxu0 }
 0x23c   :  { %v5449_v5 = vadd.f32 %v5448_v0, %v5447_v16  ;;  %v5450_v6 = vpop.f32.mrb[118].mxu1  ;;  %v5357_v25 = vpop.f32.mrb[119].mxu0  ;;  %5898 = vmatpush3.bf16.msra.mxu0 %v6425_v8 }
 0x23d   :  { %v3147_v37 = vadd.f32 %v5355_v50, %v7249_v30  ;;  %v5358_v38 = vadd.f32 %v5357_v25, %v5356_v32  ;;  %v5451_v9 = vpop.f32.mrb[119].mxu1  ;;  %5992 = vmatpush3.bf16.msra.mxu1 %v6427_v56  ;;  %v393_v32 = vld [vmem:[#allocation2 + $0x980] sm:$0xff]  ;;  %v466_v25 = vld [vmem:[#allocation2 + $0xbc8] sm:$0xff] }
 0x23e   :  { %v5452_v41 = vadd.f32 %v5451_v9, %v5450_v6  ;;  %3697 = vmatmul.mubr.bf16.gmra.mrb[224].mxu0 %v801_v20  ;;  %v442_v6 = vld [vmem:[#allocation2 + $0xb08] sm:$0xff] }
 0x23f   :  { %v7413_v42 = vadd.f32 %v5449_v5, %v3147_v37  ;;  %v3150_v1 = vadd.f32 %v5358_v38, %v7251_v28  ;;  %3833 = vmatmul.mubr.bf16.gmra.mrb[224].mxu1 %v803_v7  ;;  %3704 = vmatprep.mubr.bf16.mxu0 %v826_v22  ;;  %v417_v7 = vld [vmem:[#allocation2 + $0xa40] sm:$0xff]  ;;  %v395_v22 = vld [vmem:[#allocation2 + $0x990] sm:$0xff]  ;;  %v444_v37 = vld [vmem:[#allocation2 + $0xb18] sm:$0xff]  ;;  %v874_v47 = vpack.c.bf16 %v466_v25, %v442_v6 }
 0x240   :  { %3840 = vmatprep.mubr.bf16.mxu1 %v828_v33  ;;  %v419_v5 = vld [vmem:[#allocation2 + $0xa50] sm:$0xff]  ;;  %v468_v38 = vld [vmem:[#allocation2 + $0xbd8] sm:$0xff] }
 0x241   :  { %v7416_v55 = vadd.f32 %v5452_v41, %v3150_v1  ;;  %v5359_v30 = vpop.f32.mrb[120].mxu0  ;;  %v849_v1 = vpack.c.bf16 %v417_v7, %v393_v32  ;;  %v851_v53 = vpack.c.bf16 %v419_v5, %v395_v22  ;;  %v876_v57 = vpack.c.bf16 %v468_v38, %v444_v37 }
 0x242   :  { %v5453_v46 = vpop.f32.mrb[120].mxu1  ;;  %v5360_v24 = vpop.f32.mrb[121].mxu0 }
 0x243   :  { %v5361_v63 = vadd.f32 %v5360_v24, %v5359_v30  ;;  %v5454_v2 = vpop.f32.mrb[121].mxu1  ;;  %v5362_v28 = vpop.f32.mrb[122].mxu0 }
 0x244   :  { %v5455_v8 = vadd.f32 %v5454_v2, %v5453_v46  ;;  %v5456_v12 = vpop.f32.mrb[122].mxu1  ;;  %v5363_v13 = vpop.f32.mrb[123].mxu0 }
 0x245   :  { %v3155_v56 = vadd.f32 %v5361_v63, %v7255_v23  ;;  %v5364_v16 = vadd.f32 %v5363_v13, %v5362_v28  ;;  %v5457_v27 = vpop.f32.mrb[123].mxu1  ;;  %v441_v28 = vld [vmem:[#allocation2 + $0xb00] sm:$0xff]  ;;  %v514_v13 = vld [vmem:[#allocation2 + $0xd48] sm:$0xff] }
 0x246   :  { %v5458_v20 = vadd.f32 %v5457_v27, %v5456_v12  ;;  %3705 = vmatmul.mubr.bf16.gmra.mrb[228].mxu0 %v825_v60  ;;  %v490_v12 = vld [vmem:[#allocation2 + $0xc88] sm:$0xff] }
 0x247   :  { %v7419_v50 = vadd.f32 %v5455_v8, %v3155_v56  ;;  %v3158_v0 = vadd.f32 %v5364_v16, %v7257_v18  ;;  %3841 = vmatmul.mubr.bf16.gmra.mrb[228].mxu1 %v827_v3  ;;  %3712 = vmatprep.mubr.bf16.mxu0 %v850_v54  ;;  %v465_v3 = vld [vmem:[#allocation2 + $0xbc0] sm:$0xff]  ;;  %v443_v54 = vld [vmem:[#allocation2 + $0xb10] sm:$0xff]  ;;  %v492_v56 = vld [vmem:[#allocation2 + $0xc98] sm:$0xff]  ;;  %v898_v5 = vpack.c.bf16 %v514_v13, %v490_v12 }
 0x248   :  { %3848 = vmatprep.mubr.bf16.mxu1 %v852_v45  ;;  %v467_v8 = vld [vmem:[#allocation2 + $0xbd0] sm:$0xff]  ;;  %v516_v16 = vld [vmem:[#allocation2 + $0xd58] sm:$0xff] }
 0x249   :  { %v7422_v33 = vadd.f32 %v5458_v20, %v3158_v0  ;;  %v5365_v23 = vpop.f32.mrb[124].mxu0  ;;  %v873_v0 = vpack.c.bf16 %v465_v3, %v441_v28  ;;  %v875_v22 = vpack.c.bf16 %v467_v8, %v443_v54  ;;  %v900_v37 = vpack.c.bf16 %v516_v16, %v492_v56 }
 0x24a   :  { %v5459_v9 = vpop.f32.mrb[124].mxu1  ;;  %v5366_v41 = vpop.f32.mrb[125].mxu0 }
 0x24b   :  { %v5367_v14 = vadd.f32 %v5366_v41, %v5365_v23  ;;  %v5460_v44 = vpop.f32.mrb[125].mxu1  ;;  %v5368_v18 = vpop.f32.mrb[126].mxu0 }
 0x24c   :  { %v5461_v52 = vadd.f32 %v5460_v44, %v5459_v9  ;;  %v5462_v17 = vpop.f32.mrb[126].mxu1  ;;  %v5369_v30 = vpop.f32.mrb[127].mxu0 }
 0x24d   :  { %v3163_v62 = vadd.f32 %v5367_v14, %v7261_v49  ;;  %v5370_v46 = vadd.f32 %v5369_v30, %v5368_v18  ;;  %v5463_v24 = vpop.f32.mrb[127].mxu1  ;;  %v489_v18 = vld [vmem:[#allocation2 + $0xc80] sm:$0xff]  ;;  %v562_v30 = vld [vmem:[#allocation2 + $0xec8] sm:$0xff] }
 0x24e   :  { %v5464_v60 = vadd.f32 %v5463_v24, %v5462_v17  ;;  %3713 = vmatmul.mubr.bf16.gmra.mrb[232].mxu0 %v849_v1  ;;  %v538_v17 = vld [vmem:[#allocation2 + $0xe08] sm:$0xff] }
 0x24f   :  { %v7425_v63 = vadd.f32 %v5461_v52, %v3163_v62  ;;  %v3166_v2 = vadd.f32 %v5370_v46, %v7263_v58  ;;  %3849 = vmatmul.mubr.bf16.gmra.mrb[232].mxu1 %v851_v53  ;;  %3720 = vmatprep.mubr.bf16.mxu0 %v874_v47  ;;  %v513_v53 = vld [vmem:[#allocation2 + $0xd40] sm:$0xff]  ;;  %v491_v47 = vld [vmem:[#allocation2 + $0xc90] sm:$0xff]  ;;  %v540_v62 = vld [vmem:[#allocation2 + $0xe18] sm:$0xff]  ;;  %v922_v8 = vpack.c.bf16 %v562_v30, %v538_v17 }
 0x250   :  { %3856 = vmatprep.mubr.bf16.mxu1 %v876_v57  ;;  %v515_v52 = vld [vmem:[#allocation2 + $0xd50] sm:$0xff]  ;;  %v564_v46 = vld [vmem:[#allocation2 + $0xed8] sm:$0xff] }
 0x251   :  { %v7428_v45 = vadd.f32 %v5464_v60, %v3166_v2  ;;  %v5371_v49 = vpop.f32.mrb[128].mxu0  ;;  %v897_v2 = vpack.c.bf16 %v513_v53, %v489_v18  ;;  %v899_v54 = vpack.c.bf16 %v515_v52, %v491_v47  ;;  %v924_v56 = vpack.c.bf16 %v564_v46, %v540_v62 }
 0x252   :  { %v5465_v27 = vpop.f32.mrb[128].mxu1  ;;  %v5372_v20 = vpop.f32.mrb[129].mxu0 }
 0x253   :  { %v5373_v32 = vadd.f32 %v5372_v20, %v5371_v49  ;;  %v5466_v7 = vpop.f32.mrb[129].mxu1  ;;  %v5374_v58 = vpop.f32.mrb[130].mxu0 }
 0x254   :  { %v5467_v6 = vadd.f32 %v5466_v7, %v5465_v27  ;;  %v5468_v25 = vpop.f32.mrb[130].mxu1  ;;  %v5375_v23 = vpop.f32.mrb[131].mxu0 }
 0x255   :  { %v3171_v38 = vadd.f32 %v5373_v32, %v7267_v48  ;;  %v5376_v9 = vadd.f32 %v5375_v23, %v5374_v58  ;;  %v5469_v41 = vpop.f32.mrb[131].mxu1  ;;  %v537_v58 = vld [vmem:[#allocation2 + $0xe00] sm:$0xff]  ;;  %v610_v23 = vld [vmem:[#allocation2 + $0x1048] sm:$0xff] }
 0x256   :  { %v5470_v1 = vadd.f32 %v5469_v41, %v5468_v25  ;;  %3721 = vmatmul.mubr.bf16.gmra.mrb[236].mxu0 %v873_v0  ;;  %v586_v25 = vld [vmem:[#allocation2 + $0xf88] sm:$0xff] }
 0x257   :  { %v7431_v14 = vadd.f32 %v5467_v6, %v3171_v38  ;;  %v3174_v44 = vadd.f32 %v5376_v9, %v7269_v39  ;;  %3857 = vmatmul.mubr.bf16.gmra.mrb[236].mxu1 %v875_v22  ;;  %3728 = vmatprep.mubr.bf16.mxu0 %v898_v5  ;;  %v561_v22 = vld [vmem:[#allocation2 + $0xec0] sm:$0xff]  ;;  %v539_v5 = vld [vmem:[#allocation2 + $0xe10] sm:$0xff]  ;;  %v588_v38 = vld [vmem:[#allocation2 + $0xf98] sm:$0xff]  ;;  %v946_v52 = vpack.c.bf16 %v610_v23, %v586_v25 }
 0x258   :  { %3864 = vmatprep.mubr.bf16.mxu1 %v900_v37  ;;  %v563_v6 = vld [vmem:[#allocation2 + $0xed0] sm:$0xff]  ;;  %v612_v9 = vld [vmem:[#allocation2 + $0x1058] sm:$0xff] }
 0x259   :  { %v7434_v57 = vadd.f32 %v5470_v1, %v3174_v44  ;;  %v5377_v48 = vpop.f32.mrb[132].mxu0  ;;  %v921_v44 = vpack.c.bf16 %v561_v22, %v537_v58  ;;  %v923_v47 = vpack.c.bf16 %v563_v6, %v539_v5  ;;  %v948_v62 = vpack.c.bf16 %v612_v9, %v588_v38 }
 0x25a   :  { %v5471_v24 = vpop.f32.mrb[132].mxu1  ;;  %v5378_v60 = vpop.f32.mrb[133].mxu0 }
 0x25b   :  { %v5379_v28 = vadd.f32 %v5378_v60, %v5377_v48  ;;  %v5472_v3 = vpop.f32.mrb[133].mxu1  ;;  %v5380_v39 = vpop.f32.mrb[134].mxu0 }
 0x25c   :  { %v5473_v12 = vadd.f32 %v5472_v3, %v5471_v24  ;;  %v5474_v13 = vpop.f32.mrb[134].mxu1  ;;  %v5381_v49 = vpop.f32.mrb[135].mxu0 }
 0x25d   :  { %v3179_v16 = vadd.f32 %v5379_v28, %v7273_v10  ;;  %v5382_v27 = vadd.f32 %v5381_v49, %v5380_v39  ;;  %v5475_v20 = vpop.f32.mrb[135].mxu1  ;;  %v585_v39 = vld [vmem:[#allocation2 + $0xf80] sm:$0xff]  ;;  %v658_v49 = vld [vmem:[#allocation2 + $0x11c8] sm:$0xff] }
 0x25e   :  { %v5476_v0 = vadd.f32 %v5475_v20, %v5474_v13  ;;  %3729 = vmatmul.mubr.bf16.gmra.mrb[240].mxu0 %v897_v2  ;;  %v634_v13 = vld [vmem:[#allocation2 + $0x1108] sm:$0xff] }
 0x25f   :  { %v7437_v32 = vadd.f32 %v5473_v12, %v3179_v16  ;;  %v3182_v7 = vadd.f32 %v5382_v27, %v7275_v19  ;;  %3865 = vmatmul.mubr.bf16.gmra.mrb[240].mxu1 %v899_v54  ;;  %3736 = vmatprep.mubr.bf16.mxu0 %v922_v8  ;;  %v609_v54 = vld [vmem:[#allocation2 + $0x1040] sm:$0xff]  ;;  %v587_v8 = vld [vmem:[#allocation2 + $0xf90] sm:$0xff]  ;;  %v636_v16 = vld [vmem:[#allocation2 + $0x1118] sm:$0xff]  ;;  %v970_v6 = vpack.c.bf16 %v658_v49, %v634_v13 }
 0x260   :  { %3872 = vmatprep.mubr.bf16.mxu1 %v924_v56  ;;  %v611_v12 = vld [vmem:[#allocation2 + $0x1050] sm:$0xff]  ;;  %v660_v27 = vld [vmem:[#allocation2 + $0x11d8] sm:$0xff] }
 0x261   :  { %v7440_v37 = vadd.f32 %v5476_v0, %v3182_v7  ;;  %v5383_v10 = vpop.f32.mrb[136].mxu0  ;;  %v945_v7 = vpack.c.bf16 %v609_v54, %v585_v39  ;;  %v947_v5 = vpack.c.bf16 %v611_v12, %v587_v8  ;;  %v972_v38 = vpack.c.bf16 %v660_v27, %v636_v16 }
 0x262   :  { %v5477_v41 = vpop.f32.mrb[136].mxu1  ;;  %v5384_v1 = vpop.f32.mrb[137].mxu0 }
 0x263   :  { %v5385_v18 = vadd.f32 %v5384_v1, %v5383_v10  ;;  %v5478_v53 = vpop.f32.mrb[137].mxu1  ;;  %v5386_v19 = vpop.f32.mrb[138].mxu0 }
 0x264   :  { %v5479_v17 = vadd.f32 %v5478_v53, %v5477_v41  ;;  %v5480_v30 = vpop.f32.mrb[138].mxu1  ;;  %v5387_v48 = vpop.f32.mrb[139].mxu0 }
 0x265   :  { %v3187_v46 = vadd.f32 %v5385_v18, %v7279_v51  ;;  %v5388_v24 = vadd.f32 %v5387_v48, %v5386_v19  ;;  %v5481_v60 = vpop.f32.mrb[139].mxu1  ;;  %v633_v19 = vld [vmem:[#allocation2 + $0x1100] sm:$0xff] }
 0x266   :  { %v5482_v2 = vadd.f32 %v5481_v60, %v5480_v30  ;;  %3737 = vmatmul.mubr.bf16.gmra.mrb[244].mxu0 %v921_v44  ;;  %v682_v30 = vld [vmem:[#allocation2 + $0x1288] sm:$0xff] }
 0x267   :  { %v7443_v28 = vadd.f32 %v5479_v17, %v3187_v46  ;;  %v3190_v3 = vadd.f32 %v5388_v24, %v7281_v59  ;;  %3873 = vmatmul.mubr.bf16.gmra.mrb[244].mxu1 %v923_v47  ;;  %3744 = vmatprep.mubr.bf16.mxu0 %v946_v52  ;;  %v657_v47 = vld [vmem:[#allocation2 + $0x11c0] sm:$0xff]  ;;  %v635_v52 = vld [vmem:[#allocation2 + $0x1110] sm:$0xff] }
 0x268   :  { %3880 = vmatprep.mubr.bf16.mxu1 %v948_v62  ;;  %v659_v17 = vld [vmem:[#allocation2 + $0x11d0] sm:$0xff]  ;;  %v969_v60 = vpack.c.bf16 %v657_v47, %v633_v19 }
 0x269   :  { %v7446_v56 = vadd.f32 %v5482_v2, %v3190_v3  ;;  %v5389_v51 = vpop.f32.mrb[140].mxu0  ;;  %v971_v54 = vpack.c.bf16 %v659_v17, %v635_v52 }
 0x26a   :  { %v5483_v20 = vpop.f32.mrb[140].mxu1  ;;  %v5390_v0 = vpop.f32.mrb[141].mxu0 }
 0x26b   :  { %v5391_v58 = vadd.f32 %v5390_v0, %v5389_v51  ;;  %v5484_v22 = vpop.f32.mrb[141].mxu1  ;;  %v5392_v59 = vpop.f32.mrb[142].mxu0 }
 0x26c   :  { %v5485_v25 = vadd.f32 %v5484_v22, %v5483_v20  ;;  %v5486_v23 = vpop.f32.mrb[142].mxu1  ;;  %v5393_v10 = vpop.f32.mrb[143].mxu0  ;;  %v683_v22 = vld [vmem:[#allocation2 + $0x1290] sm:$0xff] }
 0x26d   :  { %v3195_v9 = vadd.f32 %v5391_v58, %v7285_v29  ;;  %v5394_v41 = vadd.f32 %v5393_v10, %v5392_v59  ;;  %v5487_v1 = vpop.f32.mrb[143].mxu1  ;;  %v684_v29 = vld [vmem:[#allocation2 + $0x1298] sm:$0xff]  ;;  %v681_v58 = vld [vmem:[#allocation2 + $0x1280] sm:$0xff]  ;;  %v110_v59 = vld [vmem:[#allocation2 + $0xa8] sm:$0xff] }
 0x26e   :  { %v5488_v44 = vadd.f32 %v5487_v1, %v5486_v23  ;;  %3745 = vmatmul.mubr.bf16.gmra.mrb[248].mxu0 %v945_v7  ;;  %v996_v49 = vpack.c.bf16 %v684_v29, %v684_v29  ;;  %v112_v23 = vld [vmem:[#allocation2 + $0xb8] sm:$0xff] }
 0x26f   :  { %v7449_v18 = vadd.f32 %v5485_v25, %v3195_v9  ;;  %v3198_v53 = vadd.f32 %v5394_v41, %v7287_v26  ;;  %3881 = vmatmul.mubr.bf16.gmra.mrb[248].mxu1 %v947_v5  ;;  %3752 = vmatprep.mubr.bf16.mxu0 %v970_v6  ;;  %v994_v26 = vpack.c.bf16 %v682_v30, %v682_v30  ;;  %v134_v5 = vld [vmem:[#allocation2 + $0x168] sm:$0xff] }
 0x270   :  { %3888 = vmatprep.mubr.bf16.mxu1 %v972_v38  ;;  %v993_v9 = vpack.c.bf16 %v681_v58, %v681_v58 }
 0x271   :  { %v7452_v48 = vadd.f32 %v5488_v44, %v3198_v53  ;;  %v5395_v62 = vpop.f32.mrb[144].mxu0  ;;  %v995_v53 = vpack.c.bf16 %v683_v22, %v683_v22 }
 0x272   :  { %v5489_v46 = vpop.f32.mrb[144].mxu1  ;;  %v5396_v24 = vpop.f32.mrb[145].mxu0 }
 0x273   :  { %v5397_v2 = vadd.f32 %v5396_v24, %v5395_v62  ;;  %v5490_v3 = vpop.f32.mrb[145].mxu1  ;;  %v5398_v39 = vpop.f32.mrb[146].mxu0 }
 0x274   :  { %v5491_v8 = vadd.f32 %v5490_v3, %v5489_v46  ;;  %v5492_v12 = vpop.f32.mrb[146].mxu1  ;;  %v5399_v13 = vpop.f32.mrb[147].mxu0  ;;  %v133_v3 = vld [vmem:[#allocation2 + $0x160] sm:$0xff] }
 0x275   :  { %v3203_v51 = vadd.f32 %v5397_v2, %v7291_v43  ;;  %v5400_v16 = vadd.f32 %v5399_v13, %v5398_v39  ;;  %v5493_v27 = vpop.f32.mrb[147].mxu1  ;;  %v136_v43 = vld [vmem:[#allocation2 + $0x178] sm:$0xff]  ;;  %v109_v2 = vld [vmem:[#allocation2 + $0xa0] sm:$0xff]  ;;  %v111_v39 = vld [vmem:[#allocation2 + $0xb0] sm:$0xff] }
 0x276   :  { %v5494_v20 = vadd.f32 %v5493_v27, %v5492_v12  ;;  %3753 = vmatmul.mubr.bf16.gmra.mrb[252].mxu0 %v969_v60  ;;  %v712_v17 = vpack.c.bf16 %v136_v43, %v112_v23  ;;  %v160_v13 = vld [vmem:[#allocation2 + $0x238] sm:$0xff]  ;;  %v709_v27 = vpack.c.bf16 %v133_v3, %v109_v2 }
 0x277   :  { %v7455_v0 = vadd.f32 %v5491_v8, %v3203_v51  ;;  %v3206_v7 = vadd.f32 %v5400_v16, %v7293_v15  ;;  %3889 = vmatmul.mubr.bf16.gmra.mrb[252].mxu1 %v971_v54  ;;  %3760 = vmatprep.mubr.bf16.mxu0 %v994_v26  ;;  %v710_v15 = vpack.c.bf16 %v134_v5, %v110_v59  ;;  %v135_v54 = vld [vmem:[#allocation2 + $0x170] sm:$0xff]  ;;  %v158_v26 = vld [vmem:[#allocation2 + $0x228] sm:$0xff] }
 0x278   :  { %3896 = vmatprep.mubr.bf16.mxu1 %v996_v49  ;;  %v182_v8 = vld [vmem:[#allocation2 + $0x2e8] sm:$0xff]  ;;  %v184_v49 = vld [vmem:[#allocation2 + $0x2f8] sm:$0xff]  ;;  %v711_v22 = vpack.c.bf16 %v135_v54, %v111_v39 }
 0x279   :  { %v7458_v6 = vadd.f32 %v5494_v20, %v3206_v7  ;;  %v5401_v25 = vpop.f32.mrb[148].mxu0  ;;  %v6562_v20 = vmov 0.0   ;;  %v734_v59 = vpack.c.bf16 %v182_v8, %v158_v26  ;;  %v736_v43 = vpack.c.bf16 %v184_v49, %v160_v13 }
 0x27a   :  { %v5495_v10 = vpop.f32.mrb[148].mxu1  ;;  %v5402_v38 = vpop.f32.mrb[149].mxu0  ;;  %6105 = vmatprep.subr.bf16.mxu0 %v6562_v20  ;;  %6165 = vmatprep.subr.bf16.mxu1 %v6562_v20 }
 0x27b   :  { %v5403_v41 = vadd.f32 %v5402_v38, %v5401_v25  ;;  %v5496_v1 = vpop.f32.mrb[149].mxu1  ;;  %v5404_v44 = vpop.f32.mrb[150].mxu0 }
 0x27c   :  { %v5497_v19 = vadd.f32 %v5496_v1, %v5495_v10  ;;  %v5498_v47 = vpop.f32.mrb[150].mxu1  ;;  %v5405_v52 = vpop.f32.mrb[151].mxu0  ;;  %v6428_v10 = vld [vmem:[#allocation6] sm:$0xff]  }
 0x27d   :  { %v3211_v30 = vadd.f32 %v5403_v41, %v7297_v36  ;;  %v5406_v62 = vadd.f32 %v5405_v52, %v5404_v44  ;;  %v5499_v29 = vpop.f32.mrb[151].mxu1  ;;  %v157_v1 = vld [vmem:[#allocation2 + $0x220] sm:$0xff] }
 0x27e   :  { %v5500_v46 = vadd.f32 %v5499_v29, %v5498_v47  ;;  %3761 = vmatmul.mubr.bf16.gmra.mrb[0].mxu0 %v993_v9  ;;  %v181_v44 = vld [vmem:[#allocation2 + $0x2e0] sm:$0xff]  ;;  %v230_v47 = vld [vmem:[#allocation2 + $0x468] sm:$0xff] }
 0x27f   :  { %v7461_v24 = vadd.f32 %v5497_v19, %v3211_v30  ;;  %v3214_v60 = vadd.f32 %v5406_v62, %v7299_v34  ;;  %3897 = vmatmul.mubr.bf16.gmra.mrb[0].mxu1 %v995_v53  ;;  %3936 = vmatprep.mubr.bf16.mxu0 %v710_v15  ;;  %v159_v53 = vld [vmem:[#allocation2 + $0x230] sm:$0xff]  ;;  %v206_v19 = vld [vmem:[#allocation2 + $0x3a8] sm:$0xff]  ;;  %v232_v30 = vld [vmem:[#allocation2 + $0x478] sm:$0xff]  ;;  %v733_v29 = vpack.c.bf16 %v181_v44, %v157_v1 }
 0x280   :  { %4072 = vmatprep.mubr.bf16.mxu1 %v712_v17  ;;  %v183_v15 = vld [vmem:[#allocation2 + $0x2f0] sm:$0xff]  ;;  %v208_v17 = vld [vmem:[#allocation2 + $0x3b8] sm:$0xff]  ;;  %v758_v39 = vpack.c.bf16 %v230_v47, %v206_v19 }
 0x281   :  { %v7464_v12 = vadd.f32 %v5500_v46, %v3214_v60  ;;  %v5407_v36 = vpop.f32.mrb[152].mxu0  ;;  %v735_v3 = vpack.c.bf16 %v183_v15, %v159_v53 }
 0x282   :  { %v5501_v51 = vpop.f32.mrb[152].mxu1  ;;  %v5408_v16 = vpop.f32.mrb[153].mxu0 }
 0x283   :  { %v5409_v34 = vadd.f32 %v5408_v16, %v5407_v36  ;;  %v5502_v7 = vpop.f32.mrb[153].mxu1  ;;  %v5410_v58 = vpop.f32.mrb[154].mxu0  ;;  %v760_v36 = vpack.c.bf16 %v232_v30, %v208_v17 }
 0x284   :  { %v5503_v5 = vadd.f32 %v5502_v7, %v5501_v51  ;;  %v5504_v25 = vpop.f32.mrb[154].mxu1  ;;  %v5411_v23 = vpop.f32.mrb[155].mxu0  ;;  %v205_v7 = vld [vmem:[#allocation2 + $0x3a0] sm:$0xff] }
 0x285   :  { %v3219_v38 = vadd.f32 %v5409_v34, %v7317_v31  ;;  %v5505_v9 = vpop.f32.mrb[155].mxu1  ;;  %v229_v58 = vld [vmem:[#allocation2 + $0x460] sm:$0xff]  ;;  %v278_v25 = vld [vmem:[#allocation2 + $0x5e8] sm:$0xff] }
 0x286   :  { %3937 = vmatmul.mubr.bf16.vlgmr.msra.gmra.mrb[4].mxu0 %v709_v27  ;;  %v757_v1 = vpack.c.bf16 %v229_v58, %v205_v7 }
 0x287   :  { %v7469_v41 = vadd.f32 %v5503_v5, %v3219_v38  ;;  %4073 = vmatmul.mubr.bf16.vlgmr.msra.gmra.mrb[4].mxu1 %v711_v22  ;;  %3944 = vmatprep.mubr.bf16.mxu0 %v734_v59  ;;  %v207_v22 = vld [vmem:[#allocation2 + $0x3b0] sm:$0xff]  ;;  %v254_v5 = vld [vmem:[#allocation2 + $0x528] sm:$0xff] }
 0x288   :  { %4080 = vmatprep.mubr.bf16.mxu1 %v736_v43  ;;  %6106 = vmatpush3.bf16.msra.mxu0 %v6428_v10  ;;  %v231_v59 = vld [vmem:[#allocation2 + $0x470] sm:$0xff]  ;;  %v256_v43 = vld [vmem:[#allocation2 + $0x538] sm:$0xff]  ;;  %v782_v19 = vpack.c.bf16 %v278_v25, %v254_v5 }
 0x289   :  { %v5523_v52 = vpop.f32.mrb[156].mxu0  ;;  %6107 = vmatprep.subr.bf16.mxu0 %v6562_v20  ;;  %v280_v10 = vld [vmem:[#allocation2 + $0x5f8] sm:$0xff]  ;;  %v759_v15 = vpack.c.bf16 %v231_v59, %v207_v22 }
 0x28a   :  { %v5617_v31 = vpop.f32.mrb[156].mxu1  ;;  %v5524_v62 = vpop.f32.mrb[157].mxu0  ;;  %v784_v30 = vpack.c.bf16 %v280_v10, %v256_v43 }
 0x28b   :  { %v5525_v46 = vadd.f32 %v5524_v62, %v5523_v52  ;;  %v5618_v60 = vpop.f32.mrb[157].mxu1  ;;  %v5526_v2 = vpop.f32.mrb[158].mxu0 }
 0x28c   :  { %v5619_v54 = vadd.f32 %v5618_v60, %v5617_v31  ;;  %v5620_v26 = vpop.f32.mrb[158].mxu1  ;;  %v5527_v8 = vpop.f32.mrb[159].mxu0 }
 0x28d   :  { %v3395_v13 = vadd.f32 %v5525_v46, %v7342_v21  ;;  %v5528_v49 = vadd.f32 %v5527_v8, %v5526_v2  ;;  %v5621_v51 = vpop.f32.mrb[159].mxu1  ;;  %v302_v8 = vld [vmem:[#allocation2 + $0x6a8] sm:$0xff] }
 0x28e   :  { %v5622_v16 = vadd.f32 %v5621_v51, %v5620_v26  ;;  %3945 = vmatmul.mubr.bf16.gmra.mrb[8].mxu0 %v733_v29  ;;  %v279_v26 = vld [vmem:[#allocation2 + $0x5f0] sm:$0xff]  ;;  %v328_v51 = vld [vmem:[#allocation2 + $0x778] sm:$0xff] }
 0x28f   :  { %v7473_v27 = vadd.f32 %v5619_v54, %v3395_v13  ;;  %v3398_v34 = vadd.f32 %v5528_v49, %v7353_v61  ;;  %4081 = vmatmul.mubr.bf16.gmra.mrb[8].mxu1 %v735_v3  ;;  %3952 = vmatprep.mubr.bf16.mxu0 %v758_v39  ;;  %v253_v3 = vld [vmem:[#allocation2 + $0x520] sm:$0xff]  ;;  %v255_v54 = vld [vmem:[#allocation2 + $0x530] sm:$0xff]  ;;  %v304_v49 = vld [vmem:[#allocation2 + $0x6b8] sm:$0xff] }
 0x290   :  { %4088 = vmatprep.mubr.bf16.mxu1 %v760_v36  ;;  %v277_v39 = vld [vmem:[#allocation2 + $0x5e0] sm:$0xff]  ;;  %v326_v36 = vld [vmem:[#allocation2 + $0x768] sm:$0xff]  ;;  %v783_v59 = vpack.c.bf16 %v279_v26, %v255_v54  ;;  %v808_v10 = vpack.c.bf16 %v328_v51, %v304_v49 }
 0x291   :  { %v7476_v23 = vadd.f32 %v5622_v16, %v3398_v34  ;;  %v5529_v21 = vpop.f32.mrb[160].mxu0  ;;  %v781_v7 = vpack.c.bf16 %v277_v39, %v253_v3  ;;  %v806_v5 = vpack.c.bf16 %v326_v36, %v302_v8 }
 0x292   :  { %v5623_v38 = vpop.f32.mrb[160].mxu1  ;;  %v5530_v9 = vpop.f32.mrb[161].mxu0 }
 0x293   :  { %v5531_v44 = vadd.f32 %v5530_v9, %v5529_v21  ;;  %v5624_v53 = vpop.f32.mrb[161].mxu1  ;;  %v5532_v61 = vpop.f32.mrb[162].mxu0 }
 0x294   :  { %v5625_v47 = vadd.f32 %v5624_v53, %v5623_v38  ;;  %v5626_v52 = vpop.f32.mrb[162].mxu1  ;;  %v5533_v17 = vpop.f32.mrb[163].mxu0  ;;  %v301_v53 = vld [vmem:[#allocation2 + $0x6a0] sm:$0xff] }
 0x295   :  { %v3403_v31 = vadd.f32 %v5531_v44, %v7371_v35  ;;  %v5534_v62 = vadd.f32 %v5533_v17, %v5532_v61  ;;  %v5627_v29 = vpop.f32.mrb[163].mxu1  ;;  %v327_v17 = vld [vmem:[#allocation2 + $0x770] sm:$0xff] }
 0x296   :  { %v5628_v46 = vadd.f32 %v5627_v29, %v5626_v52  ;;  %3953 = vmatmul.mubr.bf16.gmra.mrb[12].mxu0 %v757_v1  ;;  %v6429_v52 = vld [vmem:[#allocation6 + $0x8] sm:$0xff]   ;;  %v352_v29 = vld [vmem:[#allocation2 + $0x838] sm:$0xff] }
 0x297   :  { %v7479_v60 = vadd.f32 %v5625_v47, %v3403_v31  ;;  %v3406_v2 = vadd.f32 %v5534_v62, %v7377_v4  ;;  %4089 = vmatmul.mubr.bf16.gmra.mrb[12].mxu1 %v759_v15  ;;  %3960 = vmatprep.mubr.bf16.mxu0 %v782_v19  ;;  %v325_v19 = vld [vmem:[#allocation2 + $0x760] sm:$0xff]  ;;  %v303_v47 = vld [vmem:[#allocation2 + $0x6b0] sm:$0xff]  ;;  %v374_v31 = vld [vmem:[#allocation2 + $0x8e8] sm:$0xff] }
 0x298   :  { %4096 = vmatprep.mubr.bf16.mxu1 %v784_v30  ;;  %v350_v30 = vld [vmem:[#allocation2 + $0x828] sm:$0xff]  ;;  %6108 = vmatpush3.bf16.msra.mxu0 %v6429_v52  ;;  %v805_v39 = vpack.c.bf16 %v325_v19, %v301_v53  ;;  %v807_v8 = vpack.c.bf16 %v327_v17, %v303_v47 }
 0x299   :  { %v7482_v13 = vadd.f32 %v5628_v46, %v3406_v2  ;;  %v5535_v35 = vpop.f32.mrb[164].mxu0  ;;  %v376_v46 = vld [vmem:[#allocation2 + $0x8f8] sm:$0xff]  ;;  %6109 = vmatprep.subr.bf16.mxu0 %v6562_v20  ;;  %v830_v36 = vpack.c.bf16 %v374_v31, %v350_v30 }
 0x29a   :  { %v5629_v16 = vpop.f32.mrb[164].mxu1  ;;  %v5536_v34 = vpop.f32.mrb[165].mxu0 }
 0x29b   :  { %v5537_v58 = vadd.f32 %v5536_v34, %v5535_v35  ;;  %v5630_v22 = vpop.f32.mrb[165].mxu1  ;;  %v5538_v4 = vpop.f32.mrb[166].mxu0 }
 0x29c   :  { %v5631_v25 = vadd.f32 %v5630_v22, %v5629_v16  ;;  %v5632_v21 = vpop.f32.mrb[166].mxu1  ;;  %v5539_v43 = vpop.f32.mrb[167].mxu0  ;;  %v832_v16 = vpack.c.bf16 %v376_v46, %v352_v29 }
 0x29d   :  { %v3411_v38 = vadd.f32 %v5537_v58, %v7401_v40  ;;  %v5540_v9 = vadd.f32 %v5539_v43, %v5538_v4  ;;  %v5633_v1 = vpop.f32.mrb[167].mxu1  ;;  %v375_v43 = vld [vmem:[#allocation2 + $0x8f0] sm:$0xff] }
 0x29e   :  { %v5634_v44 = vadd.f32 %v5633_v1, %v5632_v21  ;;  %3961 = vmatmul.mubr.bf16.gmra.mrb[16].mxu0 %v781_v7  ;;  %v351_v21 = vld [vmem:[#allocation2 + $0x830] sm:$0xff]  ;;  %v400_v1 = vld [vmem:[#allocation2 + $0x9b8] sm:$0xff] }
 0x29f   :  { %v7485_v61 = vadd.f32 %v5631_v25, %v3411_v38  ;;  %v3414_v15 = vadd.f32 %v5540_v9, %v7407_v11  ;;  %4097 = vmatmul.mubr.bf16.gmra.mrb[16].mxu1 %v783_v59  ;;  %3968 = vmatprep.mubr.bf16.mxu0 %v806_v5  ;;  %v349_v5 = vld [vmem:[#allocation2 + $0x820] sm:$0xff]  ;;  %v422_v38 = vld [vmem:[#allocation2 + $0xa68] sm:$0xff]  ;;  %v831_v17 = vpack.c.bf16 %v375_v43, %v351_v21 }
 0x2a0   :  { %4104 = vmatprep.mubr.bf16.mxu1 %v808_v10  ;;  %v373_v25 = vld [vmem:[#allocation2 + $0x8e0] sm:$0xff]  ;;  %v398_v10 = vld [vmem:[#allocation2 + $0x9a8] sm:$0xff] }
 0x2a1   :  { %v7488_v62 = vadd.f32 %v5634_v44, %v3414_v15  ;;  %v5541_v40 = vpop.f32.mrb[168].mxu0  ;;  %v424_v44 = vld [vmem:[#allocation2 + $0xa78] sm:$0xff]  ;;  %v829_v19 = vpack.c.bf16 %v373_v25, %v349_v5  ;;  %v854_v30 = vpack.c.bf16 %v422_v38, %v398_v10 }
 0x2a2   :  { %v5635_v2 = vpop.f32.mrb[168].mxu1  ;;  %v5542_v3 = vpop.f32.mrb[169].mxu0  ;;  %v856_v46 = vpack.c.bf16 %v424_v44, %v400_v1 }
 0x2a3   :  { %v5543_v11 = vadd.f32 %v5542_v3, %v5541_v40  ;;  %v5636_v54 = vpop.f32.mrb[169].mxu1  ;;  %v5544_v26 = vpop.f32.mrb[170].mxu0 }
 0x2a4   :  { %v5637_v35 = vadd.f32 %v5636_v54, %v5635_v2  ;;  %v5638_v49 = vpop.f32.mrb[170].mxu1  ;;  %v5545_v51 = vpop.f32.mrb[171].mxu0 }
 0x2a5   :  { %v3419_v34 = vadd.f32 %v5543_v11, %v7413_v42  ;;  %v5546_v7 = vadd.f32 %v5545_v51, %v5544_v26  ;;  %v5639_v58 = vpop.f32.mrb[171].mxu1  ;;  %v446_v51 = vld [vmem:[#allocation2 + $0xb28] sm:$0xff] }
 0x2a6   :  { %v5640_v22 = vadd.f32 %v5639_v58, %v5638_v49  ;;  %3969 = vmatmul.mubr.bf16.gmra.mrb[20].mxu0 %v805_v39  ;;  %v423_v49 = vld [vmem:[#allocation2 + $0xa70] sm:$0xff]  ;;  %v472_v58 = vld [vmem:[#allocation2 + $0xbf8] sm:$0xff] }
 0x2a7   :  { %v7492_v4 = vadd.f32 %v5637_v35, %v3419_v34  ;;  %v3422_v59 = vadd.f32 %v5546_v7, %v7416_v55  ;;  %4105 = vmatmul.mubr.bf16.gmra.mrb[20].mxu1 %v807_v8  ;;  %3976 = vmatprep.mubr.bf16.mxu0 %v830_v36  ;;  %v397_v8 = vld [vmem:[#allocation2 + $0x9a0] sm:$0xff]  ;;  %v399_v35 = vld [vmem:[#allocation2 + $0x9b0] sm:$0xff]  ;;  %v448_v7 = vld [vmem:[#allocation2 + $0xb38] sm:$0xff] }
 0x2a8   :  { %4112 = vmatprep.mubr.bf16.mxu1 %v832_v16  ;;  %v421_v36 = vld [vmem:[#allocation2 + $0xa60] sm:$0xff]  ;;  %v470_v16 = vld [vmem:[#allocation2 + $0xbe8] sm:$0xff]  ;;  %v855_v43 = vpack.c.bf16 %v423_v49, %v399_v35  ;;  %v880_v44 = vpack.c.bf16 %v472_v58, %v448_v7 }
 0x2a9   :  { %v7495_v9 = vadd.f32 %v5640_v22, %v3422_v59  ;;  %v5547_v42 = vpop.f32.mrb[172].mxu0  ;;  %v853_v5 = vpack.c.bf16 %v421_v36, %v397_v8  ;;  %v878_v10 = vpack.c.bf16 %v470_v16, %v446_v51 }
 0x2aa   :  { %v5641_v53 = vpop.f32.mrb[172].mxu1  ;;  %v5548_v15 = vpop.f32.mrb[173].mxu0 }
 0x2ab   :  { %v5549_v47 = vadd.f32 %v5548_v15, %v5547_v42  ;;  %v5642_v52 = vpop.f32.mrb[173].mxu1  ;;  %v5550_v55 = vpop.f32.mrb[174].mxu0 }
 0x2ac   :  { %v5643_v31 = vadd.f32 %v5642_v52, %v5641_v53  ;;  %v5644_v40 = vpop.f32.mrb[174].mxu1  ;;  %v5551_v29 = vpop.f32.mrb[175].mxu0 }
 0x2ad   :  { %v3427_v2 = vadd.f32 %v5549_v47, %v7419_v50  ;;  %v5552_v3 = vadd.f32 %v5551_v29, %v5550_v55  ;;  %v5645_v39 = vpop.f32.mrb[175].mxu1  ;;  %v494_v29 = vld [vmem:[#allocation2 + $0xca8] sm:$0xff] }
 0x2ae   :  { %v5646_v11 = vadd.f32 %v5645_v39, %v5644_v40  ;;  %3977 = vmatmul.mubr.bf16.gmra.mrb[24].mxu0 %v829_v19  ;;  %v471_v40 = vld [vmem:[#allocation2 + $0xbf0] sm:$0xff]  ;;  %v520_v39 = vld [vmem:[#allocation2 + $0xd78] sm:$0xff] }
 0x2af   :  { %v7498_v54 = vadd.f32 %v5643_v31, %v3427_v2  ;;  %v3430_v26 = vadd.f32 %v5552_v3, %v7422_v33  ;;  %4113 = vmatmul.mubr.bf16.gmra.mrb[24].mxu1 %v831_v17  ;;  %3984 = vmatprep.mubr.bf16.mxu0 %v854_v30  ;;  %v445_v17 = vld [vmem:[#allocation2 + $0xb20] sm:$0xff]  ;;  %v447_v31 = vld [vmem:[#allocation2 + $0xb30] sm:$0xff]  ;;  %v496_v3 = vld [vmem:[#allocation2 + $0xcb8] sm:$0xff] }
 0x2b0   :  { %4120 = vmatprep.mubr.bf16.mxu1 %v856_v46  ;;  %v469_v30 = vld [vmem:[#allocation2 + $0xbe0] sm:$0xff]  ;;  %v518_v46 = vld [vmem:[#allocation2 + $0xd68] sm:$0xff]  ;;  %v879_v51 = vpack.c.bf16 %v471_v40, %v447_v31 }
 0x2b1   :  { %v7501_v34 = vadd.f32 %v5646_v11, %v3430_v26  ;;  %v5553_v50 = vpop.f32.mrb[176].mxu0  ;;  %v6430_v11 = vld [vmem:[#allocation6 + $0x10] sm:$0xff]   ;;  %v877_v36 = vpack.c.bf16 %v469_v30, %v445_v17  ;;  %v902_v16 = vpack.c.bf16 %v518_v46, %v494_v29 }
 0x2b2   :  { %v5647_v22 = vpop.f32.mrb[176].mxu1  ;;  %v5554_v59 = vpop.f32.mrb[177].mxu0  ;;  %6110 = vmatpush3.bf16.msra.mxu0 %v6430_v11 }
 0x2b3   :  { %v5555_v25 = vadd.f32 %v5554_v59, %v5553_v50  ;;  %v5648_v21 = vpop.f32.mrb[177].mxu1  ;;  %v5556_v33 = vpop.f32.mrb[178].mxu0  ;;  %6111 = vmatprep.subr.bf16.mxu0 %v6562_v20 }
 0x2b4   :  { %v5649_v38 = vadd.f32 %v5648_v21, %v5647_v22  ;;  %v5650_v42 = vpop.f32.mrb[178].mxu1  ;;  %v5557_v1 = vpop.f32.mrb[179].mxu0  ;;  %v904_v22 = vpack.c.bf16 %v520_v39, %v496_v3 }
 0x2b5   :  { %v3435_v53 = vadd.f32 %v5555_v25, %v7425_v63  ;;  %v5558_v15 = vadd.f32 %v5557_v1, %v5556_v33  ;;  %v5651_v19 = vpop.f32.mrb[179].mxu1  ;;  %v519_v1 = vld [vmem:[#allocation2 + $0xd70] sm:$0xff] }
 0x2b6   :  { %v5652_v47 = vadd.f32 %v5651_v19, %v5650_v42  ;;  %3985 = vmatmul.mubr.bf16.gmra.mrb[28].mxu0 %v853_v5  ;;  %v495_v42 = vld [vmem:[#allocation2 + $0xcb0] sm:$0xff]  ;;  %v544_v19 = vld [vmem:[#allocation2 + $0xe38] sm:$0xff] }
 0x2b7   :  { %v7504_v52 = vadd.f32 %v5649_v38, %v3435_v53  ;;  %v3438_v55 = vadd.f32 %v5558_v15, %v7428_v45  ;;  %4121 = vmatmul.mubr.bf16.gmra.mrb[28].mxu1 %v855_v43  ;;  %3992 = vmatprep.mubr.bf16.mxu0 %v878_v10  ;;  %v493_v10 = vld [vmem:[#allocation2 + $0xca0] sm:$0xff]  ;;  %v566_v53 = vld [vmem:[#allocation2 + $0xee8] sm:$0xff]  ;;  %v903_v29 = vpack.c.bf16 %v519_v1, %v495_v42 }
 0x2b8   :  { %4128 = vmatprep.mubr.bf16.mxu1 %v880_v44  ;;  %v517_v38 = vld [vmem:[#allocation2 + $0xd60] sm:$0xff]  ;;  %v542_v44 = vld [vmem:[#allocation2 + $0xe28] sm:$0xff] }
 0x2b9   :  { %v7507_v2 = vadd.f32 %v5652_v47, %v3438_v55  ;;  %v5559_v63 = vpop.f32.mrb[180].mxu0  ;;  %v568_v47 = vld [vmem:[#allocation2 + $0xef8] sm:$0xff]  ;;  %v901_v30 = vpack.c.bf16 %v517_v38, %v493_v10  ;;  %v926_v46 = vpack.c.bf16 %v566_v53, %v542_v44 }
 0x2ba   :  { %v5653_v26 = vpop.f32.mrb[180].mxu1  ;;  %v5560_v8 = vpop.f32.mrb[181].mxu0  ;;  %v928_v11 = vpack.c.bf16 %v568_v47, %v544_v19 }
 0x2bb   :  { %v5561_v35 = vadd.f32 %v5560_v8, %v5559_v63  ;;  %v5654_v45 = vpop.f32.mrb[181].mxu1  ;;  %v5562_v49 = vpop.f32.mrb[182].mxu0 }
 0x2bc   :  { %v5655_v50 = vadd.f32 %v5654_v45, %v5653_v26  ;;  %v5656_v7 = vpop.f32.mrb[182].mxu1  ;;  %v5563_v58 = vpop.f32.mrb[183].mxu0 }
 0x2bd   :  { %v3443_v59 = vadd.f32 %v5561_v35, %v7431_v14  ;;  %v5564_v5 = vadd.f32 %v5563_v58, %v5562_v49  ;;  %v5657_v25 = vpop.f32.mrb[183].mxu1  ;;  %v590_v58 = vld [vmem:[#allocation2 + $0xfa8] sm:$0xff] }
 0x2be   :  { %v5658_v21 = vadd.f32 %v5657_v25, %v5656_v7  ;;  %3993 = vmatmul.mubr.bf16.gmra.mrb[32].mxu0 %v877_v36  ;;  %v567_v7 = vld [vmem:[#allocation2 + $0xef0] sm:$0xff]  ;;  %v616_v25 = vld [vmem:[#allocation2 + $0x1078] sm:$0xff] }
 0x2bf   :  { %v7511_v33 = vadd.f32 %v5655_v50, %v3443_v59  ;;  %v3446_v43 = vadd.f32 %v5564_v5, %v7434_v57  ;;  %4129 = vmatmul.mubr.bf16.gmra.mrb[32].mxu1 %v879_v51  ;;  %4000 = vmatprep.mubr.bf16.mxu0 %v902_v16  ;;  %v541_v51 = vld [vmem:[#allocation2 + $0xe20] sm:$0xff]  ;;  %v543_v50 = vld [vmem:[#allocation2 + $0xe30] sm:$0xff]  ;;  %v592_v5 = vld [vmem:[#allocation2 + $0xfb8] sm:$0xff] }
 0x2c0   :  { %4136 = vmatprep.mubr.bf16.mxu1 %v904_v22  ;;  %v565_v16 = vld [vmem:[#allocation2 + $0xee0] sm:$0xff]  ;;  %v614_v22 = vld [vmem:[#allocation2 + $0x1068] sm:$0xff]  ;;  %v927_v1 = vpack.c.bf16 %v567_v7, %v543_v50  ;;  %v952_v47 = vpack.c.bf16 %v616_v25, %v592_v5 }
 0x2c1   :  { %v7514_v15 = vadd.f32 %v5658_v21, %v3446_v43  ;;  %v5565_v14 = vpop.f32.mrb[184].mxu0  ;;  %v925_v10 = vpack.c.bf16 %v565_v16, %v541_v51  ;;  %v950_v44 = vpack.c.bf16 %v614_v22, %v590_v58 }
 0x2c2   :  { %v5659_v55 = vpop.f32.mrb[184].mxu1  ;;  %v5566_v17 = vpop.f32.mrb[185].mxu0 }
 0x2c3   :  { %v5567_v31 = vadd.f32 %v5566_v17, %v5565_v14  ;;  %v5660_v40 = vpop.f32.mrb[185].mxu1  ;;  %v5568_v57 = vpop.f32.mrb[186].mxu0 }
 0x2c4   :  { %v5661_v63 = vadd.f32 %v5660_v40, %v5659_v55  ;;  %v5662_v3 = vpop.f32.mrb[186].mxu1  ;;  %v5569_v39 = vpop.f32.mrb[187].mxu0 }
 0x2c5   :  { %v3451_v26 = vadd.f32 %v5567_v31, %v7437_v32  ;;  %v5570_v8 = vadd.f32 %v5569_v39, %v5568_v57  ;;  %v5663_v36 = vpop.f32.mrb[187].mxu1  ;;  %v638_v39 = vld [vmem:[#allocation2 + $0x1128] sm:$0xff] }
 0x2c6   :  { %v5664_v35 = vadd.f32 %v5663_v36, %v5662_v3  ;;  %4001 = vmatmul.mubr.bf16.gmra.mrb[36].mxu0 %v901_v30  ;;  %v615_v3 = vld [vmem:[#allocation2 + $0x1070] sm:$0xff]  ;;  %v664_v36 = vld [vmem:[#allocation2 + $0x11f8] sm:$0xff] }
 0x2c7   :  { %v7517_v45 = vadd.f32 %v5661_v63, %v3451_v26  ;;  %v3454_v49 = vadd.f32 %v5570_v8, %v7440_v37  ;;  %4137 = vmatmul.mubr.bf16.gmra.mrb[36].mxu1 %v903_v29  ;;  %4008 = vmatprep.mubr.bf16.mxu0 %v926_v46  ;;  %v589_v29 = vld [vmem:[#allocation2 + $0xfa0] sm:$0xff]  ;;  %v591_v63 = vld [vmem:[#allocation2 + $0xfb0] sm:$0xff]  ;;  %v640_v8 = vld [vmem:[#allocation2 + $0x1138] sm:$0xff] }
 0x2c8   :  { %4144 = vmatprep.mubr.bf16.mxu1 %v928_v11  ;;  %v613_v46 = vld [vmem:[#allocation2 + $0x1060] sm:$0xff]  ;;  %v662_v11 = vld [vmem:[#allocation2 + $0x11e8] sm:$0xff]  ;;  %v951_v58 = vpack.c.bf16 %v615_v3, %v591_v63 }
 0x2c9   :  { %v7520_v59 = vadd.f32 %v5664_v35, %v3454_v49  ;;  %v5571_v32 = vpop.f32.mrb[188].mxu0  ;;  %v6431_v35 = vld [vmem:[#allocation6 + $0x18] sm:$0xff]   ;;  %v949_v16 = vpack.c.bf16 %v613_v46, %v589_v29  ;;  %v974_v22 = vpack.c.bf16 %v662_v11, %v638_v39 }
 0x2ca   :  { %v5665_v21 = vpop.f32.mrb[188].mxu1  ;;  %v5572_v43 = vpop.f32.mrb[189].mxu0  ;;  %6112 = vmatpush3.bf16.msra.mxu0 %v6431_v35 }
 0x2cb   :  { %v5573_v38 = vadd.f32 %v5572_v43, %v5571_v32  ;;  %v5666_v42 = vpop.f32.mrb[189].mxu1  ;;  %v5574_v37 = vpop.f32.mrb[190].mxu0 }
 0x2cc   :  { %v5667_v53 = vadd.f32 %v5666_v42, %v5665_v21  ;;  %v5668_v14 = vpop.f32.mrb[190].mxu1  ;;  %v5575_v19 = vpop.f32.mrb[191].mxu0  ;;  %v976_v21 = vpack.c.bf16 %v664_v36, %v640_v8 }
 0x2cd   :  { %v3459_v55 = vadd.f32 %v5573_v38, %v7443_v28  ;;  %v5576_v17 = vadd.f32 %v5575_v19, %v5574_v37  ;;  %v5669_v30 = vpop.f32.mrb[191].mxu1  ;;  %v663_v19 = vld [vmem:[#allocation2 + $0x11f0] sm:$0xff] }
 0x2ce   :  { %v5670_v31 = vadd.f32 %v5669_v30, %v5668_v14  ;;  %4009 = vmatmul.mubr.bf16.gmra.mrb[40].mxu0 %v925_v10  ;;  %v639_v14 = vld [vmem:[#allocation2 + $0x1130] sm:$0xff] }
 0x2cf   :  { %v7523_v40 = vadd.f32 %v5667_v53, %v3459_v55  ;;  %v3462_v57 = vadd.f32 %v5576_v17, %v7446_v56  ;;  %4145 = vmatmul.mubr.bf16.gmra.mrb[40].mxu1 %v927_v1  ;;  %4016 = vmatprep.mubr.bf16.mxu0 %v950_v44  ;;  %v637_v44 = vld [vmem:[#allocation2 + $0x1120] sm:$0xff]  ;;  %v975_v3 = vpack.c.bf16 %v663_v19, %v639_v14 }
 0x2d0   :  { %4152 = vmatprep.mubr.bf16.mxu1 %v952_v47  ;;  %v661_v53 = vld [vmem:[#allocation2 + $0x11e0] sm:$0xff]  ;;  %v686_v47 = vld [vmem:[#allocation2 + $0x12a8] sm:$0xff] }
 0x2d1   :  { %v7526_v26 = vadd.f32 %v5670_v31, %v3462_v57  ;;  %v5577_v28 = vpop.f32.mrb[192].mxu0  ;;  %v973_v57 = vpack.c.bf16 %v661_v53, %v637_v44 }
 0x2d2   :  { %v5671_v49 = vpop.f32.mrb[192].mxu1  ;;  %v5578_v51 = vpop.f32.mrb[193].mxu0 }
 0x2d3   :  { %v5579_v50 = vadd.f32 %v5578_v51, %v5577_v28  ;;  %v5672_v56 = vpop.f32.mrb[193].mxu1  ;;  %v5580_v7 = vpop.f32.mrb[194].mxu0 }
 0x2d4   :  { %v5673_v32 = vadd.f32 %v5672_v56, %v5671_v49  ;;  %v5674_v5 = vpop.f32.mrb[194].mxu1  ;;  %v5581_v25 = vpop.f32.mrb[195].mxu0  ;;  %v685_v56 = vld [vmem:[#allocation2 + $0x12a0] sm:$0xff] }
 0x2d5   :  { %v3467_v43 = vadd.f32 %v5579_v50, %v7449_v18  ;;  %v5582_v10 = vadd.f32 %v5581_v25, %v5580_v7  ;;  %v5675_v38 = vpop.f32.mrb[195].mxu1  ;;  %v688_v18 = vld [vmem:[#allocation2 + $0x12b8] sm:$0xff]  ;;  %v687_v7 = vld [vmem:[#allocation2 + $0x12b0] sm:$0xff]  ;;  %v997_v25 = vpack.c.bf16 %v685_v56, %v685_v56 }
 0x2d6   :  { %v5676_v42 = vadd.f32 %v5675_v38, %v5674_v5  ;;  %4017 = vmatmul.mubr.bf16.gmra.mrb[44].mxu0 %v949_v16  ;;  %v1000_v8 = vpack.c.bf16 %v688_v18, %v688_v18 }
 0x2d7   :  { %v7529_v37 = vadd.f32 %v5673_v32, %v3467_v43  ;;  %v3470_v1 = vadd.f32 %v5582_v10, %v7452_v48  ;;  %4153 = vmatmul.mubr.bf16.gmra.mrb[44].mxu1 %v951_v58  ;;  %4024 = vmatprep.mubr.bf16.mxu0 %v974_v22  ;;  %v998_v48 = vpack.c.bf16 %v686_v47, %v686_v47 }
 0x2d8   :  { %4160 = vmatprep.mubr.bf16.mxu1 %v976_v21  ;;  %v999_v10 = vpack.c.bf16 %v687_v7, %v687_v7 }
 0x2d9   :  { %v7532_v55 = vadd.f32 %v5676_v42, %v3470_v1  ;;  %v5583_v17 = vpop.f32.mrb[196].mxu0 }
 0x2da   :  { %v5677_v30 = vpop.f32.mrb[196].mxu1  ;;  %v5584_v31 = vpop.f32.mrb[197].mxu0 }
 0x2db   :  { %v5585_v29 = vadd.f32 %v5584_v31, %v5583_v17  ;;  %v5678_v46 = vpop.f32.mrb[197].mxu1  ;;  %v5586_v63 = vpop.f32.mrb[198].mxu0 }
 0x2dc   :  { %v5679_v39 = vadd.f32 %v5678_v46, %v5677_v30  ;;  %v5680_v11 = vpop.f32.mrb[198].mxu1  ;;  %v5587_v28 = vpop.f32.mrb[199].mxu0 }
 0x2dd   :  { %v3475_v36 = vadd.f32 %v5585_v29, %v7455_v0  ;;  %v5588_v35 = vadd.f32 %v5587_v28, %v5586_v63  ;;  %v5681_v49 = vpop.f32.mrb[199].mxu1 }
 0x2de   :  { %v5682_v51 = vadd.f32 %v5681_v49, %v5680_v11  ;;  %4025 = vmatmul.mubr.bf16.gmra.mrb[48].mxu0 %v973_v57 }
 0x2df   :  { %v7535_v16 = vadd.f32 %v5679_v39, %v3475_v36  ;;  %v3478_v50 = vadd.f32 %v5588_v35, %v7458_v6  ;;  %4161 = vmatmul.mubr.bf16.gmra.mrb[48].mxu1 %v975_v3  ;;  %4032 = vmatprep.mubr.bf16.mxu0 %v998_v48 }
 0x2e0   :  { %4168 = vmatprep.mubr.bf16.mxu1 %v1000_v8 }
 0x2e1   :  { %v7538_v58 = vadd.f32 %v5682_v51, %v3478_v50  ;;  %v5589_v22 = vpop.f32.mrb[200].mxu0 }
 0x2e2   :  { %v5683_v32 = vpop.f32.mrb[200].mxu1  ;;  %v5590_v5 = vpop.f32.mrb[201].mxu0 }
 0x2e3   :  { %v5591_v0 = vadd.f32 %v5590_v5, %v5589_v22  ;;  %v5684_v21 = vpop.f32.mrb[201].mxu1  ;;  %v5592_v43 = vpop.f32.mrb[202].mxu0 }
 0x2e4   :  { %v5685_v38 = vadd.f32 %v5684_v21, %v5683_v32  ;;  %v5686_v42 = vpop.f32.mrb[202].mxu1  ;;  %v5593_v1 = vpop.f32.mrb[203].mxu0 }
 0x2e5   :  { %v3483_v6 = vadd.f32 %v5591_v0, %v7461_v24  ;;  %v5594_v44 = vadd.f32 %v5593_v1, %v5592_v43  ;;  %v5687_v53 = vpop.f32.mrb[203].mxu1 }
 0x2e6   :  { %v5688_v14 = vadd.f32 %v5687_v53, %v5686_v42  ;;  %4033 = vmatmul.mubr.bf16.gmra.mrb[52].mxu0 %v997_v25 }
 0x2e7   :  { %v7541_v19 = vadd.f32 %v5685_v38, %v3483_v6  ;;  %v3486_v47 = vadd.f32 %v5594_v44, %v7464_v12  ;;  %4169 = vmatmul.mubr.bf16.gmra.mrb[52].mxu1 %v999_v10  ;;  %6113 = vmatprep.mubr.msk.bf16.mxu0 %vm6563_vm0, %v6562_v20 }
 0x2e8   :  { %6173 = vmatprep.mubr.msk.bf16.mxu1 %vm6563_vm0, %v6562_v20 }
 0x2e9   :  { %v7548_v17 = vadd.f32 %v5688_v14, %v3486_v47  ;;  %v5595_v18 = vpop.f32.mrb[204].mxu0 }
 0x2ea   :  { %v5689_v24 = vpop.f32.mrb[204].mxu1  ;;  %v5596_v30 = vpop.f32.mrb[205].mxu0 }
 0x2eb   :  { %v5597_v31 = vadd.f32 %v5596_v30, %v5595_v18  ;;  %v5690_v57 = vpop.f32.mrb[205].mxu1  ;;  %v5598_v29 = vpop.f32.mrb[206].mxu0 }
 0x2ec   :  { %v5691_v46 = vadd.f32 %v5690_v57, %v5689_v24  ;;  %v5692_v63 = vpop.f32.mrb[206].mxu1  ;;  %v5599_v3 = vpop.f32.mrb[207].mxu0 }
 0x2ed   :  { %v3491_v12 = vadd.f32 %v5597_v31, %v7469_v41  ;;  %v5693_v48 = vpop.f32.mrb[207].mxu1 }
 0x2ef   :  { %v7551_v39 = vadd.f32 %v5691_v46, %v3491_v12 }
 0x2f1   :  { %v5711_v11 = vpop.f32.mrb[208].mxu0 }
 0x2f2   :  { %v5805_v28 = vpop.f32.mrb[208].mxu1  ;;  %v5712_v8 = vpop.f32.mrb[209].mxu0 }
 0x2f3   :  { %v5713_v36 = vadd.f32 %v5712_v8, %v5711_v11  ;;  %v5806_v35 = vpop.f32.mrb[209].mxu1  ;;  %v5714_v49 = vpop.f32.mrb[210].mxu0 }
 0x2f4   :  { %v5807_v51 = vadd.f32 %v5806_v35, %v5805_v28  ;;  %v5808_v50 = vpop.f32.mrb[210].mxu1  ;;  %v5715_v56 = vpop.f32.mrb[211].mxu0 }
 0x2f5   :  { %v3667_v7 = vadd.f32 %v5713_v36, %v7473_v27  ;;  %v5716_v22 = vadd.f32 %v5715_v56, %v5714_v49  ;;  %v5809_v32 = vpop.f32.mrb[211].mxu1 }
 0x2f6   :  { %v5810_v5 = vadd.f32 %v5809_v32, %v5808_v50 }
 0x2f7   :  { %v7554_v25 = vadd.f32 %v5807_v51, %v3667_v7  ;;  %v3670_v41 = vadd.f32 %v5716_v22, %v7476_v23 }
 0x2f9   :  { %v7557_v0 = vadd.f32 %v5810_v5, %v3670_v41  ;;  %v5717_v21 = vpop.f32.mrb[212].mxu0 }
 0x2fa   :  { %v5811_v43 = vpop.f32.mrb[212].mxu1  ;;  %v5718_v10 = vpop.f32.mrb[213].mxu0 }
 0x2fb   :  { %v5719_v38 = vadd.f32 %v5718_v10, %v5717_v21  ;;  %v5812_v42 = vpop.f32.mrb[213].mxu1  ;;  %v5720_v1 = vpop.f32.mrb[214].mxu0 }
 0x2fc   :  { %v5813_v6 = vadd.f32 %v5812_v42, %v5811_v43  ;;  %v5814_v44 = vpop.f32.mrb[214].mxu1  ;;  %v5721_v53 = vpop.f32.mrb[215].mxu0 }
 0x2fd   :  { %v3675_v27 = vadd.f32 %v5719_v38, %v7479_v60  ;;  %v5722_v14 = vadd.f32 %v5721_v53, %v5720_v1  ;;  %v5815_v47 = vpop.f32.mrb[215].mxu1 }
 0x2fe   :  { %v5816_v18 = vadd.f32 %v5815_v47, %v5814_v44 }
 0x2ff   :  { %v7560_v24 = vadd.f32 %v5813_v6, %v3675_v27  ;;  %v3678_v23 = vadd.f32 %v5722_v14, %v7482_v13 }
 0x301   :  { %v7563_v30 = vadd.f32 %v5816_v18, %v3678_v23  ;;  %v5723_v31 = vpop.f32.mrb[216].mxu0 }
 0x302   :  { %v5817_v57 = vpop.f32.mrb[216].mxu1  ;;  %v5724_v29 = vpop.f32.mrb[217].mxu0 }
 0x303   :  { %v5725_v46 = vadd.f32 %v5724_v29, %v5723_v31  ;;  %v5818_v63 = vpop.f32.mrb[217].mxu1  ;;  %v5726_v3 = vpop.f32.mrb[218].mxu0 }
 0x304   :  { %v5819_v12 = vadd.f32 %v5818_v63, %v5817_v57  ;;  %v5820_v48 = vpop.f32.mrb[218].mxu1  ;;  %v5727_v11 = vpop.f32.mrb[219].mxu0 }
 0x305   :  { %v3683_v60 = vadd.f32 %v5725_v46, %v7485_v61  ;;  %v5728_v28 = vadd.f32 %v5727_v11, %v5726_v3  ;;  %v5821_v8 = vpop.f32.mrb[219].mxu1 }
 0x306   :  { %v5822_v36 = vadd.f32 %v5821_v8, %v5820_v48 }
 0x307   :  { %v7566_v35 = vadd.f32 %v5819_v12, %v3683_v60  ;;  %v3686_v13 = vadd.f32 %v5728_v28, %v7488_v62 }
 0x309   :  { %v7569_v49 = vadd.f32 %v5822_v36, %v3686_v13  ;;  %v5729_v51 = vpop.f32.mrb[220].mxu0 }
 0x30a   :  { %v5823_v50 = vpop.f32.mrb[220].mxu1  ;;  %v5730_v56 = vpop.f32.mrb[221].mxu0 }
 0x30b   :  { %v5731_v7 = vadd.f32 %v5730_v56, %v5729_v51  ;;  %v5824_v22 = vpop.f32.mrb[221].mxu1  ;;  %v5732_v32 = vpop.f32.mrb[222].mxu0 }
 0x30c   :  { %v5825_v5 = vadd.f32 %v5824_v22, %v5823_v50  ;;  %v5826_v41 = vpop.f32.mrb[222].mxu1  ;;  %v5733_v21 = vpop.f32.mrb[223].mxu0 }
 0x30d   :  { %v3691_v61 = vadd.f32 %v5731_v7, %v7492_v4  ;;  %v5734_v43 = vadd.f32 %v5733_v21, %v5732_v32  ;;  %v5827_v10 = vpop.f32.mrb[223].mxu1 }
 0x30e   :  { %v5828_v38 = vadd.f32 %v5827_v10, %v5826_v41 }
 0x30f   :  { %v7572_v42 = vadd.f32 %v5825_v5, %v3691_v61  ;;  %v3694_v62 = vadd.f32 %v5734_v43, %v7495_v9 }
 0x311   :  { %v7575_v1 = vadd.f32 %v5828_v38, %v3694_v62  ;;  %v5735_v6 = vpop.f32.mrb[224].mxu0 }
 0x312   :  { %v5829_v44 = vpop.f32.mrb[224].mxu1  ;;  %v5736_v53 = vpop.f32.mrb[225].mxu0 }
 0x313   :  { %v5737_v27 = vadd.f32 %v5736_v53, %v5735_v6  ;;  %v5830_v14 = vpop.f32.mrb[225].mxu1  ;;  %v5738_v47 = vpop.f32.mrb[226].mxu0 }
 0x314   :  { %v5831_v18 = vadd.f32 %v5830_v14, %v5829_v44  ;;  %v5832_v23 = vpop.f32.mrb[226].mxu1  ;;  %v5739_v31 = vpop.f32.mrb[227].mxu0 }
 0x315   :  { %v3699_v4 = vadd.f32 %v5737_v27, %v7498_v54  ;;  %v5740_v57 = vadd.f32 %v5739_v31, %v5738_v47  ;;  %v5833_v29 = vpop.f32.mrb[227].mxu1 }
 0x316   :  { %v5834_v46 = vadd.f32 %v5833_v29, %v5832_v23 }
 0x317   :  { %v7578_v63 = vadd.f32 %v5831_v18, %v3699_v4  ;;  %v3702_v9 = vadd.f32 %v5740_v57, %v7501_v34 }
 0x319   :  { %v7581_v3 = vadd.f32 %v5834_v46, %v3702_v9  ;;  %v5741_v12 = vpop.f32.mrb[228].mxu0 }
 0x31a   :  { %v5835_v48 = vpop.f32.mrb[228].mxu1  ;;  %v5742_v11 = vpop.f32.mrb[229].mxu0 }
 0x31b   :  { %v5743_v60 = vadd.f32 %v5742_v11, %v5741_v12  ;;  %v5836_v28 = vpop.f32.mrb[229].mxu1  ;;  %v5744_v8 = vpop.f32.mrb[230].mxu0 }
 0x31c   :  { %v5837_v36 = vadd.f32 %v5836_v28, %v5835_v48  ;;  %v5838_v13 = vpop.f32.mrb[230].mxu1  ;;  %v5745_v51 = vpop.f32.mrb[231].mxu0 }
 0x31d   :  { %v3707_v54 = vadd.f32 %v5743_v60, %v7504_v52  ;;  %v5746_v50 = vadd.f32 %v5745_v51, %v5744_v8  ;;  %v5839_v56 = vpop.f32.mrb[231].mxu1 }
 0x31e   :  { %v5840_v7 = vadd.f32 %v5839_v56, %v5838_v13 }
 0x31f   :  { %v7584_v22 = vadd.f32 %v5837_v36, %v3707_v54  ;;  %v3710_v34 = vadd.f32 %v5746_v50, %v7507_v2 }
 0x321   :  { %v7587_v32 = vadd.f32 %v5840_v7, %v3710_v34  ;;  %v5747_v5 = vpop.f32.mrb[232].mxu0 }
 0x322   :  { %v5841_v41 = vpop.f32.mrb[232].mxu1  ;;  %v5748_v21 = vpop.f32.mrb[233].mxu0 }
 0x323   :  { %v5749_v61 = vadd.f32 %v5748_v21, %v5747_v5  ;;  %v5842_v43 = vpop.f32.mrb[233].mxu1  ;;  %v5750_v10 = vpop.f32.mrb[234].mxu0 }
 0x324   :  { %v5843_v38 = vadd.f32 %v5842_v43, %v5841_v41  ;;  %v5844_v62 = vpop.f32.mrb[234].mxu1  ;;  %v5751_v6 = vpop.f32.mrb[235].mxu0 }
 0x325   :  { %v3715_v52 = vadd.f32 %v5749_v61, %v7511_v33  ;;  %v5752_v44 = vadd.f32 %v5751_v6, %v5750_v10  ;;  %v5845_v53 = vpop.f32.mrb[235].mxu1 }
 0x326   :  { %v5846_v27 = vadd.f32 %v5845_v53, %v5844_v62 }
 0x327   :  { %v7590_v14 = vadd.f32 %v5843_v38, %v3715_v52  ;;  %v3718_v2 = vadd.f32 %v5752_v44, %v7514_v15 }
 0x329   :  { %v7593_v47 = vadd.f32 %v5846_v27, %v3718_v2  ;;  %v5753_v18 = vpop.f32.mrb[236].mxu0 }
 0x32a   :  { %v5847_v23 = vpop.f32.mrb[236].mxu1  ;;  %v5754_v31 = vpop.f32.mrb[237].mxu0 }
 0x32b   :  { %v5755_v4 = vadd.f32 %v5754_v31, %v5753_v18  ;;  %v5848_v57 = vpop.f32.mrb[237].mxu1  ;;  %v5756_v29 = vpop.f32.mrb[238].mxu0 }
 0x32c   :  { %v5849_v46 = vadd.f32 %v5848_v57, %v5847_v23  ;;  %v5850_v9 = vpop.f32.mrb[238].mxu1  ;;  %v5757_v12 = vpop.f32.mrb[239].mxu0 }
 0x32d   :  { %v3723_v33 = vadd.f32 %v5755_v4, %v7517_v45  ;;  %v5758_v48 = vadd.f32 %v5757_v12, %v5756_v29  ;;  %v5851_v11 = vpop.f32.mrb[239].mxu1 }
 0x32e   :  { %v5852_v60 = vadd.f32 %v5851_v11, %v5850_v9 }
 0x32f   :  { %v7596_v28 = vadd.f32 %v5849_v46, %v3723_v33  ;;  %v3726_v15 = vadd.f32 %v5758_v48, %v7520_v59 }
 0x331   :  { %v7599_v8 = vadd.f32 %v5852_v60, %v3726_v15  ;;  %v5759_v36 = vpop.f32.mrb[240].mxu0 }
 0x332   :  { %v5853_v13 = vpop.f32.mrb[240].mxu1  ;;  %v5760_v51 = vpop.f32.mrb[241].mxu0 }
 0x333   :  { %v5761_v54 = vadd.f32 %v5760_v51, %v5759_v36  ;;  %v5854_v50 = vpop.f32.mrb[241].mxu1  ;;  %v5762_v56 = vpop.f32.mrb[242].mxu0 }
 0x334   :  { %v5855_v7 = vadd.f32 %v5854_v50, %v5853_v13  ;;  %v5856_v34 = vpop.f32.mrb[242].mxu1  ;;  %v5763_v5 = vpop.f32.mrb[243].mxu0 }
 0x335   :  { %v3731_v45 = vadd.f32 %v5761_v54, %v7523_v40  ;;  %v5764_v41 = vadd.f32 %v5763_v5, %v5762_v56  ;;  %v5857_v21 = vpop.f32.mrb[243].mxu1  ;;  %v6432_v56 = vld [vmem:[%s7901_s5] sm:$0xff]   ;;  %v6433_v5 = vld [vmem:[%s7901_s5 + $0x8] sm:$0xff]  }
 0x336   :  { %v5858_v61 = vadd.f32 %v5857_v21, %v5856_v34  ;;  %6166 = vmatpush3.bf16.msra.mxu1 %v6432_v56 }
 0x337   :  { %v7602_v43 = vadd.f32 %v5855_v7, %v3731_v45  ;;  %v3734_v59 = vadd.f32 %v5764_v41, %v7526_v26  ;;  %6167 = vmatprep.subr.bf16.mxu1 %v6562_v20 }
 0x339   :  { %v7605_v10 = vadd.f32 %v5858_v61, %v3734_v59  ;;  %v5765_v38 = vpop.f32.mrb[244].mxu0 }
 0x33a   :  { %v5859_v62 = vpop.f32.mrb[244].mxu1  ;;  %v5766_v6 = vpop.f32.mrb[245].mxu0  ;;  %6168 = vmatpush3.bf16.msra.mxu1 %v6433_v5 }
 0x33b   :  { %v5767_v52 = vadd.f32 %v5766_v6, %v5765_v38  ;;  %v5860_v44 = vpop.f32.mrb[245].mxu1  ;;  %v5768_v53 = vpop.f32.mrb[246].mxu0  ;;  %6169 = vmatprep.subr.bf16.mxu1 %v6562_v20 }
 0x33c   :  { %v5861_v27 = vadd.f32 %v5860_v44, %v5859_v62  ;;  %v5862_v2 = vpop.f32.mrb[246].mxu1  ;;  %v5769_v18 = vpop.f32.mrb[247].mxu0  ;;  %v6434_v44 = vld [vmem:[%s7901_s5 + $0x10] sm:$0xff]  }
 0x33d   :  { %v3739_v40 = vadd.f32 %v5767_v52, %v7529_v37  ;;  %v5770_v23 = vadd.f32 %v5769_v18, %v5768_v53  ;;  %v5863_v31 = vpop.f32.mrb[247].mxu1 }
 0x33e   :  { %v5864_v4 = vadd.f32 %v5863_v31, %v5862_v2  ;;  %6170 = vmatpush3.bf16.msra.mxu1 %v6434_v44 }
 0x33f   :  { %v7608_v57 = vadd.f32 %v5861_v27, %v3739_v40  ;;  %v3742_v26 = vadd.f32 %v5770_v23, %v7532_v55  ;;  %6171 = vmatprep.subr.bf16.mxu1 %v6562_v20 }
 0x341   :  { %v7611_v29 = vadd.f32 %v5864_v4, %v3742_v26  ;;  %v5771_v46 = vpop.f32.mrb[248].mxu0 }
 0x342   :  { %v5865_v9 = vpop.f32.mrb[248].mxu1  ;;  %v5772_v12 = vpop.f32.mrb[249].mxu0 }
 0x343   :  { %v5773_v33 = vadd.f32 %v5772_v12, %v5771_v46  ;;  %v5866_v48 = vpop.f32.mrb[249].mxu1  ;;  %v5774_v11 = vpop.f32.mrb[250].mxu0 }
 0x344   :  { %v5867_v60 = vadd.f32 %v5866_v48, %v5865_v9  ;;  %v5868_v15 = vpop.f32.mrb[250].mxu1  ;;  %v5775_v36 = vpop.f32.mrb[251].mxu0 }
 0x345   :  { %v3747_v37 = vadd.f32 %v5773_v33, %v7535_v16  ;;  %v5776_v13 = vadd.f32 %v5775_v36, %v5774_v11  ;;  %v5869_v51 = vpop.f32.mrb[251].mxu1 }
 0x346   :  { %v5870_v54 = vadd.f32 %v5869_v51, %v5868_v15 }
 0x347   :  { %v7614_v50 = vadd.f32 %v5867_v60, %v3747_v37  ;;  %v3750_v55 = vadd.f32 %v5776_v13, %v7538_v58 }
 0x349   :  { %v7620_v7 = vadd.f32 %v5870_v54, %v3750_v55  ;;  %v5777_v34 = vpop.f32.mrb[252].mxu0 }
 0x34a   :  { %v5871_v16 = vpop.f32.mrb[252].mxu1  ;;  %v5778_v45 = vpop.f32.mrb[253].mxu0 }
 0x34b   :  { %v5779_v41 = vadd.f32 %v5778_v45, %v5777_v34  ;;  %v5872_v21 = vpop.f32.mrb[253].mxu1  ;;  %v5780_v61 = vpop.f32.mrb[254].mxu0 }
 0x34c   :  { %v5873_v58 = vadd.f32 %v5872_v21, %v5871_v16  ;;  %v5874_v59 = vpop.f32.mrb[254].mxu1  ;;  %v5781_v38 = vpop.f32.mrb[255].mxu0 }
 0x34d   :  { %v3755_v62 = vadd.f32 %v5779_v41, %v7541_v19  ;;  %v5782_v6 = vadd.f32 %v5781_v38, %v5780_v61  ;;  %v5875_v52 = vpop.f32.mrb[255].mxu1  ;;  %v6435_v19 = vld [vmem:[%s7901_s5 + $0x18] sm:$0xff]  }
 0x34e   :  { %v5876_v53 = vadd.f32 %v5875_v52, %v5874_v59  ;;  %6172 = vmatpush3.bf16.msra.mxu1 %v6435_v19 }
 0x34f   :  { %v7631_v27 = vadd.f32 %v5873_v58, %v3755_v62  ;;  %v3758_v2 = vadd.f32 %v5782_v6, %v7548_v17 }
 0x351   :  { %v7634_v18 = vadd.f32 %v5876_v53, %v3758_v2  ;;  %v5783_v40 = vpop.f32.mrb[0].mxu0 }
 0x352   :  { %v5877_v23 = vpop.f32.mrb[0].mxu1  ;;  %v5784_v31 = vpop.f32.mrb[1].mxu0 }
 0x353   :  { %v5785_v4 = vadd.f32 %v5784_v31, %v5783_v40  ;;  %v5878_v26 = vpop.f32.mrb[1].mxu1  ;;  %v5786_v46 = vpop.f32.mrb[2].mxu0 }
 0x354   :  { %v5879_v9 = vadd.f32 %v5878_v26, %v5877_v23  ;;  %v5880_v12 = vpop.f32.mrb[2].mxu1  ;;  %v5787_v33 = vpop.f32.mrb[3].mxu0 }
 0x355   :  { %v3763_v17 = vadd.f32 %v5785_v4, %v7551_v39  ;;  %v5881_v48 = vpop.f32.mrb[3].mxu1 }
 0x357   :  { %v7641_v11 = vadd.f32 %v5879_v9, %v3763_v17 }
 0x359   :  { %v5899_v60 = vpop.f32.mrb[4].mxu0 }
 0x35a   :  { %v5993_v15 = vpop.f32.mrb[4].mxu1  ;;  %v5900_v36 = vpop.f32.mrb[5].mxu0 }
 0x35b   :  { %v5901_v37 = vadd.f32 %v5900_v36, %v5899_v60  ;;  %v5994_v13 = vpop.f32.mrb[5].mxu1  ;;  %v5902_v51 = vpop.f32.mrb[6].mxu0 }
 0x35c   :  { %v5995_v54 = vadd.f32 %v5994_v13, %v5993_v15  ;;  %v5996_v55 = vpop.f32.mrb[6].mxu1  ;;  %v5903_v56 = vpop.f32.mrb[7].mxu0 }
 0x35d   :  { %v3939_v34 = vadd.f32 %v5901_v37, %v7554_v25  ;;  %v5904_v5 = vadd.f32 %v5903_v56, %v5902_v51  ;;  %v5997_v16 = vpop.f32.mrb[7].mxu1 }
 0x35e   :  { %v5998_v45 = vadd.f32 %v5997_v16, %v5996_v55 }
 0x35f   :  { %v4075_v41 = vadd.f32 %v5995_v54, %v3939_v34  ;;  %v3942_v39 = vadd.f32 %v5904_v5, %v7557_v0 }
 0x361   :  { %v4078_v21 = vadd.f32 %v5998_v45, %v3942_v39  ;;  %v5905_v61 = vpop.f32.mrb[8].mxu0  ;;  %v4176_v38 = vmax.f32 %v4075_v41, 0.0 }
 0x362   :  { %v5999_v58 = vpop.f32.mrb[8].mxu1  ;;  %v5906_v59 = vpop.f32.mrb[9].mxu0 }
 0x363   :  { %v4177_v62 = vmax.f32 %v4078_v21, 0.0  ;;  %v5907_v6 = vadd.f32 %v5906_v59, %v5905_v61  ;;  %v6000_v52 = vpop.f32.mrb[9].mxu1  ;;  %v5908_v44 = vpop.f32.mrb[10].mxu0 }
 0x364   :  { %v6001_v53 = vadd.f32 %v6000_v52, %v5999_v58  ;;  %v6002_v2 = vpop.f32.mrb[10].mxu1  ;;  %v5909_v40 = vpop.f32.mrb[11].mxu0 }
 0x365   :  { %v4201_v25 = vpack.c.bf16 %v4177_v62, %v4176_v38  ;;  %v3947_v19 = vadd.f32 %v5907_v6, %v7560_v24  ;;  %v5910_v23 = vadd.f32 %v5909_v40, %v5908_v44  ;;  %v6003_v31 = vpop.f32.mrb[11].mxu1 }
 0x366   :  { %v6004_v4 = vadd.f32 %v6003_v31, %v6002_v2 }
 0x367   :  { %v4083_v0 = vadd.f32 %v6001_v53, %v3947_v19  ;;  %v3950_v26 = vadd.f32 %v5910_v23, %v7563_v30  ;;  %6114 = vmatmul.mubr.msk.bf16.vlgmr.msra.gmra.mrb[56].mxu0 %vm4253_vm1, %v4201_v25 }
 0x368   :  { %6117 = vmatprep.mubr.msk.bf16.mxu0 %vm6563_vm0, %v6562_v20 }
 0x369   :  { %v4086_v46 = vadd.f32 %v6004_v4, %v3950_v26  ;;  %v5911_v9 = vpop.f32.mrb[12].mxu0  ;;  %v4178_v17 = vmax.f32 %v4083_v0, 0.0 }
 0x36a   :  { %v6005_v12 = vpop.f32.mrb[12].mxu1  ;;  %v5912_v33 = vpop.f32.mrb[13].mxu0 }
 0x36b   :  { %v4179_v48 = vmax.f32 %v4086_v46, 0.0  ;;  %v5913_v60 = vadd.f32 %v5912_v33, %v5911_v9  ;;  %v6006_v15 = vpop.f32.mrb[13].mxu1  ;;  %v5914_v24 = vpop.f32.mrb[14].mxu0 }
 0x36c   :  { %v6007_v36 = vadd.f32 %v6006_v15, %v6005_v12  ;;  %v6008_v37 = vpop.f32.mrb[14].mxu1  ;;  %v5915_v13 = vpop.f32.mrb[15].mxu0 }
 0x36d   :  { %v4202_v51 = vpack.c.bf16 %v4179_v48, %v4178_v17  ;;  %v3955_v30 = vadd.f32 %v5913_v60, %v7566_v35  ;;  %v5916_v54 = vadd.f32 %v5915_v13, %v5914_v24  ;;  %v6009_v55 = vpop.f32.mrb[15].mxu1 }
 0x36e   :  { %v6010_v56 = vadd.f32 %v6009_v55, %v6008_v37 }
 0x36f   :  { %v4091_v34 = vadd.f32 %v6007_v36, %v3955_v30  ;;  %v3958_v5 = vadd.f32 %v5916_v54, %v7569_v49  ;;  %6118 = vmatmul.mubr.msk.bf16.gmra.mrb[60].mxu0 %vm4253_vm1, %v4202_v51 }
 0x370   :  { %6121 = vmatprep.mubr.msk.bf16.mxu0 %vm6563_vm0, %v6562_v20 }
 0x371   :  { %v4094_v16 = vadd.f32 %v6010_v56, %v3958_v5  ;;  %v5917_v45 = vpop.f32.mrb[16].mxu0  ;;  %v4180_v21 = vmax.f32 %v4091_v34, 0.0 }
 0x372   :  { %v6011_v41 = vpop.f32.mrb[16].mxu1  ;;  %v5918_v39 = vpop.f32.mrb[17].mxu0 }
 0x373   :  { %v4181_v61 = vmax.f32 %v4094_v16, 0.0  ;;  %v5919_v58 = vadd.f32 %v5918_v39, %v5917_v45  ;;  %v6012_v59 = vpop.f32.mrb[17].mxu1  ;;  %v5920_v35 = vpop.f32.mrb[18].mxu0 }
 0x374   :  { %v6013_v38 = vadd.f32 %v6012_v59, %v6011_v41  ;;  %v6014_v62 = vpop.f32.mrb[18].mxu1  ;;  %v5921_v6 = vpop.f32.mrb[19].mxu0 }
 0x375   :  { %v4203_v52 = vpack.c.bf16 %v4181_v61, %v4180_v21  ;;  %v3963_v49 = vadd.f32 %v5919_v58, %v7572_v42  ;;  %v5922_v44 = vadd.f32 %v5921_v6, %v5920_v35  ;;  %v6015_v53 = vpop.f32.mrb[19].mxu1 }
 0x376   :  { %v6016_v2 = vadd.f32 %v6015_v53, %v6014_v62 }
 0x377   :  { %v4099_v40 = vadd.f32 %v6013_v38, %v3963_v49  ;;  %v3966_v25 = vadd.f32 %v5922_v44, %v7575_v1  ;;  %6122 = vmatmul.mubr.msk.bf16.gmra.mrb[64].mxu0 %vm4253_vm1, %v4203_v52 }
 0x378   :  { %6125 = vmatprep.mubr.msk.bf16.mxu0 %vm6563_vm0, %v6562_v20 }
 0x379   :  { %v4102_v19 = vadd.f32 %v6016_v2, %v3966_v25  ;;  %v5923_v23 = vpop.f32.mrb[20].mxu0  ;;  %v4182_v0 = vmax.f32 %v4099_v40, 0.0 }
 0x37a   :  { %v6017_v31 = vpop.f32.mrb[20].mxu1  ;;  %v5924_v4 = vpop.f32.mrb[21].mxu0 }
 0x37b   :  { %v4183_v26 = vmax.f32 %v4102_v19, 0.0  ;;  %v5925_v46 = vadd.f32 %v5924_v4, %v5923_v23  ;;  %v6018_v9 = vpop.f32.mrb[21].mxu1  ;;  %v5926_v42 = vpop.f32.mrb[22].mxu0 }
 0x37c   :  { %v6019_v12 = vadd.f32 %v6018_v9, %v6017_v31  ;;  %v6020_v33 = vpop.f32.mrb[22].mxu1  ;;  %v5927_v17 = vpop.f32.mrb[23].mxu0 }
 0x37d   :  { %v4204_v48 = vpack.c.bf16 %v4183_v26, %v4182_v0  ;;  %v3971_v1 = vadd.f32 %v5925_v46, %v7578_v63  ;;  %v5928_v60 = vadd.f32 %v5927_v17, %v5926_v42  ;;  %v6021_v15 = vpop.f32.mrb[23].mxu1 }
 0x37e   :  { %v6022_v24 = vadd.f32 %v6021_v15, %v6020_v33 }
 0x37f   :  { %v4107_v36 = vadd.f32 %v6019_v12, %v3971_v1  ;;  %v3974_v37 = vadd.f32 %v5928_v60, %v7581_v3  ;;  %6126 = vmatmul.mubr.msk.bf16.gmra.mrb[68].mxu0 %vm4253_vm1, %v4204_v48 }
 0x380   :  { %6129 = vmatprep.mubr.msk.bf16.mxu0 %vm6563_vm0, %v6562_v20 }
 0x381   :  { %v4110_v13 = vadd.f32 %v6022_v24, %v3974_v37  ;;  %v5929_v51 = vpop.f32.mrb[24].mxu0  ;;  %v4184_v55 = vmax.f32 %v4107_v36, 0.0 }
 0x382   :  { %v6023_v30 = vpop.f32.mrb[24].mxu1  ;;  %v5930_v54 = vpop.f32.mrb[25].mxu0 }
 0x383   :  { %v4185_v56 = vmax.f32 %v4110_v13, 0.0  ;;  %v5931_v34 = vadd.f32 %v5930_v54, %v5929_v51  ;;  %v6024_v5 = vpop.f32.mrb[25].mxu1  ;;  %v5932_v63 = vpop.f32.mrb[26].mxu0 }
 0x384   :  { %v6025_v16 = vadd.f32 %v6024_v5, %v6023_v30  ;;  %v6026_v45 = vpop.f32.mrb[26].mxu1  ;;  %v5933_v41 = vpop.f32.mrb[27].mxu0 }
 0x385   :  { %v4205_v39 = vpack.c.bf16 %v4185_v56, %v4184_v55  ;;  %v3979_v3 = vadd.f32 %v5931_v34, %v7584_v22  ;;  %v5934_v21 = vadd.f32 %v5933_v41, %v5932_v63  ;;  %v6027_v61 = vpop.f32.mrb[27].mxu1 }
 0x386   :  { %v6028_v58 = vadd.f32 %v6027_v61, %v6026_v45 }
 0x387   :  { %v4115_v59 = vadd.f32 %v6025_v16, %v3979_v3  ;;  %v3982_v35 = vadd.f32 %v5934_v21, %v7587_v32  ;;  %6130 = vmatmul.mubr.msk.bf16.gmra.mrb[72].mxu0 %vm4253_vm1, %v4205_v39 }
 0x388   :  { %6133 = vmatprep.mubr.msk.bf16.mxu0 %vm6563_vm0, %v6562_v20 }
 0x389   :  { %v4118_v38 = vadd.f32 %v6028_v58, %v3982_v35  ;;  %v5935_v62 = vpop.f32.mrb[28].mxu0  ;;  %v4186_v49 = vmax.f32 %v4115_v59, 0.0 }
 0x38a   :  { %v6029_v6 = vpop.f32.mrb[28].mxu1  ;;  %v5936_v52 = vpop.f32.mrb[29].mxu0 }
 0x38b   :  { %v4187_v44 = vmax.f32 %v4118_v38, 0.0  ;;  %v5937_v53 = vadd.f32 %v5936_v52, %v5935_v62  ;;  %v6030_v2 = vpop.f32.mrb[29].mxu1  ;;  %v5938_v22 = vpop.f32.mrb[30].mxu0 }
 0x38c   :  { %v6031_v40 = vadd.f32 %v6030_v2, %v6029_v6  ;;  %v6032_v25 = vpop.f32.mrb[30].mxu1  ;;  %v5939_v19 = vpop.f32.mrb[31].mxu0 }
 0x38d   :  { %v4206_v23 = vpack.c.bf16 %v4187_v44, %v4186_v49  ;;  %v3987_v32 = vadd.f32 %v5937_v53, %v7590_v14  ;;  %v5940_v31 = vadd.f32 %v5939_v19, %v5938_v22  ;;  %v6033_v4 = vpop.f32.mrb[31].mxu1 }
 0x38e   :  { %v6034_v0 = vadd.f32 %v6033_v4, %v6032_v25 }
 0x38f   :  { %v4123_v26 = vadd.f32 %v6031_v40, %v3987_v32  ;;  %v3990_v46 = vadd.f32 %v5940_v31, %v7593_v47  ;;  %6134 = vmatmul.mubr.msk.bf16.gmra.mrb[76].mxu0 %vm4253_vm1, %v4206_v23 }
 0x390   :  { %6137 = vmatprep.mubr.msk.bf16.mxu0 %vm6563_vm0, %v6562_v20 }
 0x391   :  { %v4126_v9 = vadd.f32 %v6034_v0, %v3990_v46  ;;  %v5941_v42 = vpop.f32.mrb[32].mxu0  ;;  %v4188_v17 = vmax.f32 %v4123_v26, 0.0 }
 0x392   :  { %v6035_v12 = vpop.f32.mrb[32].mxu1  ;;  %v5942_v33 = vpop.f32.mrb[33].mxu0 }
 0x393   :  { %v4189_v48 = vmax.f32 %v4126_v9, 0.0  ;;  %v5943_v1 = vadd.f32 %v5942_v33, %v5941_v42  ;;  %v6036_v60 = vpop.f32.mrb[33].mxu1  ;;  %v5944_v14 = vpop.f32.mrb[34].mxu0 }
 0x394   :  { %v6037_v15 = vadd.f32 %v6036_v60, %v6035_v12  ;;  %v6038_v24 = vpop.f32.mrb[34].mxu1  ;;  %v5945_v36 = vpop.f32.mrb[35].mxu0 }
 0x395   :  { %v4207_v37 = vpack.c.bf16 %v4189_v48, %v4188_v17  ;;  %v3995_v47 = vadd.f32 %v5943_v1, %v7596_v28  ;;  %v5946_v13 = vadd.f32 %v5945_v36, %v5944_v14  ;;  %v6039_v51 = vpop.f32.mrb[35].mxu1 }
 0x396   :  { %v6040_v30 = vadd.f32 %v6039_v51, %v6038_v24 }
 0x397   :  { %v4131_v54 = vadd.f32 %v6037_v15, %v3995_v47  ;;  %v3998_v55 = vadd.f32 %v5946_v13, %v7599_v8  ;;  %6138 = vmatmul.mubr.msk.bf16.gmra.mrb[80].mxu0 %vm4253_vm1, %v4207_v37 }
 0x398   :  { %6141 = vmatprep.mubr.msk.bf16.mxu0 %vm6563_vm0, %v6562_v20 }
 0x399   :  { %v4134_v56 = vadd.f32 %v6040_v30, %v3998_v55  ;;  %v5947_v34 = vpop.f32.mrb[36].mxu0  ;;  %v4190_v16 = vmax.f32 %v4131_v54, 0.0 }
 0x39a   :  { %v6041_v5 = vpop.f32.mrb[36].mxu1  ;;  %v5948_v63 = vpop.f32.mrb[37].mxu0 }
 0x39b   :  { %v4191_v45 = vmax.f32 %v4134_v56, 0.0  ;;  %v5949_v41 = vadd.f32 %v5948_v63, %v5947_v34  ;;  %v6042_v39 = vpop.f32.mrb[37].mxu1  ;;  %v5950_v28 = vpop.f32.mrb[38].mxu0 }
 0x39c   :  { %v6043_v3 = vadd.f32 %v6042_v39, %v6041_v5  ;;  %v6044_v21 = vpop.f32.mrb[38].mxu1  ;;  %v5951_v61 = vpop.f32.mrb[39].mxu0 }
 0x39d   :  { %v4208_v58 = vpack.c.bf16 %v4191_v45, %v4190_v16  ;;  %v4003_v8 = vadd.f32 %v5949_v41, %v7602_v43  ;;  %v5952_v59 = vadd.f32 %v5951_v61, %v5950_v28  ;;  %v6045_v35 = vpop.f32.mrb[39].mxu1 }
 0x39e   :  { %v6046_v38 = vadd.f32 %v6045_v35, %v6044_v21 }
 0x39f   :  { %v4139_v62 = vadd.f32 %v6043_v3, %v4003_v8  ;;  %v4006_v6 = vadd.f32 %v5952_v59, %v7605_v10  ;;  %6142 = vmatmul.mubr.msk.bf16.gmra.mrb[84].mxu0 %vm4253_vm1, %v4208_v58 }
 0x3a0   :  { %6145 = vmatprep.mubr.msk.bf16.mxu0 %vm6563_vm0, %v6562_v20 }
 0x3a1   :  { %v4142_v52 = vadd.f32 %v6046_v38, %v4006_v6  ;;  %v5953_v49 = vpop.f32.mrb[40].mxu0  ;;  %v4192_v2 = vmax.f32 %v4139_v62, 0.0 }
 0x3a2   :  { %v6047_v44 = vpop.f32.mrb[40].mxu1  ;;  %v5954_v53 = vpop.f32.mrb[41].mxu0 }
 0x3a3   :  { %v4193_v22 = vmax.f32 %v4142_v52, 0.0  ;;  %v5955_v40 = vadd.f32 %v5954_v53, %v5953_v49  ;;  %v6048_v25 = vpop.f32.mrb[41].mxu1  ;;  %v5956_v43 = vpop.f32.mrb[42].mxu0 }
 0x3a4   :  { %v6049_v19 = vadd.f32 %v6048_v25, %v6047_v44  ;;  %v6050_v23 = vpop.f32.mrb[42].mxu1  ;;  %v5957_v32 = vpop.f32.mrb[43].mxu0 }
 0x3a5   :  { %v4209_v31 = vpack.c.bf16 %v4193_v22, %v4192_v2  ;;  %v4011_v10 = vadd.f32 %v5955_v40, %v7608_v57  ;;  %v5958_v4 = vadd.f32 %v5957_v32, %v5956_v43  ;;  %v6051_v0 = vpop.f32.mrb[43].mxu1 }
 0x3a6   :  { %v6052_v26 = vadd.f32 %v6051_v0, %v6050_v23 }
 0x3a7   :  { %v4147_v46 = vadd.f32 %v6049_v19, %v4011_v10  ;;  %v4014_v9 = vadd.f32 %v5958_v4, %v7611_v29  ;;  %6146 = vmatmul.mubr.msk.bf16.gmra.mrb[88].mxu0 %vm4253_vm1, %v4209_v31  ;;  %v7705_v10 = vld [vmem:[#allocation7] ss:$0 sm:$0xff] }
 0x3a8   :  { %6149 = vmatprep.mubr.msk.bf16.mxu0 %vm6563_vm0, %v6562_v20 }
 0x3a9   :  { %v4150_v42 = vadd.f32 %v6052_v26, %v4014_v9  ;;  %v5959_v12 = vpop.f32.mrb[44].mxu0  ;;  %v4194_v48 = vmax.f32 %v4147_v46, 0.0 }
 0x3aa   :  { %v6053_v33 = vpop.f32.mrb[44].mxu1  ;;  %v5960_v17 = vpop.f32.mrb[45].mxu0 }
 0x3ab   :  { %v4195_v1 = vmax.f32 %v4150_v42, 0.0  ;;  %v5961_v60 = vadd.f32 %v5960_v17, %v5959_v12  ;;  %v6054_v14 = vpop.f32.mrb[45].mxu1  ;;  %v5962_v57 = vpop.f32.mrb[46].mxu0 }
 0x3ac   :  { %v6055_v15 = vadd.f32 %v6054_v14, %v6053_v33  ;;  %v6056_v24 = vpop.f32.mrb[46].mxu1  ;;  %v5963_v36 = vpop.f32.mrb[47].mxu0 }
 0x3ad   :  { %v4210_v37 = vpack.c.bf16 %v4195_v1, %v4194_v48  ;;  %v4019_v29 = vadd.f32 %v5961_v60, %v7614_v50  ;;  %v5964_v47 = vadd.f32 %v5963_v36, %v5962_v57  ;;  %v6057_v13 = vpop.f32.mrb[47].mxu1 }
 0x3ae   :  { %v6058_v51 = vadd.f32 %v6057_v13, %v6056_v24 }
 0x3af   :  { %v4155_v30 = vadd.f32 %v6055_v15, %v4019_v29  ;;  %v4022_v54 = vadd.f32 %v5964_v47, %v7620_v7  ;;  %6150 = vmatmul.mubr.msk.bf16.gmra.mrb[92].mxu0 %vm4253_vm1, %v4210_v37 }
 0x3b0   :  { %6153 = vmatprep.mubr.msk.bf16.mxu0 %vm6563_vm0, %v6562_v20 }
 0x3b1   :  { %v4158_v55 = vadd.f32 %v6058_v51, %v4022_v54  ;;  %v5965_v56 = vpop.f32.mrb[48].mxu0  ;;  %v4196_v63 = vmax.f32 %v4155_v30, 0.0 }
 0x3b2   :  { %v6059_v34 = vpop.f32.mrb[48].mxu1  ;;  %v5966_v5 = vpop.f32.mrb[49].mxu0 }
 0x3b3   :  { %v4197_v16 = vmax.f32 %v4158_v55, 0.0  ;;  %v5967_v45 = vadd.f32 %v5966_v5, %v5965_v56  ;;  %v6060_v41 = vpop.f32.mrb[49].mxu1  ;;  %v5968_v50 = vpop.f32.mrb[50].mxu0 }
 0x3b4   :  { %v6061_v39 = vadd.f32 %v6060_v41, %v6059_v34  ;;  %v6062_v28 = vpop.f32.mrb[50].mxu1  ;;  %v5969_v3 = vpop.f32.mrb[51].mxu0 }
 0x3b5   :  { %v4211_v21 = vpack.c.bf16 %v4197_v16, %v4196_v63  ;;  %v4027_v7 = vadd.f32 %v5967_v45, %v7631_v27  ;;  %v5970_v61 = vadd.f32 %v5969_v3, %v5968_v50  ;;  %v6063_v58 = vpop.f32.mrb[51].mxu1 }
 0x3b6   :  { %v6064_v8 = vadd.f32 %v6063_v58, %v6062_v28 }
 0x3b7   :  { %v4163_v59 = vadd.f32 %v6061_v39, %v4027_v7  ;;  %v4030_v35 = vadd.f32 %v5970_v61, %v7634_v18  ;;  %6154 = vmatmul.mubr.msk.bf16.gmra.mrb[96].mxu0 %vm4253_vm1, %v4211_v21 }
 0x3b8   :  { %6157 = vmatprep.mubr.msk.bf16.mxu0 %vm6563_vm0, %v6562_v20 }
 0x3b9   :  { %v4166_v38 = vadd.f32 %v6064_v8, %v4030_v35  ;;  %v5971_v62 = vpop.f32.mrb[52].mxu0  ;;  %v4198_v49 = vmax.f32 %v4163_v59, 0.0 }
 0x3ba   :  { %v5972_v6 = vpop.f32.mrb[53].mxu0  ;;  %v6065_v52 = vpop.f32.mrb[52].mxu1 }
 0x3bb   :  { %v4199_v44 = vmax.f32 %v4166_v38, 0.0  ;;  %v5973_v53 = vadd.f32 %v5972_v6, %v5971_v62  ;;  %v6066_v2 = vpop.f32.mrb[53].mxu1  ;;  %v5974_v27 = vpop.f32.mrb[54].mxu0 }
 0x3bc   :  { %v6067_v22 = vadd.f32 %v6066_v2, %v6065_v52  ;;  %v5975_v40 = vpop.f32.mrb[55].mxu0  ;;  %v6068_v25 = vpop.f32.mrb[54].mxu1 }
 0x3bd   :  { %v4212_v43 = vpack.c.bf16 %v4199_v44, %v4198_v49  ;;  %v4035_v18 = vadd.f32 %v5973_v53, %v7641_v11  ;;  %v6069_v19 = vpop.f32.mrb[55].mxu1 }
 0x3bf   :  { %v4171_v23 = vadd.f32 %v6067_v22, %v4035_v18  ;;  %6158 = vmatmul.mubr.msk.bf16.gmra.mrb[100].mxu0 %vm4253_vm1, %v4212_v43 }
 0x3c0   :  { %6161 = vmatprep.mubr.msk.bf16.mxu0 %vm6563_vm0, %v6562_v20 }
 0x3c1   :  { %v4200_v32 = vmax.f32 %v4171_v23, 0.0 }
 0x3c3   :  { %v4213_v31 = vpack.c.bf16 %v4200_v32, %v4200_v32 }
 0x3c7   :  { %6162 = vmatmul.mubr.msk.bf16.gmra.mrb[104].mxu0 %vm4253_vm1, %v4213_v31 }
 0x43a   :  { %v4327_v4 = vpop.f32.mrb[56].mxu0 }
 0x43b   :  { %v4328_v0 = vadd.f32 %v7705_v10, %v4327_v4  ;;  %v6115_v26 = vpop.f32.mrb[57].mxu0 }
 0x43c   :  { %v4330_v46 = vpop.f32.mrb[58].mxu0 }
 0x43d   :  { %v4331_v11 = vadd.f32 %v7705_v10, %v4330_v46  ;;  %v6116_v9 = vpop.f32.mrb[59].mxu0  ;;  %v4429_v42 = vmax.f32 %v4328_v0, 0.0 }
 0x43f   :  { %v4430_v12 = vmax.f32 %v4331_v11, 0.0 }
 0x441   :  { %v4454_v33 = vpack.c.bf16 %v4430_v12, %v4429_v42 }
 0x442   :  { %v4335_v17 = vpop.f32.mrb[60].mxu0 }
 0x443   :  { %v4336_v48 = vadd.f32 %v7705_v10, %v4335_v17  ;;  %v6119_v1 = vpop.f32.mrb[61].mxu0  ;;  %6174 = vmatmul.mubr.msk.bf16.vlgmr.msra.gmra.mrb[56].mxu1 %vm4253_vm1, %v4454_v33 }
 0x444   :  { %v4338_v60 = vpop.f32.mrb[62].mxu0  ;;  %6177 = vmatprep.mubr.msk.bf16.mxu1 %vm6563_vm0, %v6562_v20 }
 0x445   :  { %v4339_v14 = vadd.f32 %v7705_v10, %v4338_v60  ;;  %v6120_v57 = vpop.f32.mrb[63].mxu0  ;;  %v4431_v15 = vmax.f32 %v4336_v48, 0.0 }
 0x447   :  { %v4432_v24 = vmax.f32 %v4339_v14, 0.0 }
 0x449   :  { %v4455_v36 = vpack.c.bf16 %v4432_v24, %v4431_v15 }
 0x44a   :  { %v4343_v37 = vpop.f32.mrb[64].mxu0 }
 0x44b   :  { %v4344_v29 = vadd.f32 %v7705_v10, %v4343_v37  ;;  %v6123_v47 = vpop.f32.mrb[65].mxu0  ;;  %6178 = vmatmul.mubr.msk.bf16.gmra.mrb[60].mxu1 %vm4253_vm1, %v4455_v36 }
 0x44c   :  { %v4346_v13 = vpop.f32.mrb[66].mxu0  ;;  %6181 = vmatprep.mubr.msk.bf16.mxu1 %vm6563_vm0, %v6562_v20 }
 0x44d   :  { %v4347_v51 = vadd.f32 %v7705_v10, %v4346_v13  ;;  %v6124_v30 = vpop.f32.mrb[67].mxu0  ;;  %v4433_v54 = vmax.f32 %v4344_v29, 0.0 }
 0x44f   :  { %v4434_v55 = vmax.f32 %v4347_v51, 0.0 }
 0x451   :  { %v4456_v56 = vpack.c.bf16 %v4434_v55, %v4433_v54 }
 0x452   :  { %v4351_v34 = vpop.f32.mrb[68].mxu0 }
 0x453   :  { %v4352_v5 = vadd.f32 %v7705_v10, %v4351_v34  ;;  %v6127_v63 = vpop.f32.mrb[69].mxu0  ;;  %6182 = vmatmul.mubr.msk.bf16.gmra.mrb[64].mxu1 %vm4253_vm1, %v4456_v56 }
 0x454   :  { %v4354_v16 = vpop.f32.mrb[70].mxu0  ;;  %6185 = vmatprep.mubr.msk.bf16.mxu1 %vm6563_vm0, %v6562_v20 }
 0x455   :  { %v4355_v45 = vadd.f32 %v7705_v10, %v4354_v16  ;;  %v6128_v41 = vpop.f32.mrb[71].mxu0  ;;  %v4435_v50 = vmax.f32 %v4352_v5, 0.0 }
 0x457   :  { %v4436_v39 = vmax.f32 %v4355_v45, 0.0 }
 0x459   :  { %v4457_v28 = vpack.c.bf16 %v4436_v39, %v4435_v50 }
 0x45a   :  { %v4359_v3 = vpop.f32.mrb[72].mxu0 }
 0x45b   :  { %v4360_v21 = vadd.f32 %v7705_v10, %v4359_v3  ;;  %v6131_v7 = vpop.f32.mrb[73].mxu0  ;;  %6186 = vmatmul.mubr.msk.bf16.gmra.mrb[68].mxu1 %vm4253_vm1, %v4457_v28 }
 0x45c   :  { %v4362_v61 = vpop.f32.mrb[74].mxu0  ;;  %6189 = vmatprep.mubr.msk.bf16.mxu1 %vm6563_vm0, %v6562_v20 }
 0x45d   :  { %v4363_v58 = vadd.f32 %v7705_v10, %v4362_v61  ;;  %v6132_v8 = vpop.f32.mrb[75].mxu0  ;;  %v4437_v59 = vmax.f32 %v4360_v21, 0.0 }
 0x45f   :  { %v4438_v35 = vmax.f32 %v4363_v58, 0.0 }
 0x461   :  { %v4458_v38 = vpack.c.bf16 %v4438_v35, %v4437_v59 }
 0x462   :  { %v4367_v62 = vpop.f32.mrb[76].mxu0 }
 0x463   :  { %v4368_v6 = vadd.f32 %v7705_v10, %v4367_v62  ;;  %v6135_v52 = vpop.f32.mrb[77].mxu0  ;;  %6190 = vmatmul.mubr.msk.bf16.gmra.mrb[72].mxu1 %vm4253_vm1, %v4458_v38 }
 0x464   :  { %v4370_v49 = vpop.f32.mrb[78].mxu0  ;;  %6193 = vmatprep.mubr.msk.bf16.mxu1 %vm6563_vm0, %v6562_v20 }
 0x465   :  { %v4371_v44 = vadd.f32 %v7705_v10, %v4370_v49  ;;  %v6136_v53 = vpop.f32.mrb[79].mxu0  ;;  %v4439_v2 = vmax.f32 %v4368_v6, 0.0 }
 0x467   :  { %v4440_v27 = vmax.f32 %v4371_v44, 0.0 }
 0x469   :  { %v4459_v22 = vpack.c.bf16 %v4440_v27, %v4439_v2 }
 0x46a   :  { %v4375_v40 = vpop.f32.mrb[80].mxu0 }
 0x46b   :  { %v4376_v25 = vadd.f32 %v7705_v10, %v4375_v40  ;;  %v6139_v43 = vpop.f32.mrb[81].mxu0  ;;  %6194 = vmatmul.mubr.msk.bf16.gmra.mrb[76].mxu1 %vm4253_vm1, %v4459_v22  ;;  %v7769_v22 = vld [vmem:[#allocation9] ss:$0 sm:$0xff] }
 0x46c   :  { %v4378_v18 = vpop.f32.mrb[82].mxu0  ;;  %6197 = vmatprep.mubr.msk.bf16.mxu1 %vm6563_vm0, %v6562_v20 }
 0x46d   :  { %v4379_v19 = vadd.f32 %v7705_v10, %v4378_v18  ;;  %v6140_v23 = vpop.f32.mrb[83].mxu0  ;;  %v4441_v32 = vmax.f32 %v4376_v25, 0.0 }
 0x46f   :  { %v4442_v31 = vmax.f32 %v4379_v19, 0.0 }
 0x471   :  { %v4460_v4 = vpack.c.bf16 %v4442_v31, %v4441_v32 }
 0x472   :  { %v4383_v0 = vpop.f32.mrb[84].mxu0 }
 0x473   :  { %v4384_v26 = vadd.f32 %v7705_v10, %v4383_v0  ;;  %v6143_v46 = vpop.f32.mrb[85].mxu0  ;;  %6198 = vmatmul.mubr.msk.bf16.gmra.mrb[80].mxu1 %vm4253_vm1, %v4460_v4 }
 0x474   :  { %v4386_v11 = vpop.f32.mrb[86].mxu0  ;;  %6201 = vmatprep.mubr.msk.bf16.mxu1 %vm6563_vm0, %v6562_v20 }
 0x475   :  { %v4387_v9 = vadd.f32 %v7705_v10, %v4386_v11  ;;  %v6144_v42 = vpop.f32.mrb[87].mxu0  ;;  %v4443_v12 = vmax.f32 %v4384_v26, 0.0 }
 0x477   :  { %v4444_v33 = vmax.f32 %v4387_v9, 0.0 }
 0x479   :  { %v4461_v17 = vpack.c.bf16 %v4444_v33, %v4443_v12 }
 0x47a   :  { %v4391_v48 = vpop.f32.mrb[88].mxu0 }
 0x47b   :  { %v4392_v1 = vadd.f32 %v7705_v10, %v4391_v48  ;;  %v6147_v60 = vpop.f32.mrb[89].mxu0  ;;  %6202 = vmatmul.mubr.msk.bf16.gmra.mrb[84].mxu1 %vm4253_vm1, %v4461_v17 }
 0x47c   :  { %v4394_v14 = vpop.f32.mrb[90].mxu0  ;;  %6205 = vmatprep.mubr.msk.bf16.mxu1 %vm6563_vm0, %v6562_v20 }
 0x47d   :  { %v4395_v57 = vadd.f32 %v7705_v10, %v4394_v14  ;;  %v6148_v15 = vpop.f32.mrb[91].mxu0  ;;  %v4445_v24 = vmax.f32 %v4392_v1, 0.0 }
 0x47f   :  { %v4446_v36 = vmax.f32 %v4395_v57, 0.0 }
 0x481   :  { %v4462_v37 = vpack.c.bf16 %v4446_v36, %v4445_v24 }
 0x482   :  { %v4399_v29 = vpop.f32.mrb[92].mxu0 }
 0x483   :  { %v4400_v47 = vadd.f32 %v7705_v10, %v4399_v29  ;;  %v6151_v13 = vpop.f32.mrb[93].mxu0  ;;  %6206 = vmatmul.mubr.msk.bf16.gmra.mrb[88].mxu1 %vm4253_vm1, %v4462_v37 }
 0x484   :  { %v4402_v51 = vpop.f32.mrb[94].mxu0  ;;  %6209 = vmatprep.mubr.msk.bf16.mxu1 %vm6563_vm0, %v6562_v20 }
 0x485   :  { %v4403_v30 = vadd.f32 %v7705_v10, %v4402_v51  ;;  %v6152_v54 = vpop.f32.mrb[95].mxu0  ;;  %v4447_v55 = vmax.f32 %v4400_v47, 0.0 }
 0x487   :  { %v4448_v56 = vmax.f32 %v4403_v30, 0.0 }
 0x489   :  { %v4463_v34 = vpack.c.bf16 %v4448_v56, %v4447_v55 }
 0x48a   :  { %v4407_v5 = vpop.f32.mrb[96].mxu0 }
 0x48b   :  { %v4408_v63 = vadd.f32 %v7705_v10, %v4407_v5  ;;  %v6155_v16 = vpop.f32.mrb[97].mxu0  ;;  %6210 = vmatmul.mubr.msk.bf16.gmra.mrb[92].mxu1 %vm4253_vm1, %v4463_v34 }
 0x48c   :  { %v4410_v45 = vpop.f32.mrb[98].mxu0  ;;  %6213 = vmatprep.mubr.msk.bf16.mxu1 %vm6563_vm0, %v6562_v20 }
 0x48d   :  { %v4411_v41 = vadd.f32 %v7705_v10, %v4410_v45  ;;  %v6156_v50 = vpop.f32.mrb[99].mxu0  ;;  %v4449_v39 = vmax.f32 %v4408_v63, 0.0 }
 0x48f   :  { %v4450_v28 = vmax.f32 %v4411_v41, 0.0 }
 0x491   :  { %v4464_v3 = vpack.c.bf16 %v4450_v28, %v4449_v39 }
 0x492   :  { %v4415_v21 = vpop.f32.mrb[100].mxu0 }
 0x493   :  { %v4416_v7 = vadd.f32 %v7705_v10, %v4415_v21  ;;  %v6159_v61 = vpop.f32.mrb[101].mxu0  ;;  %6214 = vmatmul.mubr.msk.bf16.gmra.mrb[96].mxu1 %vm4253_vm1, %v4464_v3 }
 0x494   :  { %v4418_v58 = vpop.f32.mrb[102].mxu0  ;;  %6217 = vmatprep.mubr.msk.bf16.mxu1 %vm6563_vm0, %v6562_v20 }
 0x495   :  { %v4419_v8 = vadd.f32 %v7705_v10, %v4418_v58  ;;  %v6160_v59 = vpop.f32.mrb[103].mxu0  ;;  %v4451_v35 = vmax.f32 %v4416_v7, 0.0 }
 0x497   :  { %v4452_v38 = vmax.f32 %v4419_v8, 0.0 }
 0x499   :  { %v4465_v62 = vpack.c.bf16 %v4452_v38, %v4451_v35 }
 0x49a   :  { %v4423_v6 = vpop.f32.mrb[104].mxu0 }
 0x49b   :  { %v4424_v52 = vadd.f32 %v7705_v10, %v4423_v6  ;;  %v6163_v49 = vpop.f32.mrb[105].mxu0  ;;  %6218 = vmatmul.mubr.msk.bf16.gmra.mrb[100].mxu1 %vm4253_vm1, %v4465_v62 }
 0x49c   :  { %v4426_v44 = vpop.f32.mrb[106].mxu0  ;;  %6221 = vmatprep.mubr.msk.bf16.mxu1 %vm6563_vm0, %v6562_v20 }
 0x49d   :  { %v4453_v53 = vmax.f32 %v4424_v52, 0.0  ;;  %v6164_v2 = vpop.f32.mrb[107].mxu0 }
 0x49f   :  { %v4466_v27 = vpack.c.bf16 %v4453_v53, %v4453_v53 }
 0x4a3   :  { %6222 = vmatmul.mubr.msk.bf16.gmra.mrb[104].mxu1 %vm4253_vm1, %v4466_v27 }
 0x516   :  { %v4579_v40 = vpop.f32.mrb[56].mxu1 }
 0x517   :  { %v4580_v25 = vadd.f32 %v7769_v22, %v4579_v40  ;;  %v6175_v43 = vpop.f32.mrb[57].mxu1 }
 0x518   :  { %v4582_v10 = vpop.f32.mrb[58].mxu1 }
 0x519   :  { %4682 = vst.msk [vmem:[%s7903_s7] sm:$0xff] %vm4681_vm2, %v4580_v25  ;;  %v4583_v20 = vadd.f32 %v7769_v22, %v4582_v10  ;;  %v6176_v18 = vpop.f32.mrb[59].mxu1 }
 0x51b   :  { %4683 = vst.msk [vmem:[%s7903_s7 + $0x8] sm:$0xff] %vm4681_vm2, %v4583_v20 }
 0x51e   :  { %v4587_v19 = vpop.f32.mrb[60].mxu1 }
 0x51f   :  { %v4588_v23 = vadd.f32 %v7769_v22, %v4587_v19  ;;  %v6179_v32 = vpop.f32.mrb[61].mxu1 }
 0x520   :  { %v4590_v31 = vpop.f32.mrb[62].mxu1 }
 0x521   :  { %4684 = vst.msk [vmem:[%s7903_s7 + $0x10] sm:$0xff] %vm4681_vm2, %v4588_v23  ;;  %v4591_v4 = vadd.f32 %v7769_v22, %v4590_v31  ;;  %v6180_v0 = vpop.f32.mrb[63].mxu1 }
 0x523   :  { %4685 = vst.msk [vmem:[%s7903_s7 + $0x18] sm:$0xff] %vm4681_vm2, %v4591_v4 }
 0x526   :  { %v4595_v26 = vpop.f32.mrb[64].mxu1 }
 0x527   :  { %v4596_v46 = vadd.f32 %v7769_v22, %v4595_v26  ;;  %v6183_v11 = vpop.f32.mrb[65].mxu1 }
 0x528   :  { %v4598_v9 = vpop.f32.mrb[66].mxu1 }
 0x529   :  { %4686 = vst.msk [vmem:[%s7903_s7 + $0x20] sm:$0xff] %vm4681_vm2, %v4596_v46  ;;  %v4599_v42 = vadd.f32 %v7769_v22, %v4598_v9  ;;  %v6184_v12 = vpop.f32.mrb[67].mxu1 }
 0x52b   :  { %4687 = vst.msk [vmem:[%s7903_s7 + $0x28] sm:$0xff] %vm4681_vm2, %v4599_v42 }
 0x52e   :  { %v4603_v33 = vpop.f32.mrb[68].mxu1 }
 0x52f   :  { %v4604_v17 = vadd.f32 %v7769_v22, %v4603_v33  ;;  %v6187_v48 = vpop.f32.mrb[69].mxu1 }
 0x530   :  { %v4606_v1 = vpop.f32.mrb[70].mxu1 }
 0x531   :  { %4688 = vst.msk [vmem:[%s7903_s7 + $0x30] sm:$0xff] %vm4681_vm2, %v4604_v17  ;;  %v4607_v60 = vadd.f32 %v7769_v22, %v4606_v1  ;;  %v6188_v14 = vpop.f32.mrb[71].mxu1 }
 0x533   :  { %4689 = vst.msk [vmem:[%s7903_s7 + $0x38] sm:$0xff] %vm4681_vm2, %v4607_v60 }
 0x536   :  { %v4611_v57 = vpop.f32.mrb[72].mxu1 }
 0x537   :  { %v4612_v15 = vadd.f32 %v7769_v22, %v4611_v57  ;;  %v6191_v24 = vpop.f32.mrb[73].mxu1 }
 0x538   :  { %v4614_v36 = vpop.f32.mrb[74].mxu1 }
 0x539   :  { %4690 = vst.msk [vmem:[%s7903_s7 + $0x40] sm:$0xff] %vm4681_vm2, %v4612_v15  ;;  %v4615_v37 = vadd.f32 %v7769_v22, %v4614_v36  ;;  %v6192_v29 = vpop.f32.mrb[75].mxu1 }
 0x53b   :  { %4691 = vst.msk [vmem:[%s7903_s7 + $0x48] sm:$0xff] %vm4681_vm2, %v4615_v37 }
 0x53e   :  { %v4619_v47 = vpop.f32.mrb[76].mxu1 }
 0x53f   :  { %v4620_v13 = vadd.f32 %v7769_v22, %v4619_v47  ;;  %v6195_v51 = vpop.f32.mrb[77].mxu1 }
 0x540   :  { %v4622_v30 = vpop.f32.mrb[78].mxu1 }
 0x541   :  { %4692 = vst.msk [vmem:[%s7903_s7 + $0x50] sm:$0xff] %vm4681_vm2, %v4620_v13  ;;  %v4623_v54 = vadd.f32 %v7769_v22, %v4622_v30  ;;  %v6196_v55 = vpop.f32.mrb[79].mxu1 }
 0x543   :  { %4693 = vst.msk [vmem:[%s7903_s7 + $0x58] sm:$0xff] %vm4681_vm2, %v4623_v54 }
 0x546   :  { %v4627_v56 = vpop.f32.mrb[80].mxu1 }
 0x547   :  { %v4628_v34 = vadd.f32 %v7769_v22, %v4627_v56  ;;  %v6199_v5 = vpop.f32.mrb[81].mxu1 }
 0x548   :  { %v4630_v63 = vpop.f32.mrb[82].mxu1 }
 0x549   :  { %4694 = vst.msk [vmem:[%s7903_s7 + $0x60] sm:$0xff] %vm4681_vm2, %v4628_v34  ;;  %v4631_v16 = vadd.f32 %v7769_v22, %v4630_v63  ;;  %v6200_v45 = vpop.f32.mrb[83].mxu1 }
 0x54b   :  { %4695 = vst.msk [vmem:[%s7903_s7 + $0x68] sm:$0xff] %vm4681_vm2, %v4631_v16 }
 0x54e   :  { %v4635_v41 = vpop.f32.mrb[84].mxu1 }
 0x54f   :  { %v4636_v50 = vadd.f32 %v7769_v22, %v4635_v41  ;;  %v6203_v39 = vpop.f32.mrb[85].mxu1 }
 0x550   :  { %v4638_v28 = vpop.f32.mrb[86].mxu1 }
 0x551   :  { %4696 = vst.msk [vmem:[%s7903_s7 + $0x70] sm:$0xff] %vm4681_vm2, %v4636_v50  ;;  %v4639_v3 = vadd.f32 %v7769_v22, %v4638_v28  ;;  %v6204_v21 = vpop.f32.mrb[87].mxu1 }
 0x553   :  { %4697 = vst.msk [vmem:[%s7903_s7 + $0x78] sm:$0xff] %vm4681_vm2, %v4639_v3 }
 0x556   :  { %v4643_v7 = vpop.f32.mrb[88].mxu1 }
 0x557   :  { %v4644_v61 = vadd.f32 %v7769_v22, %v4643_v7  ;;  %v6207_v58 = vpop.f32.mrb[89].mxu1 }
 0x558   :  { %v4646_v8 = vpop.f32.mrb[90].mxu1 }
 0x559   :  { %4698 = vst.msk [vmem:[%s7903_s7 + $0x80] sm:$0xff] %vm4681_vm2, %v4644_v61  ;;  %v4647_v59 = vadd.f32 %v7769_v22, %v4646_v8  ;;  %v6208_v35 = vpop.f32.mrb[91].mxu1 }
 0x55b   :  { %4699 = vst.msk [vmem:[%s7903_s7 + $0x88] sm:$0xff] %vm4681_vm2, %v4647_v59 }
 0x55e   :  { %v4651_v38 = vpop.f32.mrb[92].mxu1 }
 0x55f   :  { %v4652_v62 = vadd.f32 %v7769_v22, %v4651_v38  ;;  %v6211_v6 = vpop.f32.mrb[93].mxu1 }
 0x560   :  { %v4654_v52 = vpop.f32.mrb[94].mxu1 }
 0x561   :  { %4700 = vst.msk [vmem:[%s7903_s7 + $0x90] sm:$0xff] %vm4681_vm2, %v4652_v62  ;;  %v4655_v49 = vadd.f32 %v7769_v22, %v4654_v52  ;;  %v6212_v44 = vpop.f32.mrb[95].mxu1 }
 0x563   :  { %4701 = vst.msk [vmem:[%s7903_s7 + $0x98] sm:$0xff] %vm4681_vm2, %v4655_v49 }
 0x566   :  { %v4659_v53 = vpop.f32.mrb[96].mxu1 }
 0x567   :  { %v4660_v2 = vadd.f32 %v7769_v22, %v4659_v53  ;;  %v6215_v27 = vpop.f32.mrb[97].mxu1 }
 0x568   :  { %v4662_v40 = vpop.f32.mrb[98].mxu1 }
 0x569   :  { %4702 = vst.msk [vmem:[%s7903_s7 + $0xa0] sm:$0xff] %vm4681_vm2, %v4660_v2  ;;  %v4663_v25 = vadd.f32 %v7769_v22, %v4662_v40  ;;  %v6216_v43 = vpop.f32.mrb[99].mxu1 }
 0x56b   :  { %4703 = vst.msk [vmem:[%s7903_s7 + $0xa8] sm:$0xff] %vm4681_vm2, %v4663_v25 }
 0x56e   :  { %v4667_v10 = vpop.f32.mrb[100].mxu1 }
 0x56f   :  { %v4668_v20 = vadd.f32 %v7769_v22, %v4667_v10  ;;  %v6219_v18 = vpop.f32.mrb[101].mxu1 }
 0x570   :  { %v4670_v19 = vpop.f32.mrb[102].mxu1 }
 0x571   :  { %4704 = vst.msk [vmem:[%s7903_s7 + $0xb0] sm:$0xff] %vm4681_vm2, %v4668_v20  ;;  %v4671_v23 = vadd.f32 %v7769_v22, %v4670_v19  ;;  %v6220_v32 = vpop.f32.mrb[103].mxu1 }
 0x573   :  { %4705 = vst.msk [vmem:[%s7903_s7 + $0xb8] sm:$0xff] %vm4681_vm2, %v4671_v23 }
 0x576   :  { %v4675_v31 = vpop.f32.mrb[104].mxu1 }
 0x577   :  { %v4676_v4 = vadd.f32 %v7769_v22, %v4675_v31  ;;  %v6223_v0 = vpop.f32.mrb[105].mxu1 }
 0x578   :  { %v4678_v26 = vpop.f32.mrb[106].mxu1 }
 0x579   :  { %4706 = vst.msk [vmem:[%s7903_s7 + $0xc0] sm:$0xff] %vm4681_vm2, %v4676_v4  ;;  %v6224_v46 = vpop.f32.mrb[107].mxu1 }
 0x57a   :  { %4711 = vsyncpa [#allocation3], 1 }
 0x57b   :  { %4712 = vsyncpa [#allocation5], 1 }
 0x57c   :  { %4713 = vsyncpa [#allocation8], 1 }

</bundles_post_ra>
